<compile_context>
chip_gen: v7x
topology: tpu7x:2x2x1
jax: 0.10.0
libtpu: 0.0.40
codegen_flags: <defaults>
</compile_context>

<pallas_src>
import numpy as np
import jax
import jax.numpy as jnp
from jax import lax
from jax.experimental import pallas as pl
from jax.experimental.pallas import tpu as pltpu


def _shift_matrices(H, W):
    """(9, N, N) 0/1 matrices: tap k = di*3+dj of a zero-padded 3x3 window."""
    N = H * W
    S = np.zeros((9, N, N), np.float32)
    for di in range(3):
        for dj in range(3):
            k = di * 3 + dj
            for i in range(H):
                for j in range(W):
                    ii, jj = i + di - 1, j + dj - 1
                    if 0 <= ii < H and 0 <= jj < W:
                        S[k, i * W + j, ii * W + jj] = 1.0
    return jnp.asarray(S)


def c2psa_forward(x, p, *, e=0.5):
    """x: (B, C1, H, W) NCHW. p: dict of folded Conv(+BN) weights/biases."""
    B, C1, H, W = x.shape
    N = H * W
    c = int(C1 * e)
    num_heads = c // 64
    head_dim = c // num_heads
    key_dim = head_dim // 2                      # attn_ratio = 0.5
    nh_kd = key_dim * num_heads
    hq = c + 2 * nh_kd
    scale = float(key_dim) ** -0.5
    f32 = jnp.float32

    # ---- wrapper-side weight plumbing (tiny one-off XLA ops) ----
    # x to channels-last (B, N, C1): one small transpose so every in-kernel
    # matmul is a plain NN / NT MXU op (most robust dimension numbers).
    x_nc = jnp.transpose(x.reshape(B, C1, N).astype(f32), (0, 2, 1))

    w1t = jnp.asarray(p["w_cv1"], f32).T                        # (C1, 2c)
    b1 = jnp.asarray(p["b_cv1"], f32).reshape(1, -1)

    # fused qkv weight, columns permuted to [q_h0..q_hH | k_h0.. | v_h0..]
    grp = 2 * key_dim + head_dim
    idx_q = np.concatenate([np.arange(h_ * grp, h_ * grp + key_dim)
                            for h_ in range(num_heads)])
    idx_k = idx_q + key_dim
    idx_v = np.concatenate([np.arange(h_ * grp + 2 * key_dim, (h_ + 1) * grp)
                            for h_ in range(num_heads)])
    perm = np.concatenate([idx_q, idx_k, idx_v])
    wqkvt = jnp.asarray(p["w_qkv"], f32).T[:, perm]             # (c, hq)
    bqkv = jnp.asarray(p["b_qkv"], f32)[perm].reshape(1, -1)

    shifts = _shift_matrices(H, W)                              # (9, N, N)
    wpet = jnp.asarray(p["w_pe"], f32).reshape(c, 9).T          # (9, c)
    bpe = jnp.asarray(p["b_pe"], f32).reshape(1, -1)

    wprojt = jnp.asarray(p["w_proj"], f32).T                    # (c, c)
    bproj = jnp.asarray(p["b_proj"], f32).reshape(1, -1)
    wf1t = jnp.asarray(p["w_f1"], f32).T                        # (c, 2c)
    bf1 = jnp.asarray(p["b_f1"], f32).reshape(1, -1)
    wf2t = jnp.asarray(p["w_f2"], f32).T                        # (2c, c)
    bf2 = jnp.asarray(p["b_f2"], f32).reshape(1, -1)

    wcv2 = jnp.asarray(p["w_cv2"], f32)                         # (C1, 2c)
    wcv2a, wcv2b = wcv2[:, :c], wcv2[:, c:]                     # (C1, c) each
    bcv2 = jnp.asarray(p["b_cv2"], f32).reshape(-1, 1)          # (C1, 1)

    nt = (((1,), (1,)), ((), ()))        # contract last dims, no .T materialized

    def kernel(x_ref, w1t_ref, b1_ref, wqkvt_ref, bqkv_ref, s_ref,
               wpe_ref, bpe_ref, wprojt_ref, bproj_ref,
               wf1t_ref, bf1_ref, wf2t_ref, bf2_ref,
               wcv2a_ref, wcv2b_ref, bcv2_ref, out_ref, ao_ref):

        def silu(t):
            return t / (1.0 + jnp.exp(-t))

        x_cl = x_ref[0]                                          # (N, C1)

        # ---- cv1 (1x1 conv, folded BN) + SiLU ----
        h = jnp.dot(x_cl, w1t_ref[...],
                    preferred_element_type=jnp.float32) + b1_ref[...]
        h = silu(h)                                              # (N, 2c)
        a_feat = h[:, :c]
        b_feat = h[:, c:]

        # -------- PSABlock: attention --------
        # fused q/k/v projection for all heads (one lane-dense matmul)
        qkv = jnp.dot(b_feat, wqkvt_ref[...],
                      preferred_element_type=jnp.float32) + bqkv_ref[...]
        v_all = qkv[:, 2 * nh_kd:]                               # (N, c)

        for hh in range(num_heads):                              # unrolled
            q = qkv[:, hh * key_dim:(hh + 1) * key_dim]          # (N, kd)
            k = qkv[:, nh_kd + hh * key_dim:nh_kd + (hh + 1) * key_dim]
            v = qkv[:, 2 * nh_kd + hh * head_dim:
                    2 * nh_kd + (hh + 1) * head_dim]             # (N, hd)
            att = lax.dot_general(q, k, nt,
                                  preferred_element_type=jnp.float32) * scale
            att = att - jnp.max(att, axis=-1, keepdims=True)
            pexp = jnp.exp(att)
            att = pexp * pl.reciprocal(
                jnp.sum(pexp, axis=-1, keepdims=True), approx=True)
            ao_ref[:, hh * head_dim:(hh + 1) * head_dim] = jnp.dot(
                att, v, preferred_element_type=jnp.float32)

        # pe(v): depthwise 3x3 conv == 9 spatial-shift matmuls + per-channel scale
        pe = jnp.zeros((N, c), jnp.float32) + bpe_ref[...]
        for t in range(9):                                       # unrolled
            sh = jnp.dot(s_ref[t], v_all, preferred_element_type=jnp.float32)
            pe = pe + sh * wpe_ref[t:t + 1, :]

        attn_pe = ao_ref[...] + pe
        proj = jnp.dot(attn_pe, wprojt_ref[...],
                       preferred_element_type=jnp.float32) + bproj_ref[...]
        b_res = b_feat + proj                                    # shortcut

        # -------- PSABlock: FFN --------
        f = jnp.dot(b_res, wf1t_ref[...],
                    preferred_element_type=jnp.float32) + bf1_ref[...]
        f = silu(f)
        f = jnp.dot(f, wf2t_ref[...],
                    preferred_element_type=jnp.float32) + bf2_ref[...]
        b_out = b_res + f                                        # shortcut

        # ---- cv2 on concat(a, b), emitted channels-first (C1, N) ----
        out_cn = (lax.dot_general(wcv2a_ref[...], a_feat, nt,
                                  preferred_element_type=jnp.float32)
                  + lax.dot_general(wcv2b_ref[...], b_out, nt,
                                    preferred_element_type=jnp.float32)
                  + bcv2_ref[...])
        out_cn = silu(out_cn)
        out_ref[...] = out_cn[None].astype(out_ref.dtype)

    c2 = 2 * c
    const2 = lambda b: (0, 0)
    const3 = lambda b: (0, 0, 0)
    out = pl.pallas_call(
        kernel,
        out_shape=jax.ShapeDtypeStruct((B, C1, N), f32),
        grid=(B,),
        in_specs=[
            pl.BlockSpec((1, N, C1), lambda b: (b, 0, 0)),   # x (channels-last)
            pl.BlockSpec((C1, c2), const2),                  # w_cv1^T
            pl.BlockSpec((1, c2), const2),                   # b_cv1
            pl.BlockSpec((c, hq), const2),                   # w_qkv^T (permuted)
            pl.BlockSpec((1, hq), const2),                   # b_qkv  (permuted)
            pl.BlockSpec((9, N, N), const3),                 # 3x3 shift matrices
            pl.BlockSpec((9, c), const2),                    # w_pe taps
            pl.BlockSpec((1, c), const2),                    # b_pe
            pl.BlockSpec((c, c), const2),                    # w_proj^T
            pl.BlockSpec((1, c), const2),                    # b_proj
            pl.BlockSpec((c, c2), const2),                   # w_ffn1^T
            pl.BlockSpec((1, c2), const2),                   # b_ffn1
            pl.BlockSpec((c2, c), const2),                   # w_ffn2^T
            pl.BlockSpec((1, c), const2),                    # b_ffn2
            pl.BlockSpec((C1, c), const2),                   # w_cv2[:, :c]
            pl.BlockSpec((C1, c), const2),                   # w_cv2[:, c:]
            pl.BlockSpec((C1, 1), const2),                   # b_cv2
        ],
        out_specs=pl.BlockSpec((1, C1, N), lambda b: (b, 0, 0)),
        scratch_shapes=[pltpu.VMEM((N, c), jnp.float32)],    # per-head attn out
        compiler_params=pltpu.CompilerParams(
            dimension_semantics=("parallel",)),              # B=2 -> v7x dual TC
    )(x_nc, w1t, b1, wqkvt, bqkv, shifts, wpet, bpe,
      wprojt, bproj, wf1t, bf1, wf2t, bf2, wcv2a, wcv2b, bcv2)

    return out.reshape(B, C1, H, W)


def c2psa_reference(x, p, *, e=0.5):
    """Pure-JAX/XLA reference mirroring the PyTorch C2PSA forward (folded BN)."""
    B, C1, H, W = x.shape
    N = H * W
    c = int(C1 * e)
    num_heads = c // 64
    head_dim = c // num_heads
    key_dim = head_dim // 2
    scale = float(key_dim) ** -0.5
    hp = lax.Precision.HIGHEST

    def conv1x1(t, w, b):
        return jnp.einsum("oc,bchw->bohw", w, t,
                          precision=hp) + b[None, :, None, None]

    def silu(t):
        return t * jax.nn.sigmoid(t)

    x = x.astype(jnp.float32)
    h = silu(conv1x1(x, p["w_cv1"], p["b_cv1"]))
    a, bf = h[:, :c], h[:, c:]

    # Attention
    qkv = conv1x1(bf, p["w_qkv"], p["b_qkv"]).reshape(
        B, num_heads, 2 * key_dim + head_dim, N)
    q = qkv[:, :, :key_dim]
    k = qkv[:, :, key_dim:2 * key_dim]
    v = qkv[:, :, 2 * key_dim:]
    attn = jnp.einsum("bhdm,bhdn->bhmn", q, k, precision=hp) * scale
    attn = jax.nn.softmax(attn, axis=-1)
    o = jnp.einsum("bhdn,bhmn->bhdm", v, attn, precision=hp).reshape(B, c, H, W)
    v_sp = v.reshape(B, c, H, W)
    pe = lax.conv_general_dilated(
        v_sp, p["w_pe"][:, None, :, :], window_strides=(1, 1),
        padding=((1, 1), (1, 1)), dimension_numbers=("NCHW", "OIHW", "NCHW"),
        feature_group_count=c, precision=hp) + p["b_pe"][None, :, None, None]
    bf = bf + conv1x1(o + pe, p["w_proj"], p["b_proj"])

    # FFN
    f = silu(conv1x1(bf, p["w_f1"], p["b_f1"]))
    f = conv1x1(f, p["w_f2"], p["b_f2"])
    bf = bf + f

    return silu(conv1x1(jnp.concatenate([a, bf], axis=1),
                        p["w_cv2"], p["b_cv2"]))


if __name__ == "__main__":
    # C2PSA(c1=256, c2=256, n=1, e=0.5) -> c=128, num_heads=2, 8x8 feature map.
    B, C1, H, W = 2, 256, 8, 8
    e = 0.5
    c = int(C1 * e)
    num_heads = c // 64
    head_dim = c // num_heads
    key_dim = head_dim // 2
    hq = c + 2 * key_dim * num_heads

    key = jax.random.PRNGKey(0)
    ks = jax.random.split(key, 16)

    def w_init(k_, shape, fan_in):
        return jax.random.normal(k_, shape, jnp.float32) * (1.0 / float(np.sqrt(fan_in)))

    def b_init(k_, n):
        return 0.02 * jax.random.normal(k_, (n,), jnp.float32)

    x = jax.random.normal(ks[0], (B, C1, H, W), jnp.float32)
    params = {
        "w_cv1": w_init(ks[1], (2 * c, C1), C1),      "b_cv1": b_init(ks[2], 2 * c),
        "w_qkv": w_init(ks[3], (hq, c), c),           "b_qkv": b_init(ks[4], hq),
        "w_pe":  w_init(ks[5], (c, 3, 3), 9),         "b_pe":  b_init(ks[6], c),
        "w_proj": w_init(ks[7], (c, c), c),           "b_proj": b_init(ks[8], c),
        "w_f1":  w_init(ks[9], (2 * c, c), c),        "b_f1":  b_init(ks[10], 2 * c),
        "w_f2":  w_init(ks[11], (c, 2 * c), 2 * c),   "b_f2":  b_init(ks[12], c),
        "w_cv2": w_init(ks[13], (C1, 2 * c), 2 * c),  "b_cv2": b_init(ks[14], C1),
    }

    out = jax.block_until_ready(c2psa_forward(x, params, e=e))
    ref = jax.block_until_ready(c2psa_reference(x, params, e=e))

    assert out.shape == (B, C1, H, W)
    max_err = float(jnp.max(jnp.abs(out - ref)))
    # tolerance accounts for the approx (EUP) reciprocal in the softmax denom
    assert max_err < 5e-3, f"max abs err {max_err}"
    print("KERNEL_OK")
</pallas_src>

<mosaic_0001>
module attributes {stable_mosaic.version = 11 : i64} {
  func.func @kernel(%arg0: i32, %arg1: memref<1x64x256xf32, #tpu.memory_space<vmem>>, %arg2: memref<256x256xf32, #tpu.memory_space<vmem>>, %arg3: memref<1x256xf32, #tpu.memory_space<vmem>>, %arg4: memref<128x256xf32, #tpu.memory_space<vmem>>, %arg5: memref<1x256xf32, #tpu.memory_space<vmem>>, %arg6: memref<9x64x64xf32, #tpu.memory_space<vmem>>, %arg7: memref<9x128xf32, #tpu.memory_space<vmem>>, %arg8: memref<1x128xf32, #tpu.memory_space<vmem>>, %arg9: memref<128x128xf32, #tpu.memory_space<vmem>>, %arg10: memref<1x128xf32, #tpu.memory_space<vmem>>, %arg11: memref<128x256xf32, #tpu.memory_space<vmem>>, %arg12: memref<1x256xf32, #tpu.memory_space<vmem>>, %arg13: memref<256x128xf32, #tpu.memory_space<vmem>>, %arg14: memref<1x128xf32, #tpu.memory_space<vmem>>, %arg15: memref<256x128xf32, #tpu.memory_space<vmem>>, %arg16: memref<256x128xf32, #tpu.memory_space<vmem>>, %arg17: memref<256x1xf32, #tpu.memory_space<vmem>>, %arg18: memref<1x256x64xf32, #tpu.memory_space<vmem>>, %arg19: memref<64x128xf32, #tpu.memory_space<vmem>>) attributes {dimension_semantics = [#tpu.dimension_semantics<parallel>], iteration_bounds = array<i64: 2>, scalar_prefetch = 0 : i64, scratch_operands = 1 : i64, tpu.core_type = #tpu.core_type<tc>, window_params = [{transform_indices = @transform_0, window_bounds = array<i64: 1, 64, 256>}, {pipeline_mode = #tpu.pipeline_mode<synchronous>, transform_indices = @transform_1, window_bounds = array<i64: 256, 256>}, {pipeline_mode = #tpu.pipeline_mode<synchronous>, transform_indices = @transform_2, window_bounds = array<i64: 1, 256>}, {pipeline_mode = #tpu.pipeline_mode<synchronous>, transform_indices = @transform_3, window_bounds = array<i64: 128, 256>}, {pipeline_mode = #tpu.pipeline_mode<synchronous>, transform_indices = @transform_4, window_bounds = array<i64: 1, 256>}, {pipeline_mode = #tpu.pipeline_mode<synchronous>, transform_indices = @transform_5, window_bounds = array<i64: 9, 64, 64>}, {pipeline_mode = #tpu.pipeline_mode<synchronous>, transform_indices = @transform_6, window_bounds = array<i64: 9, 128>}, {pipeline_mode = #tpu.pipeline_mode<synchronous>, transform_indices = @transform_7, window_bounds = array<i64: 1, 128>}, {pipeline_mode = #tpu.pipeline_mode<synchronous>, transform_indices = @transform_8, window_bounds = array<i64: 128, 128>}, {pipeline_mode = #tpu.pipeline_mode<synchronous>, transform_indices = @transform_9, window_bounds = array<i64: 1, 128>}, {pipeline_mode = #tpu.pipeline_mode<synchronous>, transform_indices = @transform_10, window_bounds = array<i64: 128, 256>}, {pipeline_mode = #tpu.pipeline_mode<synchronous>, transform_indices = @transform_11, window_bounds = array<i64: 1, 256>}, {pipeline_mode = #tpu.pipeline_mode<synchronous>, transform_indices = @transform_12, window_bounds = array<i64: 256, 128>}, {pipeline_mode = #tpu.pipeline_mode<synchronous>, transform_indices = @transform_13, window_bounds = array<i64: 1, 128>}, {pipeline_mode = #tpu.pipeline_mode<synchronous>, transform_indices = @transform_14, window_bounds = array<i64: 256, 128>}, {pipeline_mode = #tpu.pipeline_mode<synchronous>, transform_indices = @transform_15, window_bounds = array<i64: 256, 128>}, {pipeline_mode = #tpu.pipeline_mode<synchronous>, transform_indices = @transform_16, window_bounds = array<i64: 256, 1>}, {transform_indices = @transform_17, window_bounds = array<i64: 1, 256, 64>}]} {
    %c0 = arith.constant 0 : index
    %c0_0 = arith.constant 0 : index
    %c0_1 = arith.constant 0 : index
    %0 = vector.load %arg1[%c0, %c0_0, %c0_1] : memref<1x64x256xf32, #tpu.memory_space<vmem>>, vector<1x64x256xf32>
    %1 = vector.shape_cast %0 : vector<1x64x256xf32> to vector<64x256xf32>
    %c0_2 = arith.constant 0 : index
    %c0_3 = arith.constant 0 : index
    %2 = vector.load %arg2[%c0_2, %c0_3] : memref<256x256xf32, #tpu.memory_space<vmem>>, vector<256x256xf32>
    %cst = arith.constant dense<0.000000e+00> : vector<64x256xf32>
    %3 = tpu.matmul %1, %2, %cst {dimension_numbers = #tpu.dot_dimension_numbers<[1], [0], [0], [1], [0, 0, 1, 1], [], []>} : vector<64x256xf32>, vector<256x256xf32>, vector<64x256xf32> -> vector<64x256xf32>
    %c0_4 = arith.constant 0 : index
    %c0_5 = arith.constant 0 : index
    %4 = vector.load %arg3[%c0_4, %c0_5] : memref<1x256xf32, #tpu.memory_space<vmem>>, vector<1x256xf32>
    %5 = vector.broadcast %4 : vector<1x256xf32> to vector<64x256xf32>
    %6 = arith.addf %3, %5 : vector<64x256xf32>
    %cst_6 = arith.constant 0.000000e+00 : f32
    %7 = vector.broadcast %cst_6 : f32 to vector<64x256xf32>
    %8 = arith.subf %7, %6 : vector<64x256xf32>
    %9 = math.exp %8 : vector<64x256xf32>
    %cst_7 = arith.constant 1.000000e+00 : f32
    %10 = vector.broadcast %cst_7 : f32 to vector<64x256xf32>
    %11 = arith.addf %10, %9 : vector<64x256xf32>
    %12 = arith.divf %6, %11 : vector<64x256xf32>
    %13 = vector.extract_strided_slice %12 {offsets = [0, 0], sizes = [64, 128], strides = [1, 1]} : vector<64x256xf32> to vector<64x128xf32>
    %14 = vector.extract_strided_slice %12 {offsets = [0, 128], sizes = [64, 128], strides = [1, 1]} : vector<64x256xf32> to vector<64x128xf32>
    %c0_8 = arith.constant 0 : index
    %c0_9 = arith.constant 0 : index
    %15 = vector.load %arg4[%c0_8, %c0_9] : memref<128x256xf32, #tpu.memory_space<vmem>>, vector<128x256xf32>
    %cst_10 = arith.constant dense<0.000000e+00> : vector<64x256xf32>
    %16 = tpu.matmul %14, %15, %cst_10 {dimension_numbers = #tpu.dot_dimension_numbers<[1], [0], [0], [1], [0, 0, 1, 1], [], []>} : vector<64x128xf32>, vector<128x256xf32>, vector<64x256xf32> -> vector<64x256xf32>
    %c0_11 = arith.constant 0 : index
    %c0_12 = arith.constant 0 : index
    %17 = vector.load %arg5[%c0_11, %c0_12] : memref<1x256xf32, #tpu.memory_space<vmem>>, vector<1x256xf32>
    %18 = vector.broadcast %17 : vector<1x256xf32> to vector<64x256xf32>
    %19 = arith.addf %16, %18 : vector<64x256xf32>
    %20 = vector.extract_strided_slice %19 {offsets = [0, 128], sizes = [64, 128], strides = [1, 1]} : vector<64x256xf32> to vector<64x128xf32>
    %21 = vector.extract_strided_slice %19 {offsets = [0, 0], sizes = [64, 32], strides = [1, 1]} : vector<64x256xf32> to vector<64x32xf32>
    %22 = vector.extract_strided_slice %19 {offsets = [0, 64], sizes = [64, 32], strides = [1, 1]} : vector<64x256xf32> to vector<64x32xf32>
    %23 = vector.extract_strided_slice %19 {offsets = [0, 128], sizes = [64, 64], strides = [1, 1]} : vector<64x256xf32> to vector<64x64xf32>
    %cst_13 = arith.constant dense<0.000000e+00> : vector<64x64xf32>
    %24 = tpu.matmul %21, %22, %cst_13 {dimension_numbers = #tpu.dot_dimension_numbers<[1], [1], [0], [0], [0, 0, 1, 0], [], []>} : vector<64x32xf32>, vector<64x32xf32>, vector<64x64xf32> -> vector<64x64xf32>
    %cst_14 = arith.constant 0.176776692 : f32
    %25 = vector.broadcast %cst_14 : f32 to vector<64x64xf32>
    %26 = arith.mulf %24, %25 : vector<64x64xf32>
    %cst_15 = arith.constant dense<0xFF800000> : vector<64xf32>
    %27 = vector.multi_reduction <maximumf>, %26, %cst_15 [1] : vector<64x64xf32> to vector<64xf32>
    %28 = vector.shape_cast %27 : vector<64xf32> to vector<64x1xf32>
    %29 = vector.broadcast %28 : vector<64x1xf32> to vector<64x64xf32>
    %30 = arith.subf %26, %29 : vector<64x64xf32>
    %31 = math.exp %30 : vector<64x64xf32>
    %cst_16 = arith.constant dense<0.000000e+00> : vector<64xf32>
    %32 = vector.multi_reduction <add>, %31, %cst_16 [1] : vector<64x64xf32> to vector<64xf32>
    %33 = vector.shape_cast %32 : vector<64xf32> to vector<64x1xf32>
    %34 = tpu.reciprocal %33 {approx = true} : vector<64x1xf32> -> vector<64x1xf32>
    %35 = vector.broadcast %34 : vector<64x1xf32> to vector<64x64xf32>
    %36 = arith.mulf %31, %35 : vector<64x64xf32>
    %cst_17 = arith.constant dense<0.000000e+00> : vector<64x64xf32>
    %37 = tpu.matmul %36, %23, %cst_17 {dimension_numbers = #tpu.dot_dimension_numbers<[1], [0], [0], [1], [0, 0, 1, 1], [], []>} : vector<64x64xf32>, vector<64x64xf32>, vector<64x64xf32> -> vector<64x64xf32>
    %c0_18 = arith.constant 0 : index
    %c0_19 = arith.constant 0 : index
    %38 = vector.load %arg19[%c0_18, %c0_19] : memref<64x128xf32, #tpu.memory_space<vmem>>, vector<64x64xf32>
    tpu.vector_store %arg19[%c0_18, %c0_19], %37 {strides = array<i32>} : memref<64x128xf32, #tpu.memory_space<vmem>>, vector<64x64xf32>,
    %39 = vector.extract_strided_slice %19 {offsets = [0, 32], sizes = [64, 32], strides = [1, 1]} : vector<64x256xf32> to vector<64x32xf32>
    %40 = vector.extract_strided_slice %19 {offsets = [0, 96], sizes = [64, 32], strides = [1, 1]} : vector<64x256xf32> to vector<64x32xf32>
    %41 = vector.extract_strided_slice %19 {offsets = [0, 192], sizes = [64, 64], strides = [1, 1]} : vector<64x256xf32> to vector<64x64xf32>
    %cst_20 = arith.constant dense<0.000000e+00> : vector<64x64xf32>
    %42 = tpu.matmul %39, %40, %cst_20 {dimension_numbers = #tpu.dot_dimension_numbers<[1], [1], [0], [0], [0, 0, 1, 0], [], []>} : vector<64x32xf32>, vector<64x32xf32>, vector<64x64xf32> -> vector<64x64xf32>
    %cst_21 = arith.constant 0.176776692 : f32
    %43 = vector.broadcast %cst_21 : f32 to vector<64x64xf32>
    %44 = arith.mulf %42, %43 : vector<64x64xf32>
    %cst_22 = arith.constant dense<0xFF800000> : vector<64xf32>
    %45 = vector.multi_reduction <maximumf>, %44, %cst_22 [1] : vector<64x64xf32> to vector<64xf32>
    %46 = vector.shape_cast %45 : vector<64xf32> to vector<64x1xf32>
    %47 = vector.broadcast %46 : vector<64x1xf32> to vector<64x64xf32>
    %48 = arith.subf %44, %47 : vector<64x64xf32>
    %49 = math.exp %48 : vector<64x64xf32>
    %cst_23 = arith.constant dense<0.000000e+00> : vector<64xf32>
    %50 = vector.multi_reduction <add>, %49, %cst_23 [1] : vector<64x64xf32> to vector<64xf32>
    %51 = vector.shape_cast %50 : vector<64xf32> to vector<64x1xf32>
    %52 = tpu.reciprocal %51 {approx = true} : vector<64x1xf32> -> vector<64x1xf32>
    %53 = vector.broadcast %52 : vector<64x1xf32> to vector<64x64xf32>
    %54 = arith.mulf %49, %53 : vector<64x64xf32>
    %cst_24 = arith.constant dense<0.000000e+00> : vector<64x64xf32>
    %55 = tpu.matmul %54, %41, %cst_24 {dimension_numbers = #tpu.dot_dimension_numbers<[1], [0], [0], [1], [0, 0, 1, 1], [], []>} : vector<64x64xf32>, vector<64x64xf32>, vector<64x64xf32> -> vector<64x64xf32>
    %c0_25 = arith.constant 0 : index
    %c64 = arith.constant 64 : index
    %56 = vector.load %arg19[%c0_25, %c64] : memref<64x128xf32, #tpu.memory_space<vmem>>, vector<64x64xf32>
    tpu.vector_store %arg19[%c0_25, %c64], %55 {strides = array<i32>} : memref<64x128xf32, #tpu.memory_space<vmem>>, vector<64x64xf32>,
    %cst_26 = arith.constant 0.000000e+00 : f32
    %57 = vector.broadcast %cst_26 : f32 to vector<64x128xf32>
    %c0_27 = arith.constant 0 : index
    %c0_28 = arith.constant 0 : index
    %58 = vector.load %arg8[%c0_27, %c0_28] : memref<1x128xf32, #tpu.memory_space<vmem>>, vector<1x128xf32>
    %59 = vector.broadcast %58 : vector<1x128xf32> to vector<64x128xf32>
    %60 = arith.addf %57, %59 : vector<64x128xf32>
    %c0_29 = arith.constant 0 : index
    %c0_30 = arith.constant 0 : index
    %c0_31 = arith.constant 0 : index
    %61 = vector.load %arg6[%c0_29, %c0_30, %c0_31] : memref<9x64x64xf32, #tpu.memory_space<vmem>>, vector<1x64x64xf32>
    %62 = vector.shape_cast %61 : vector<1x64x64xf32> to vector<64x64xf32>
    %cst_32 = arith.constant dense<0.000000e+00> : vector<64x128xf32>
    %63 = tpu.matmul %62, %20, %cst_32 {dimension_numbers = #tpu.dot_dimension_numbers<[1], [0], [0], [1], [0, 0, 1, 1], [], []>} : vector<64x64xf32>, vector<64x128xf32>, vector<64x128xf32> -> vector<64x128xf32>
    %c0_33 = arith.constant 0 : index
    %c0_34 = arith.constant 0 : index
    %64 = vector.load %arg7[%c0_33, %c0_34] : memref<9x128xf32, #tpu.memory_space<vmem>>, vector<1x128xf32>
    %65 = vector.broadcast %64 : vector<1x128xf32> to vector<64x128xf32>
    %66 = arith.mulf %63, %65 : vector<64x128xf32>
    %67 = arith.addf %60, %66 : vector<64x128xf32>
    %c1 = arith.constant 1 : index
    %c0_35 = arith.constant 0 : index
    %c0_36 = arith.constant 0 : index
    %68 = vector.load %arg6[%c1, %c0_35, %c0_36] : memref<9x64x64xf32, #tpu.memory_space<vmem>>, vector<1x64x64xf32>
    %69 = vector.shape_cast %68 : vector<1x64x64xf32> to vector<64x64xf32>
    %cst_37 = arith.constant dense<0.000000e+00> : vector<64x128xf32>
    %70 = tpu.matmul %69, %20, %cst_37 {dimension_numbers = #tpu.dot_dimension_numbers<[1], [0], [0], [1], [0, 0, 1, 1], [], []>} : vector<64x64xf32>, vector<64x128xf32>, vector<64x128xf32> -> vector<64x128xf32>
    %c1_38 = arith.constant 1 : index
    %c0_39 = arith.constant 0 : index
    %71 = vector.load %arg7[%c1_38, %c0_39] : memref<9x128xf32, #tpu.memory_space<vmem>>, vector<1x128xf32>
    %72 = vector.broadcast %71 : vector<1x128xf32> to vector<64x128xf32>
    %73 = arith.mulf %70, %72 : vector<64x128xf32>
    %74 = arith.addf %67, %73 : vector<64x128xf32>
    %c2 = arith.constant 2 : index
    %c0_40 = arith.constant 0 : index
    %c0_41 = arith.constant 0 : index
    %75 = vector.load %arg6[%c2, %c0_40, %c0_41] : memref<9x64x64xf32, #tpu.memory_space<vmem>>, vector<1x64x64xf32>
    %76 = vector.shape_cast %75 : vector<1x64x64xf32> to vector<64x64xf32>
    %cst_42 = arith.constant dense<0.000000e+00> : vector<64x128xf32>
    %77 = tpu.matmul %76, %20, %cst_42 {dimension_numbers = #tpu.dot_dimension_numbers<[1], [0], [0], [1], [0, 0, 1, 1], [], []>} : vector<64x64xf32>, vector<64x128xf32>, vector<64x128xf32> -> vector<64x128xf32>
    %c2_43 = arith.constant 2 : index
    %c0_44 = arith.constant 0 : index
    %78 = vector.load %arg7[%c2_43, %c0_44] : memref<9x128xf32, #tpu.memory_space<vmem>>, vector<1x128xf32>
    %79 = vector.broadcast %78 : vector<1x128xf32> to vector<64x128xf32>
    %80 = arith.mulf %77, %79 : vector<64x128xf32>
    %81 = arith.addf %74, %80 : vector<64x128xf32>
    %c3 = arith.constant 3 : index
    %c0_45 = arith.constant 0 : index
    %c0_46 = arith.constant 0 : index
    %82 = vector.load %arg6[%c3, %c0_45, %c0_46] : memref<9x64x64xf32, #tpu.memory_space<vmem>>, vector<1x64x64xf32>
    %83 = vector.shape_cast %82 : vector<1x64x64xf32> to vector<64x64xf32>
    %cst_47 = arith.constant dense<0.000000e+00> : vector<64x128xf32>
    %84 = tpu.matmul %83, %20, %cst_47 {dimension_numbers = #tpu.dot_dimension_numbers<[1], [0], [0], [1], [0, 0, 1, 1], [], []>} : vector<64x64xf32>, vector<64x128xf32>, vector<64x128xf32> -> vector<64x128xf32>
    %c3_48 = arith.constant 3 : index
    %c0_49 = arith.constant 0 : index
    %85 = vector.load %arg7[%c3_48, %c0_49] : memref<9x128xf32, #tpu.memory_space<vmem>>, vector<1x128xf32>
    %86 = vector.broadcast %85 : vector<1x128xf32> to vector<64x128xf32>
    %87 = arith.mulf %84, %86 : vector<64x128xf32>
    %88 = arith.addf %81, %87 : vector<64x128xf32>
    %c4 = arith.constant 4 : index
    %c0_50 = arith.constant 0 : index
    %c0_51 = arith.constant 0 : index
    %89 = vector.load %arg6[%c4, %c0_50, %c0_51] : memref<9x64x64xf32, #tpu.memory_space<vmem>>, vector<1x64x64xf32>
    %90 = vector.shape_cast %89 : vector<1x64x64xf32> to vector<64x64xf32>
    %cst_52 = arith.constant dense<0.000000e+00> : vector<64x128xf32>
    %91 = tpu.matmul %90, %20, %cst_52 {dimension_numbers = #tpu.dot_dimension_numbers<[1], [0], [0], [1], [0, 0, 1, 1], [], []>} : vector<64x64xf32>, vector<64x128xf32>, vector<64x128xf32> -> vector<64x128xf32>
    %c4_53 = arith.constant 4 : index
    %c0_54 = arith.constant 0 : index
    %92 = vector.load %arg7[%c4_53, %c0_54] : memref<9x128xf32, #tpu.memory_space<vmem>>, vector<1x128xf32>
    %93 = vector.broadcast %92 : vector<1x128xf32> to vector<64x128xf32>
    %94 = arith.mulf %91, %93 : vector<64x128xf32>
    %95 = arith.addf %88, %94 : vector<64x128xf32>
    %c5 = arith.constant 5 : index
    %c0_55 = arith.constant 0 : index
    %c0_56 = arith.constant 0 : index
    %96 = vector.load %arg6[%c5, %c0_55, %c0_56] : memref<9x64x64xf32, #tpu.memory_space<vmem>>, vector<1x64x64xf32>
    %97 = vector.shape_cast %96 : vector<1x64x64xf32> to vector<64x64xf32>
    %cst_57 = arith.constant dense<0.000000e+00> : vector<64x128xf32>
    %98 = tpu.matmul %97, %20, %cst_57 {dimension_numbers = #tpu.dot_dimension_numbers<[1], [0], [0], [1], [0, 0, 1, 1], [], []>} : vector<64x64xf32>, vector<64x128xf32>, vector<64x128xf32> -> vector<64x128xf32>
    %c5_58 = arith.constant 5 : index
    %c0_59 = arith.constant 0 : index
    %99 = vector.load %arg7[%c5_58, %c0_59] : memref<9x128xf32, #tpu.memory_space<vmem>>, vector<1x128xf32>
    %100 = vector.broadcast %99 : vector<1x128xf32> to vector<64x128xf32>
    %101 = arith.mulf %98, %100 : vector<64x128xf32>
    %102 = arith.addf %95, %101 : vector<64x128xf32>
    %c6 = arith.constant 6 : index
    %c0_60 = arith.constant 0 : index
    %c0_61 = arith.constant 0 : index
    %103 = vector.load %arg6[%c6, %c0_60, %c0_61] : memref<9x64x64xf32, #tpu.memory_space<vmem>>, vector<1x64x64xf32>
    %104 = vector.shape_cast %103 : vector<1x64x64xf32> to vector<64x64xf32>
    %cst_62 = arith.constant dense<0.000000e+00> : vector<64x128xf32>
    %105 = tpu.matmul %104, %20, %cst_62 {dimension_numbers = #tpu.dot_dimension_numbers<[1], [0], [0], [1], [0, 0, 1, 1], [], []>} : vector<64x64xf32>, vector<64x128xf32>, vector<64x128xf32> -> vector<64x128xf32>
    %c6_63 = arith.constant 6 : index
    %c0_64 = arith.constant 0 : index
    %106 = vector.load %arg7[%c6_63, %c0_64] : memref<9x128xf32, #tpu.memory_space<vmem>>, vector<1x128xf32>
    %107 = vector.broadcast %106 : vector<1x128xf32> to vector<64x128xf32>
    %108 = arith.mulf %105, %107 : vector<64x128xf32>
    %109 = arith.addf %102, %108 : vector<64x128xf32>
    %c7 = arith.constant 7 : index
    %c0_65 = arith.constant 0 : index
    %c0_66 = arith.constant 0 : index
    %110 = vector.load %arg6[%c7, %c0_65, %c0_66] : memref<9x64x64xf32, #tpu.memory_space<vmem>>, vector<1x64x64xf32>
    %111 = vector.shape_cast %110 : vector<1x64x64xf32> to vector<64x64xf32>
    %cst_67 = arith.constant dense<0.000000e+00> : vector<64x128xf32>
    %112 = tpu.matmul %111, %20, %cst_67 {dimension_numbers = #tpu.dot_dimension_numbers<[1], [0], [0], [1], [0, 0, 1, 1], [], []>} : vector<64x64xf32>, vector<64x128xf32>, vector<64x128xf32> -> vector<64x128xf32>
    %c7_68 = arith.constant 7 : index
    %c0_69 = arith.constant 0 : index
    %113 = vector.load %arg7[%c7_68, %c0_69] : memref<9x128xf32, #tpu.memory_space<vmem>>, vector<1x128xf32>
    %114 = vector.broadcast %113 : vector<1x128xf32> to vector<64x128xf32>
    %115 = arith.mulf %112, %114 : vector<64x128xf32>
    %116 = arith.addf %109, %115 : vector<64x128xf32>
    %c8 = arith.constant 8 : index
    %c0_70 = arith.constant 0 : index
    %c0_71 = arith.constant 0 : index
    %117 = vector.load %arg6[%c8, %c0_70, %c0_71] : memref<9x64x64xf32, #tpu.memory_space<vmem>>, vector<1x64x64xf32>
    %118 = vector.shape_cast %117 : vector<1x64x64xf32> to vector<64x64xf32>
    %cst_72 = arith.constant dense<0.000000e+00> : vector<64x128xf32>
    %119 = tpu.matmul %118, %20, %cst_72 {dimension_numbers = #tpu.dot_dimension_numbers<[1], [0], [0], [1], [0, 0, 1, 1], [], []>} : vector<64x64xf32>, vector<64x128xf32>, vector<64x128xf32> -> vector<64x128xf32>
    %c8_73 = arith.constant 8 : index
    %c0_74 = arith.constant 0 : index
    %120 = vector.load %arg7[%c8_73, %c0_74] : memref<9x128xf32, #tpu.memory_space<vmem>>, vector<1x128xf32>
    %121 = vector.broadcast %120 : vector<1x128xf32> to vector<64x128xf32>
    %122 = arith.mulf %119, %121 : vector<64x128xf32>
    %123 = arith.addf %116, %122 : vector<64x128xf32>
    %c0_75 = arith.constant 0 : index
    %c0_76 = arith.constant 0 : index
    %124 = vector.load %arg19[%c0_75, %c0_76] : memref<64x128xf32, #tpu.memory_space<vmem>>, vector<64x128xf32>
    %125 = arith.addf %124, %123 : vector<64x128xf32>
    %c0_77 = arith.constant 0 : index
    %c0_78 = arith.constant 0 : index
    %126 = vector.load %arg9[%c0_77, %c0_78] : memref<128x128xf32, #tpu.memory_space<vmem>>, vector<128x128xf32>
    %cst_79 = arith.constant dense<0.000000e+00> : vector<64x128xf32>
    %127 = tpu.matmul %125, %126, %cst_79 {dimension_numbers = #tpu.dot_dimension_numbers<[1], [0], [0], [1], [0, 0, 1, 1], [], []>} : vector<64x128xf32>, vector<128x128xf32>, vector<64x128xf32> -> vector<64x128xf32>
    %c0_80 = arith.constant 0 : index
    %c0_81 = arith.constant 0 : index
    %128 = vector.load %arg10[%c0_80, %c0_81] : memref<1x128xf32, #tpu.memory_space<vmem>>, vector<1x128xf32>
    %129 = vector.broadcast %128 : vector<1x128xf32> to vector<64x128xf32>
    %130 = arith.addf %127, %129 : vector<64x128xf32>
    %131 = arith.addf %14, %130 : vector<64x128xf32>
    %c0_82 = arith.constant 0 : index
    %c0_83 = arith.constant 0 : index
    %132 = vector.load %arg11[%c0_82, %c0_83] : memref<128x256xf32, #tpu.memory_space<vmem>>, vector<128x256xf32>
    %cst_84 = arith.constant dense<0.000000e+00> : vector<64x256xf32>
    %133 = tpu.matmul %131, %132, %cst_84 {dimension_numbers = #tpu.dot_dimension_numbers<[1], [0], [0], [1], [0, 0, 1, 1], [], []>} : vector<64x128xf32>, vector<128x256xf32>, vector<64x256xf32> -> vector<64x256xf32>
    %c0_85 = arith.constant 0 : index
    %c0_86 = arith.constant 0 : index
    %134 = vector.load %arg12[%c0_85, %c0_86] : memref<1x256xf32, #tpu.memory_space<vmem>>, vector<1x256xf32>
    %135 = vector.broadcast %134 : vector<1x256xf32> to vector<64x256xf32>
    %136 = arith.addf %133, %135 : vector<64x256xf32>
    %cst_87 = arith.constant 0.000000e+00 : f32
    %137 = vector.broadcast %cst_87 : f32 to vector<64x256xf32>
    %138 = arith.subf %137, %136 : vector<64x256xf32>
    %139 = math.exp %138 : vector<64x256xf32>
    %cst_88 = arith.constant 1.000000e+00 : f32
    %140 = vector.broadcast %cst_88 : f32 to vector<64x256xf32>
    %141 = arith.addf %140, %139 : vector<64x256xf32>
    %142 = arith.divf %136, %141 : vector<64x256xf32>
    %c0_89 = arith.constant 0 : index
    %c0_90 = arith.constant 0 : index
    %143 = vector.load %arg13[%c0_89, %c0_90] : memref<256x128xf32, #tpu.memory_space<vmem>>, vector<256x128xf32>
    %cst_91 = arith.constant dense<0.000000e+00> : vector<64x128xf32>
    %144 = tpu.matmul %142, %143, %cst_91 {dimension_numbers = #tpu.dot_dimension_numbers<[1], [0], [0], [1], [0, 0, 1, 1], [], []>} : vector<64x256xf32>, vector<256x128xf32>, vector<64x128xf32> -> vector<64x128xf32>
    %c0_92 = arith.constant 0 : index
    %c0_93 = arith.constant 0 : index
    %145 = vector.load %arg14[%c0_92, %c0_93] : memref<1x128xf32, #tpu.memory_space<vmem>>, vector<1x128xf32>
    %146 = vector.broadcast %145 : vector<1x128xf32> to vector<64x128xf32>
    %147 = arith.addf %144, %146 : vector<64x128xf32>
    %148 = arith.addf %131, %147 : vector<64x128xf32>
    %c0_94 = arith.constant 0 : index
    %c0_95 = arith.constant 0 : index
    %149 = vector.load %arg15[%c0_94, %c0_95] : memref<256x128xf32, #tpu.memory_space<vmem>>, vector<256x128xf32>
    %cst_96 = arith.constant dense<0.000000e+00> : vector<256x64xf32>
    %150 = tpu.matmul %149, %13, %cst_96 {dimension_numbers = #tpu.dot_dimension_numbers<[1], [1], [0], [0], [0, 0, 1, 0], [], []>} : vector<256x128xf32>, vector<64x128xf32>, vector<256x64xf32> -> vector<256x64xf32>
    %c0_97 = arith.constant 0 : index
    %c0_98 = arith.constant 0 : index
    %151 = vector.load %arg16[%c0_97, %c0_98] : memref<256x128xf32, #tpu.memory_space<vmem>>, vector<256x128xf32>
    %cst_99 = arith.constant dense<0.000000e+00> : vector<256x64xf32>
    %152 = tpu.matmul %151, %148, %cst_99 {dimension_numbers = #tpu.dot_dimension_numbers<[1], [1], [0], [0], [0, 0, 1, 0], [], []>} : vector<256x128xf32>, vector<64x128xf32>, vector<256x64xf32> -> vector<256x64xf32>
    %153 = arith.addf %150, %152 : vector<256x64xf32>
    %c0_100 = arith.constant 0 : index
    %c0_101 = arith.constant 0 : index
    %154 = vector.load %arg17[%c0_100, %c0_101] : memref<256x1xf32, #tpu.memory_space<vmem>>, vector<256x1xf32>
    %155 = vector.broadcast %154 : vector<256x1xf32> to vector<256x64xf32>
    %156 = arith.addf %153, %155 : vector<256x64xf32>
    %cst_102 = arith.constant 0.000000e+00 : f32
    %157 = vector.broadcast %cst_102 : f32 to vector<256x64xf32>
    %158 = arith.subf %157, %156 : vector<256x64xf32>
    %159 = math.exp %158 : vector<256x64xf32>
    %cst_103 = arith.constant 1.000000e+00 : f32
    %160 = vector.broadcast %cst_103 : f32 to vector<256x64xf32>
    %161 = arith.addf %160, %159 : vector<256x64xf32>
    %162 = arith.divf %156, %161 : vector<256x64xf32>
    %163 = vector.shape_cast %162 : vector<256x64xf32> to vector<1x256x64xf32>
    %c0_104 = arith.constant 0 : index
    %c0_105 = arith.constant 0 : index
    %c0_106 = arith.constant 0 : index
    %164 = vector.load %arg18[%c0_104, %c0_105, %c0_106] : memref<1x256x64xf32, #tpu.memory_space<vmem>>, vector<1x256x64xf32>
    tpu.vector_store %arg18[%c0_104, %c0_105, %c0_106], %163 {strides = array<i32>} : memref<1x256x64xf32, #tpu.memory_space<vmem>>, vector<1x256x64xf32>,
    return
  }
  func.func @transform_0(%arg0: i32) -> (i32, i32, i32) {
    %c0_i32 = arith.constant 0 : i32
    %c0_i32_0 = arith.constant 0 : i32
    %c0_i32_1 = arith.constant 0 : i32
    return %arg0, %c0_i32, %c0_i32_0 : i32, i32, i32
  }
  func.func @transform_1(%arg0: i32) -> (i32, i32) {
    %c0_i32 = arith.constant 0 : i32
    %c0_i32_0 = arith.constant 0 : i32
    %c0_i32_1 = arith.constant 0 : i32
    return %c0_i32, %c0_i32_0 : i32, i32
  }
  func.func @transform_2(%arg0: i32) -> (i32, i32) {
    %c0_i32 = arith.constant 0 : i32
    %c0_i32_0 = arith.constant 0 : i32
    %c0_i32_1 = arith.constant 0 : i32
    return %c0_i32, %c0_i32_0 : i32, i32
  }
  func.func @transform_3(%arg0: i32) -> (i32, i32) {
    %c0_i32 = arith.constant 0 : i32
    %c0_i32_0 = arith.constant 0 : i32
    %c0_i32_1 = arith.constant 0 : i32
    return %c0_i32, %c0_i32_0 : i32, i32
  }
  func.func @transform_4(%arg0: i32) -> (i32, i32) {
    %c0_i32 = arith.constant 0 : i32
    %c0_i32_0 = arith.constant 0 : i32
    %c0_i32_1 = arith.constant 0 : i32
    return %c0_i32, %c0_i32_0 : i32, i32
  }
  func.func @transform_5(%arg0: i32) -> (i32, i32, i32) {
    %c0_i32 = arith.constant 0 : i32
    %c0_i32_0 = arith.constant 0 : i32
    %c0_i32_1 = arith.constant 0 : i32
    %c0_i32_2 = arith.constant 0 : i32
    return %c0_i32, %c0_i32_0, %c0_i32_1 : i32, i32, i32
  }
  func.func @transform_6(%arg0: i32) -> (i32, i32) {
    %c0_i32 = arith.constant 0 : i32
    %c0_i32_0 = arith.constant 0 : i32
    %c0_i32_1 = arith.constant 0 : i32
    return %c0_i32, %c0_i32_0 : i32, i32
  }
  func.func @transform_7(%arg0: i32) -> (i32, i32) {
    %c0_i32 = arith.constant 0 : i32
    %c0_i32_0 = arith.constant 0 : i32
    %c0_i32_1 = arith.constant 0 : i32
    return %c0_i32, %c0_i32_0 : i32, i32
  }
  func.func @transform_8(%arg0: i32) -> (i32, i32) {
    %c0_i32 = arith.constant 0 : i32
    %c0_i32_0 = arith.constant 0 : i32
    %c0_i32_1 = arith.constant 0 : i32
    return %c0_i32, %c0_i32_0 : i32, i32
  }
  func.func @transform_9(%arg0: i32) -> (i32, i32) {
    %c0_i32 = arith.constant 0 : i32
    %c0_i32_0 = arith.constant 0 : i32
    %c0_i32_1 = arith.constant 0 : i32
    return %c0_i32, %c0_i32_0 : i32, i32
  }
  func.func @transform_10(%arg0: i32) -> (i32, i32) {
    %c0_i32 = arith.constant 0 : i32
    %c0_i32_0 = arith.constant 0 : i32
    %c0_i32_1 = arith.constant 0 : i32
    return %c0_i32, %c0_i32_0 : i32, i32
  }
  func.func @transform_11(%arg0: i32) -> (i32, i32) {
    %c0_i32 = arith.constant 0 : i32
    %c0_i32_0 = arith.constant 0 : i32
    %c0_i32_1 = arith.constant 0 : i32
    return %c0_i32, %c0_i32_0 : i32, i32
  }
  func.func @transform_12(%arg0: i32) -> (i32, i32) {
    %c0_i32 = arith.constant 0 : i32
    %c0_i32_0 = arith.constant 0 : i32
    %c0_i32_1 = arith.constant 0 : i32
    return %c0_i32, %c0_i32_0 : i32, i32
  }
  func.func @transform_13(%arg0: i32) -> (i32, i32) {
    %c0_i32 = arith.constant 0 : i32
    %c0_i32_0 = arith.constant 0 : i32
    %c0_i32_1 = arith.constant 0 : i32
    return %c0_i32, %c0_i32_0 : i32, i32
  }
  func.func @transform_14(%arg0: i32) -> (i32, i32) {
    %c0_i32 = arith.constant 0 : i32
    %c0_i32_0 = arith.constant 0 : i32
    %c0_i32_1 = arith.constant 0 : i32
    return %c0_i32, %c0_i32_0 : i32, i32
  }
  func.func @transform_15(%arg0: i32) -> (i32, i32) {
    %c0_i32 = arith.constant 0 : i32
    %c0_i32_0 = arith.constant 0 : i32
    %c0_i32_1 = arith.constant 0 : i32
    return %c0_i32, %c0_i32_0 : i32, i32
  }
  func.func @transform_16(%arg0: i32) -> (i32, i32) {
    %c0_i32 = arith.constant 0 : i32
    %c0_i32_0 = arith.constant 0 : i32
    %c0_i32_1 = arith.constant 0 : i32
    return %c0_i32, %c0_i32_0 : i32, i32
  }
  func.func @transform_17(%arg0: i32) -> (i32, i32, i32) {
    %c0_i32 = arith.constant 0 : i32
    %c0_i32_0 = arith.constant 0 : i32
    %c0_i32_1 = arith.constant 0 : i32
    return %arg0, %c0_i32, %c0_i32_0 : i32, i32, i32
  }
}

</mosaic_0001>

<bundles_post_ra>
// kernel: tpu_custom_call.1
= control target key start
LH: loop header
LB: loop body
LE: loop exit
PB: predicated region body
PF: predicated region fallthrough
CT: control target
= control target key end

     0   :  { %s9337_s0 = inlined_call_operand.vmem [shape: f32[2,64,256], index: 0, kind: input, shape index: {}]   ;;  %s9338_s1 = inlined_call_operand.hbm [shape: f32[256,256], index: 1, kind: input, shape index: {}]   ;;  %s9339_s2 = inlined_call_operand.hbm [shape: f32[1,256], index: 2, kind: input, shape index: {}]   ;;  %s9340_s3 = inlined_call_operand.hbm [shape: f32[128,256], index: 3, kind: input, shape index: {}]   ;;  %s9341_s4 = inlined_call_operand.hbm [shape: f32[1,256], index: 4, kind: input, shape index: {}]   ;;  %s9342_s5 = inlined_call_operand.hbm [shape: f32[9,64,64], index: 5, kind: input, shape index: {}]   ;;  %s9343_s6 = inlined_call_operand.vmem [shape: f32[9,128], index: 6, kind: input, shape index: {}]   ;;  %s9344_s7 = inlined_call_operand.vmem [shape: f32[1,128], index: 7, kind: input, shape index: {}]   ;;  %s9345_s8 = inlined_call_operand.hbm [shape: f32[128,128], index: 8, kind: input, shape index: {}]   ;;  %s9346_s9 = inlined_call_operand.vmem [shape: f32[1,128], index: 9, kind: input, shape index: {}]   ;;  %s9347_s10 = inlined_call_operand.hbm [shape: f32[128,256], index: 10, kind: input, shape index: {}]   ;;  %s9348_s11 = inlined_call_operand.vmem [shape: f32[1,256], index: 11, kind: input, shape index: {}]   ;;  %s9349_s12 = inlined_call_operand.hbm [shape: f32[256,128], index: 12, kind: input, shape index: {}]   ;;  %s9350_s13 = inlined_call_operand.vmem [shape: f32[1,128], index: 13, kind: input, shape index: {}]   ;;  %s9351_s14 = inlined_call_operand.hbm [shape: f32[256,128], index: 14, kind: input, shape index: {}]   ;;  %s9352_s15 = inlined_call_operand.hbm [shape: f32[256,128], index: 15, kind: input, shape index: {}]   ;;  %s9353_s16 = inlined_call_operand.vmem [shape: f32[256,1], index: 16, kind: input, shape index: {}]   ;;  %s9354_s17 = inlined_call_operand.vmem [shape: f32[2,256,64], index: 17, kind: output, shape index: {}]  }
   0x1   :  { %9380 = sst [smem:[#allocation38_spill]] %s9337_s0 }
   0x2   :  { %9381 = sst [smem:[#allocation39_spill]] %s9338_s1 }
   0x3   :  { %9382 = sst [smem:[#allocation40_spill]] %s9339_s2 }
   0x4   :  { %9383 = sst [smem:[#allocation41_spill]] %s9341_s4 }
   0x5   :  { %9384 = sst [smem:[#allocation42_spill]] %s9350_s13 }
   0x6   :  { %9385 = sst [smem:[#allocation43_spill]] %s9354_s17 }
   0x7   :  { %22 = vsyncpa [#allocation4], 0 }
   0x8   :  { %23 = vsyncpa [#allocation6], 0 }
   0x9   :  { %24 = vsyncpa [#allocation9], 0 }
   0xa   :  { %25 = vsyncpa [#allocation12], 0 }
   0xb   :  { %26 = vsyncpa [#allocation15], 0 }
   0xc   :  { %27 = vsyncpa [#allocation18], 0  ;;  %s7600_s24 = smov 0  }
   0xd LB: > { %9386 = sst [smem:[#allocation25_spill]] %s7489_s24  ;;  %s7491_s25 = smov [#allocation5]   ;;  %s7489_s24 = sphi %s7600_s24, %s33_s24  }
   0xe   : > { %s452_s26 = sshll.u32 %s7491_s25, 4  ;;  %s7606_s27 = sadd.s32 4294967295, %s7489_s24   ;;  %s7611_s26 = int_to_ptr.vmem [resolvable:$true] %s452_s26 }
   0xf   : > { %p5124_p0 = scmp.ge.s32.totalorder %s7489_s24, 1  ;;  %p426_p1 = scmp.lt.s32.totalorder %s7489_s24, 3 }
  0x10   : > { %p9357_p2 = scmp.eq.s32.totalorder %s7606_s27, 0  ;;  %s7492_s29 = smov [#allocation8]  }
  0x11   : > { %p7613_p3 = pnand %p5124_p0, %p426_p1  ;;  %s476_s0 = sshll.u32 %s7492_s29, 4  ;;  %s7619_s0 = int_to_ptr.vmem [resolvable:$true] %s476_s0 }
  0x12   : > { %s7493_s18 = smov [#allocation11]   ;;  %s7494_s1 = smov [#allocation14]  }
  0x13   : > { %s9387_s28 = scalar_select %p7613_p3, 1, 0 }
  0x14   : > { %p6719_p4 = pneg %p7613_p3  ;;  %s505_s19 = sshll.u32 %s7493_s18, 4  ;;  %s7627_s19 = int_to_ptr.vmem [resolvable:$true] %s505_s19 }
  0x15   : > { %s7629_s20 = sshll.u32 %s7494_s1, 4  ;;  %s9389_s2 = sld [smem:[#allocation40_spill]]  ;;  %s538_s20 = int_to_ptr.vmem [resolvable:$true] %s7629_s20 }
  0x16   : > { %p7623_p5 = pnand %p9357_p2, %p6719_p4 }
  0x18   : > { %p7639_p7 = pneg %p7623_p5 }
  0x1b   : > { %s7179_s23 = scalar_lea.hbm %s9389_s2, 32 }
  0x1c   : > { %p7180_p6 = scmp.ne.s32.totalorder %s9389_s2, %s7179_s23  ;;  %p7186_p10 = scmp.lt.u32.totalorder %s7179_s23, %s9389_s2 }
  0x1e   : > { %p7182_p8 = pnand %p7639_p7, %p7180_p6 }
  0x20   : > { %p7183_p9 = pneg %p7182_p8 }
  0x22   : > { %p7188_p11 = pnand %p7186_p10, %p7183_p9 }
  0x24   : > { %7191 = shalt.err (!%p7188_p11)
}
  0x25   : > { %s7192_s21 = scalar_lea.vmem %s7611_s26, 32  ;;  %p7200_p1 = scmp.lt.s32.totalorder %s7611_s26, %s7611_s26 }
  0x26   : > { %p7193_p12 = scmp.ne.s32.totalorder %s7611_s26, %s7192_s21  ;;  %p7201_p4 = scmp.lt.s32.totalorder %s7192_s21, %s7192_s21 }
  0x28   : > { %p7195_p13 = pnand %p7193_p12, %p7639_p7  ;;  %p7202_p6 = por %p7201_p4, %p7200_p1 }
  0x2a   : > { %p7196_p0 = pneg %p7195_p13 }
  0x2c   : > { %p7203_p8 = pnand %p7202_p6, %p7196_p0 }
  0x2e   : > { %7206 = shalt.err (!%p7203_p8)
}
  0x2f   : > { %6725 = dma.hbm_to_vmem [thread:$0]  (!%p7623_p5), %s9389_s2, 32, %s7611_s26, [#allocation6]  }
  0x30   : > { %s9391_s4 = sld [smem:[#allocation41_spill]] }
  0x36   : > { %s7207_s18 = scalar_lea.hbm %s9391_s4, 32 }
  0x37   : > { %p7208_p9 = scmp.ne.s32.totalorder %s9391_s4, %s7207_s18  ;;  %p7214_p12 = scmp.lt.u32.totalorder %s7207_s18, %s9391_s4 }
  0x39   : > { %p7210_p10 = pnand %p7208_p9, %p7639_p7 }
  0x3b   : > { %p7211_p11 = pneg %p7210_p10 }
  0x3d   : > { %p7216_p13 = pnand %p7214_p12, %p7211_p11 }
  0x3f   : > { %7219 = shalt.err (!%p7216_p13)
}
  0x40   : > { %s7220_s26 = scalar_lea.vmem %s7619_s0, 32  ;;  %p7228_p6 = scmp.lt.s32.totalorder %s7619_s0, %s7619_s0 }
  0x41   : > { %p7221_p0 = scmp.ne.s32.totalorder %s7619_s0, %s7220_s26  ;;  %p7229_p8 = scmp.lt.s32.totalorder %s7220_s26, %s7220_s26 }
  0x43   : > { %p7223_p1 = pnand %p7221_p0, %p7639_p7  ;;  %p7230_p9 = por %p7229_p8, %p7228_p6 }
  0x45   : > { %p7224_p4 = pneg %p7223_p1 }
  0x47   : > { %p7231_p10 = pnand %p7230_p9, %p7224_p4 }
  0x49   : > { %7234 = shalt.err (!%p7231_p10)
}
  0x4a   : > { %6731 = dma.hbm_to_vmem [thread:$0]  (!%p7623_p5), %s9391_s4, 32, %s7619_s0, [#allocation9]  }
  0x4b   : > { %s7235_s25 = scalar_lea.hbm %s9345_s8, 2048 }
  0x4c   : > { %p7236_p11 = scmp.ne.s32.totalorder %s9345_s8, %s7235_s25  ;;  %p7242_p0 = scmp.lt.u32.totalorder %s7235_s25, %s9345_s8 }
  0x4e   : > { %p7238_p12 = pnand %p7236_p11, %p7639_p7 }
  0x50   : > { %p7239_p13 = pneg %p7238_p12 }
  0x52   : > { %p7244_p1 = pnand %p7242_p0, %p7239_p13 }
  0x54   : > { %7247 = shalt.err (!%p7244_p1)
}
  0x55   : > { %s7248_s0 = scalar_lea.vmem %s7627_s19, 2048  ;;  %p7256_p9 = scmp.lt.s32.totalorder %s7627_s19, %s7627_s19 }
  0x56   : > { %p7249_p4 = scmp.ne.s32.totalorder %s7627_s19, %s7248_s0  ;;  %p7257_p10 = scmp.lt.s32.totalorder %s7248_s0, %s7248_s0 }
  0x58   : > { %p7251_p6 = pnand %p7249_p4, %p7639_p7  ;;  %p7258_p11 = por %p7257_p10, %p7256_p9 }
  0x5a   : > { %p7252_p8 = pneg %p7251_p6 }
  0x5c   : > { %p7259_p12 = pnand %p7258_p11, %p7252_p8 }
  0x5e   : > { %7262 = shalt.err (!%p7259_p12)
}
  0x5f   : > { %s9359_s26 = smov 128   ;;  %s9361_s13 = smov 8  }
  0x60   : > { %6737 = dma.hbm_to_vmem [thread:$0]  (!%p7623_p5), %s9345_s8, 2048, %s7627_s19, [#allocation12], %s9359_s26, %s9359_s26, %s9361_s13  }
  0x61   : > { %s7263_s29 = scalar_lea.hbm %s9349_s12, 4096 }
  0x62   : > { %p7264_p13 = scmp.ne.s32.totalorder %s9349_s12, %s7263_s29  ;;  %p7270_p4 = scmp.lt.u32.totalorder %s7263_s29, %s9349_s12 }
  0x64   : > { %p7266_p0 = pnand %p7264_p13, %p7639_p7 }
  0x66   : > { %p7267_p1 = pneg %p7266_p0 }
  0x68   : > { %p7272_p6 = pnand %p7270_p4, %p7267_p1 }
  0x6a   : > { %7275 = shalt.err (!%p7272_p6)
}
  0x6b   : > { %s7276_s17 = scalar_lea.vmem %s538_s20, 4096  ;;  %p7284_p11 = scmp.lt.s32.totalorder %s538_s20, %s538_s20 }
  0x6c   : > { %p7277_p8 = scmp.ne.s32.totalorder %s538_s20, %s7276_s17  ;;  %p7285_p12 = scmp.lt.s32.totalorder %s7276_s17, %s7276_s17 }
  0x6e   : > { %p7279_p9 = pnand %p7277_p8, %p7639_p7  ;;  %p7286_p2 = por %p7285_p12, %p7284_p11 }
  0x70   : > { %p7280_p10 = pneg %p7279_p9 }
  0x72   : > { %p7287_p3 = pnand %p7286_p2, %p7280_p10 }
  0x74   : > { %7290 = shalt.err (!%p7287_p3)
}
  0x75   : > { %6743 = dma.hbm_to_vmem [thread:$0]  (!%p7623_p5), %s9349_s12, 4096, %s538_s20, [#allocation15], %s9359_s26, %s9359_s26, %s9361_s13  }
  0x76   : > { %s7497_s23 = smov [#allocation3]   ;;  %s9392_s1 = sld [smem:[#allocation39_spill]] }
  0x77   : > { %s438_s25 = sshll.u32 %s7497_s23, 4  ;;  %s439_s25 = int_to_ptr.vmem [resolvable:$true] %s438_s25 }
  0x7c   : > { %s7291_s21 = scalar_lea.hbm %s9392_s1, 8192 }
  0x7d   : > { %p7292_p2 = scmp.ne.s32.totalorder %s9392_s1, %s7291_s21  ;;  %p7298_p0 = scmp.lt.u32.totalorder %s7291_s21, %s9392_s1 }
  0x7f   : > { %p7294_p3 = pnand %p7292_p2, %p7639_p7 }
  0x81   : > { %p7295_p13 = pneg %p7294_p3 }
  0x83   : > { %p7300_p1 = pnand %p7298_p0, %p7295_p13 }
  0x85   : > { %7303 = shalt.err (!%p7300_p1)
}
  0x86   : > { %s7304_s20 = scalar_lea.vmem %s439_s25, 8192  ;;  %p7312_p9 = scmp.lt.s32.totalorder %s439_s25, %s439_s25 }
  0x87   : > { %p7305_p4 = scmp.ne.s32.totalorder %s439_s25, %s7304_s20  ;;  %p7313_p10 = scmp.lt.s32.totalorder %s7304_s20, %s7304_s20 }
  0x89   : > { %p7307_p6 = pnand %p7305_p4, %p7639_p7  ;;  %p7314_p11 = por %p7313_p10, %p7312_p9 }
  0x8b   : > { %p7308_p8 = pneg %p7307_p6 }
  0x8d   : > { %p7315_p12 = pnand %p7314_p11, %p7308_p8 }
  0x8f   : > { %7318 = shalt.err (!%p7315_p12)
}
  0x90   : > { %s9363_s19 = smov 256   ;;  %s9364_s22 = smov 16  }
  0x91   : > { %6722 = dma.hbm_to_vmem [thread:$0]  (!%p7623_p5), %s9392_s1, 8192, %s439_s25, [#allocation4], %s9363_s19, %s9363_s19, %s9364_s22  }
  0x92   : > { %s7500_s23 = smov [#allocation7]   ;;  %s7501_s18 = smov [#allocation10]  }
  0x93   : > { %s462_s29 = sshll.u32 %s7500_s23, 4  ;;  %s486_s21 = sshll.u32 %s7501_s18, 4  ;;  %s463_s29 = int_to_ptr.vmem [resolvable:$true] %s462_s29  ;;  %s7752_s21 = int_to_ptr.vmem [resolvable:$true] %s486_s21 }
  0x94   : > { %s7319_s20 = scalar_lea.hbm %s9340_s3, 4096 }
  0x95   : > { %p7320_p2 = scmp.ne.s32.totalorder %s9340_s3, %s7319_s20  ;;  %p7326_p0 = scmp.lt.u32.totalorder %s7319_s20, %s9340_s3 }
  0x97   : > { %p7322_p3 = pnand %p7320_p2, %p7639_p7 }
  0x99   : > { %p7323_p13 = pneg %p7322_p3 }
  0x9b   : > { %p7328_p1 = pnand %p7326_p0, %p7323_p13 }
  0x9d   : > { %7331 = shalt.err (!%p7328_p1)
}
  0x9e   : > { %s7332_s4 = scalar_lea.vmem %s463_s29, 4096  ;;  %p7340_p9 = scmp.lt.s32.totalorder %s463_s29, %s463_s29 }
  0x9f   : > { %p7333_p4 = scmp.ne.s32.totalorder %s463_s29, %s7332_s4  ;;  %p7341_p10 = scmp.lt.s32.totalorder %s7332_s4, %s7332_s4 }
  0xa1   : > { %p7335_p6 = pnand %p7333_p4, %p7639_p7  ;;  %p7342_p11 = por %p7341_p10, %p7340_p9 }
  0xa3   : > { %p7336_p8 = pneg %p7335_p6 }
  0xa5   : > { %p7343_p12 = pnand %p7342_p11, %p7336_p8 }
  0xa7   : > { %7346 = shalt.err (!%p7343_p12)
}
  0xa8   : > { %6728 = dma.hbm_to_vmem [thread:$0]  (!%p7623_p5), %s9340_s3, 4096, %s463_s29, [#allocation6], %s9363_s19, %s9363_s19, %s9364_s22  }
  0xa9   : > { %s7347_s0 = scalar_lea.hbm %s9342_s5, 9216 }
  0xaa   : > { %p7348_p2 = scmp.ne.s32.totalorder %s9342_s5, %s7347_s0  ;;  %p7354_p0 = scmp.lt.u32.totalorder %s7347_s0, %s9342_s5 }
  0xac   : > { %p7350_p3 = pnand %p7348_p2, %p7639_p7 }
  0xae   : > { %p7351_p13 = pneg %p7350_p3 }
  0xb0   : > { %p7356_p1 = pnand %p7354_p0, %p7351_p13 }
  0xb2   : > { %7359 = shalt.err (!%p7356_p1)
}
  0xb3   : > { %s7360_s29 = scalar_lea.vmem %s7752_s21, 9216  ;;  %p7368_p9 = scmp.lt.s32.totalorder %s7752_s21, %s7752_s21 }
  0xb4   : > { %p7361_p4 = scmp.ne.s32.totalorder %s7752_s21, %s7360_s29  ;;  %p7369_p10 = scmp.lt.s32.totalorder %s7360_s29, %s7360_s29 }
  0xb6   : > { %p7363_p6 = pnand %p7361_p4, %p7639_p7  ;;  %p7370_p11 = por %p7369_p10, %p7368_p9 }
  0xb8   : > { %p7364_p8 = pneg %p7363_p6 }
  0xba   : > { %p7371_p12 = pnand %p7370_p11, %p7364_p8 }
  0xbc   : > { %7374 = shalt.err (!%p7371_p12)
}
  0xbd   : > { %s9393_s4 = smov 8   ;;  %s9394_s26 = smov 128  }
  0xbe   : > { %6734 = dma.hbm_to_vmem [thread:$0]  (!%p7623_p5), %s9342_s5, 9216, %s7752_s21, [#allocation9], %s9394_s26, %s9394_s26, %s9393_s4  }
  0xbf   : > { %s7502_s18 = smov [#allocation13]   ;;  %s7503_s17 = smov [#allocation16]  }
  0xc0   : > { %s521_s0 = sshll.u32 %s7502_s18, 4  ;;  %s553_s20 = sshll.u32 %s7503_s17, 4  ;;  %s522_s0 = int_to_ptr.vmem [resolvable:$true] %s521_s0  ;;  %s7801_s20 = int_to_ptr.vmem [resolvable:$true] %s553_s20 }
  0xc1   : > { %s7375_s29 = scalar_lea.hbm %s9347_s10, 4096 }
  0xc2   : > { %p7376_p2 = scmp.ne.s32.totalorder %s9347_s10, %s7375_s29  ;;  %p7382_p0 = scmp.lt.u32.totalorder %s7375_s29, %s9347_s10 }
  0xc4   : > { %p7378_p3 = pnand %p7376_p2, %p7639_p7 }
  0xc6   : > { %p7379_p13 = pneg %p7378_p3 }
  0xc8   : > { %p7384_p1 = pnand %p7382_p0, %p7379_p13 }
  0xca   : > { %7387 = shalt.err (!%p7384_p1)
}
  0xcb   : > { %s7388_s23 = scalar_lea.vmem %s522_s0, 4096  ;;  %p7396_p9 = scmp.lt.s32.totalorder %s522_s0, %s522_s0 }
  0xcc   : > { %p7389_p4 = scmp.ne.s32.totalorder %s522_s0, %s7388_s23  ;;  %p7397_p10 = scmp.lt.s32.totalorder %s7388_s23, %s7388_s23 }
  0xce   : > { %p7391_p6 = pnand %p7389_p4, %p7639_p7  ;;  %p7398_p11 = por %p7397_p10, %p7396_p9 }
  0xd0   : > { %p7392_p8 = pneg %p7391_p6 }
  0xd2   : > { %p7399_p12 = pnand %p7398_p11, %p7392_p8 }
  0xd4   : > { %7402 = shalt.err (!%p7399_p12)
}
  0xd5   : > { %s9395_s19 = smov 16   ;;  %s9396_s22 = smov 256  }
  0xd6   : > { %6740 = dma.hbm_to_vmem [thread:$0]  (!%p7623_p5), %s9347_s10, 4096, %s522_s0, [#allocation12], %s9396_s22, %s9396_s22, %s9395_s19  }
  0xd7   : > { %s7403_s29 = scalar_lea.hbm %s9351_s14, 4096 }
  0xd8   : > { %p7404_p2 = scmp.ne.s32.totalorder %s9351_s14, %s7403_s29  ;;  %p7410_p0 = scmp.lt.u32.totalorder %s7403_s29, %s9351_s14 }
  0xda   : > { %p7406_p3 = pnand %p7404_p2, %p7639_p7 }
  0xdc   : > { %p7407_p13 = pneg %p7406_p3 }
  0xde   : > { %p7412_p1 = pnand %p7410_p0, %p7407_p13 }
  0xe0   : > { %7415 = shalt.err (!%p7412_p1)
}
  0xe1   : > { %s7416_s0 = scalar_lea.vmem %s7801_s20, 4096  ;;  %p7424_p9 = scmp.lt.s32.totalorder %s7801_s20, %s7801_s20 }
  0xe2   : > { %p7417_p4 = scmp.ne.s32.totalorder %s7801_s20, %s7416_s0  ;;  %p7425_p10 = scmp.lt.s32.totalorder %s7416_s0, %s7416_s0 }
  0xe4   : > { %p7419_p6 = pnand %p7417_p4, %p7639_p7  ;;  %p7426_p11 = por %p7425_p10, %p7424_p9 }
  0xe6   : > { %p7420_p8 = pneg %p7419_p6 }
  0xe8   : > { %p7427_p12 = pnand %p7426_p11, %p7420_p8 }
  0xea   : > { %7430 = shalt.err (!%p7427_p12)
}
  0xeb   : > { %6746 = dma.hbm_to_vmem [thread:$0]  (!%p7623_p5), %s9351_s14, 4096, %s7801_s20, [#allocation15], %s9394_s26, %s9394_s26, %s9393_s4  }
  0xec   : > { %s7504_s22 = smov [#allocation17]   ;;  %s7431_s25 = scalar_lea.hbm %s9352_s15, 4096 }
  0xed   : > { %s566_s18 = sshll.u32 %s7504_s22, 4  ;;  %p7432_p2 = scmp.ne.s32.totalorder %s9352_s15, %s7431_s25  ;;  %s567_s18 = int_to_ptr.vmem [resolvable:$true] %s566_s18 }
  0xee   : > { %p7438_p0 = scmp.lt.u32.totalorder %s7431_s25, %s9352_s15 }
  0xef   : > { %p7434_p3 = pnand %p7432_p2, %p7639_p7 }
  0xf1   : > { %p7435_p13 = pneg %p7434_p3 }
  0xf3   : > { %p7440_p1 = pnand %p7438_p0, %p7435_p13 }
  0xf5   : > { %7443 = shalt.err (!%p7440_p1)
}
  0xf6   : > { %s7444_s20 = scalar_lea.vmem %s567_s18, 4096  ;;  %p7452_p9 = scmp.lt.s32.totalorder %s567_s18, %s567_s18 }
  0xf7   : > { %p7445_p4 = scmp.ne.s32.totalorder %s567_s18, %s7444_s20  ;;  %p7453_p10 = scmp.lt.s32.totalorder %s7444_s20, %s7444_s20 }
  0xf9   : > { %p7447_p6 = pnand %p7445_p4, %p7639_p7  ;;  %p7454_p11 = por %p7453_p10, %p7452_p9 }
  0xfb   : > { %p7448_p8 = pneg %p7447_p6 }
  0xfd   : > { %p7455_p12 = pnand %p7454_p11, %p7448_p8 }
  0xff   : > { %7458 = shalt.err (!%p7455_p12)
}
 0x100   : > { %6749 = dma.hbm_to_vmem [thread:$0]  (!%p7623_p5), %s9352_s15, 4096, %s567_s18, [#allocation18], %s9394_s26, %s9394_s26, %s9393_s4  }
 0x101   : > { %p9397_p2 = scmp.ne.s32.totalorder %s9387_s28, 0 }
 0x103   : > { %593 = sbr.rel (%p9397_p2) target bundleno = 2937 (0xb79), region = 88 }
 0x10a   : > { %p9398_p7 = scmp.eq.s32.totalorder %s7606_s27, 0 }
 0x10c   : > { %7464 = dma.done.wait (%p9398_p7), [#allocation4], 8192   ;;  %p9399_p3 = pmov %p9398_p7 }
 0x10e   : > { %7466 = vsyncadd (%p9399_p3), [#allocation4], 4294959104  ;;  %p9400_p13 = pmov %p9399_p3 }
 0x10f   : > { %p9401_p0 = pmov %p9399_p3 }
 0x110   : > { %7468 = dma.done.wait (%p9400_p13), [#allocation6], 4128  }
 0x111   : > { %7470 = vsyncadd (%p9401_p0), [#allocation6], 4294963168  ;;  %p9402_p1 = pmov %p9401_p0 }
 0x112   : > { %p9403_p5 = pmov %p9401_p0 }
 0x113   : > { %7472 = dma.done.wait (%p9402_p1), [#allocation9], 9248  }
 0x114   : > { %7474 = vsyncadd (%p9403_p5), [#allocation9], 4294958048  ;;  %p9404_p4 = pmov %p9401_p0 }
 0x115   : > { %p9405_p6 = pmov %p9401_p0 }
 0x116   : > { %7476 = dma.done.wait (%p9404_p4), [#allocation12], 6144  }
 0x117   : > { %7478 = vsyncadd (%p9405_p6), [#allocation12], 4294961152  ;;  %p9406_p8 = pmov %p9401_p0 }
 0x118   : > { %p9407_p9 = pmov %p9401_p0 }
 0x119   : > { %7480 = dma.done.wait (%p9406_p8), [#allocation15], 8192  }
 0x11a   : > { %7482 = vsyncadd (%p9407_p9), [#allocation15], 4294959104  ;;  %p9408_p10 = pmov %p9401_p0 }
 0x11b   : > { %p9409_p11 = pmov %p9401_p0 }
 0x11c   : > { %7484 = dma.done.wait (%p9408_p10), [#allocation18], 4096  }
 0x11d   : > { %7486 = vsyncadd (%p9409_p11), [#allocation18], 4294963200  ;;  %v708_v0 = vld [vmem:[#allocation3 + $0x8] sm:$0xff]  ;;  %v710_v1 = vld [vmem:[#allocation3 + $0x18] sm:$0xff]  ;;  %p681_p12 = scmp.lt.s32.totalorder %s7606_s27, 1  ;;  %s9410_s4 = sld [smem:[#allocation38_spill]] }
 0x11e   : > { %v707_v2 = vld [vmem:[#allocation3] sm:$0xff]  ;;  %v6191_v3 = vpack.c.bf16 %v710_v1, %v708_v0  ;;  %v709_v4 = vld [vmem:[#allocation3 + $0x10] sm:$0xff]  ;;  %v712_v5 = vld [vmem:[#allocation3 + $0x28] sm:$0xff]  ;;  %vm1173_vm0 = vcmask 261120   ;;  %s7506_s19 = smov 64   ;;  %s7507_s22 = smov 32  }
 0x11f   : > { %v714_v6 = vld [vmem:[#allocation3 + $0x38] sm:$0xff]  ;;  %v6193_v7 = vpack.c.bf16 %v709_v4, %v707_v2  ;;  %v711_v9 = vld [vmem:[#allocation3 + $0x20] sm:$0xff]  ;;  %v713_v10 = vld [vmem:[#allocation3 + $0x30] sm:$0xff]  ;;  %s9442_s27 = smov (!%p681_p12, %s7606_s27), 1  ;;  %s7508_s18 = smov 96   ;;  %vm1319_vm2 = vcmask 523264  }
 0x120   : > { %v6195_v8 = vpack.c.bf16 %v714_v6, %v712_v5  ;;  %v716_v11 = vld [vmem:[#allocation3 + $0x48] sm:$0xff]  ;;  %6192 = vmatprep.subr.bf16.mxu0 %v6191_v3  ;;  %v718_v12 = vld [vmem:[#allocation3 + $0x58] sm:$0xff]  ;;  %v6197_v13 = vpack.c.bf16 %v713_v10, %v711_v9  ;;  %v715_v15 = vld [vmem:[#allocation3 + $0x40] sm:$0xff]  ;;  %s5285_s24 = sshll.u32 %s9442_s27, 7  ;;  %vm2003_vm3 = vcmask 1048064   ;;  %s9438_s0 = sld [smem:[#allocation42_spill]] }
 0x121   : > { %6194 = vmatpush1.bf16.msra.mxu0 %v6193_v7  ;;  %v6199_v14 = vpack.c.bf16 %v718_v12, %v716_v11  ;;  %v717_v16 = vld [vmem:[#allocation3 + $0x50] sm:$0xff]  ;;  %v720_v17 = vld [vmem:[#allocation3 + $0x68] sm:$0xff]  ;;  %v722_v18 = vld [vmem:[#allocation3 + $0x78] sm:$0xff]  ;;  %s5286_s2 = sshll.u32 %s9442_s27, 8  ;;  %s9439_s29 = sld [smem:[#allocation43_spill]] }
 0x122   : > { %6196 = vmatprep.subr.bf16.mxu0 %v6195_v8  ;;  %v6201_v19 = vpack.c.bf16 %v717_v16, %v715_v15  ;;  %v6203_v20 = vpack.c.bf16 %v722_v18, %v720_v17  ;;  %v719_v21 = vld [vmem:[#allocation3 + $0x60] sm:$0xff]  ;;  %v721_v22 = vld [vmem:[#allocation3 + $0x70] sm:$0xff]  ;;  %v724_v23 = vld [vmem:[#allocation3 + $0x88] sm:$0xff] }
 0x123   : > { %v726_v24 = vld [vmem:[#allocation3 + $0x98] sm:$0xff]  ;;  %v6205_v25 = vpack.c.bf16 %v721_v22, %v719_v21  ;;  %v723_v27 = vld [vmem:[#allocation3 + $0x80] sm:$0xff]  ;;  %v725_v28 = vld [vmem:[#allocation3 + $0x90] sm:$0xff]  ;;  %s7905_s26 = scalar_lea.vmem %s9410_s4, %s5285_s24 }
 0x124   : > { %v6207_v26 = vpack.c.bf16 %v726_v24, %v724_v23  ;;  %v728_v29 = vld [vmem:[#allocation3 + $0xa8] sm:$0xff]  ;;  %v730_v30 = vld [vmem:[#allocation3 + $0xb8] sm:$0xff]  ;;  %v6209_v31 = vpack.c.bf16 %v725_v28, %v723_v27  ;;  %v727_v33 = vld [vmem:[#allocation3 + $0xa0] sm:$0xff] }
 0x125   : > { %6198 = vmatpush1.bf16.msra.mxu0 %v6197_v13  ;;  %v6211_v32 = vpack.c.bf16 %v730_v30, %v728_v29  ;;  %v729_v34 = vld [vmem:[#allocation3 + $0xb0] sm:$0xff]  ;;  %v732_v35 = vld [vmem:[#allocation3 + $0xc8] sm:$0xff]  ;;  %v734_v36 = vld [vmem:[#allocation3 + $0xd8] sm:$0xff] }
 0x126   : > { %6200 = vmatprep.subr.bf16.mxu0 %v6199_v14  ;;  %v6213_v37 = vpack.c.bf16 %v729_v34, %v727_v33  ;;  %v6215_v38 = vpack.c.bf16 %v734_v36, %v732_v35  ;;  %v731_v39 = vld [vmem:[#allocation3 + $0xc0] sm:$0xff]  ;;  %v733_v40 = vld [vmem:[#allocation3 + $0xd0] sm:$0xff]  ;;  %v692_v41 = vld [vmem:[%s7905_s26 + $0x8] sm:$0xff] }
 0x127   : > { %v736_v42 = vld [vmem:[#allocation3 + $0xe8] sm:$0xff]  ;;  %v738_v43 = vld [vmem:[#allocation3 + $0xf8] sm:$0xff]  ;;  %847 = vmatprep.mubr.f32.mxu0 %v692_v41  ;;  %v6217_v44 = vpack.c.bf16 %v733_v40, %v731_v39  ;;  %v735_v46 = vld [vmem:[#allocation3 + $0xe0] sm:$0xff]  ;;  %s9165_s13 = scalar_lea.vmem %s9439_s29, %s5286_s2 }
 0x128   : > { %v6219_v45 = vpack.c.bf16 %v738_v43, %v736_v42  ;;  %v737_v47 = vld [vmem:[#allocation3 + $0xf0] sm:$0xff]  ;;  %v740_v48 = vld [vmem:[#allocation3 + $0x108] sm:$0xff]  ;;  %v742_v49 = vld [vmem:[#allocation3 + $0x118] sm:$0xff] }
 0x129   : > { %6202 = vmatpush1.bf16.msra.mxu0 %v6201_v19  ;;  %v6221_v50 = vpack.c.bf16 %v737_v47, %v735_v46  ;;  %v6223_v51 = vpack.c.bf16 %v742_v49, %v740_v48  ;;  %v739_v52 = vld [vmem:[#allocation3 + $0x100] sm:$0xff]  ;;  %v741_v53 = vld [vmem:[#allocation3 + $0x110] sm:$0xff]  ;;  %v744_v54 = vld [vmem:[#allocation3 + $0x128] sm:$0xff] }
 0x12a   : > { %6204 = vmatprep.subr.bf16.mxu0 %v6203_v20  ;;  %v746_v55 = vld [vmem:[#allocation3 + $0x138] sm:$0xff]  ;;  %v6225_v56 = vpack.c.bf16 %v741_v53, %v739_v52  ;;  %v743_v58 = vld [vmem:[#allocation3 + $0x120] sm:$0xff]  ;;  %v745_v59 = vld [vmem:[#allocation3 + $0x130] sm:$0xff] }
 0x12b   : > { %v6227_v57 = vpack.c.bf16 %v746_v55, %v744_v54  ;;  %v748_v60 = vld [vmem:[#allocation3 + $0x148] sm:$0xff]  ;;  %v750_v61 = vld [vmem:[#allocation3 + $0x158] sm:$0xff]  ;;  %v6229_v62 = vpack.c.bf16 %v745_v59, %v743_v58  ;;  %v747_v0 = vld [vmem:[#allocation3 + $0x140] sm:$0xff] }
 0x12c   : > { %v6231_v63 = vpack.c.bf16 %v750_v61, %v748_v60  ;;  %v749_v1 = vld [vmem:[#allocation3 + $0x150] sm:$0xff]  ;;  %v752_v2 = vld [vmem:[#allocation3 + $0x168] sm:$0xff]  ;;  %v754_v3 = vld [vmem:[#allocation3 + $0x178] sm:$0xff] }
 0x12d   : > { %6206 = vmatpush1.bf16.msra.mxu0 %v6205_v25  ;;  %v6233_v4 = vpack.c.bf16 %v749_v1, %v747_v0  ;;  %v6235_v5 = vpack.c.bf16 %v754_v3, %v752_v2  ;;  %v751_v6 = vld [vmem:[#allocation3 + $0x160] sm:$0xff]  ;;  %v753_v7 = vld [vmem:[#allocation3 + $0x170] sm:$0xff]  ;;  %v756_v8 = vld [vmem:[#allocation3 + $0x188] sm:$0xff] }
 0x12e   : > { %6208 = vmatprep.subr.bf16.mxu0 %v6207_v26  ;;  %v758_v9 = vld [vmem:[#allocation3 + $0x198] sm:$0xff]  ;;  %v6237_v10 = vpack.c.bf16 %v753_v7, %v751_v6  ;;  %v755_v12 = vld [vmem:[#allocation3 + $0x180] sm:$0xff]  ;;  %v757_v13 = vld [vmem:[#allocation3 + $0x190] sm:$0xff] }
 0x12f   : > { %v6239_v11 = vpack.c.bf16 %v758_v9, %v756_v8  ;;  %v760_v14 = vld [vmem:[#allocation3 + $0x1a8] sm:$0xff]  ;;  %v762_v15 = vld [vmem:[#allocation3 + $0x1b8] sm:$0xff]  ;;  %v6241_v16 = vpack.c.bf16 %v757_v13, %v755_v12  ;;  %v759_v18 = vld [vmem:[#allocation3 + $0x1a0] sm:$0xff] }
 0x130   : > { %v6243_v17 = vpack.c.bf16 %v762_v15, %v760_v14  ;;  %v761_v19 = vld [vmem:[#allocation3 + $0x1b0] sm:$0xff]  ;;  %v764_v20 = vld [vmem:[#allocation3 + $0x1c8] sm:$0xff]  ;;  %v766_v21 = vld [vmem:[#allocation3 + $0x1d8] sm:$0xff] }
 0x131   : > { %6210 = vmatpush1.bf16.msra.mxu0 %v6209_v31  ;;  %v6245_v22 = vpack.c.bf16 %v761_v19, %v759_v18  ;;  %v6247_v23 = vpack.c.bf16 %v766_v21, %v764_v20  ;;  %v763_v24 = vld [vmem:[#allocation3 + $0x1c0] sm:$0xff]  ;;  %v765_v25 = vld [vmem:[#allocation3 + $0x1d0] sm:$0xff]  ;;  %v768_v26 = vld [vmem:[#allocation3 + $0x1e8] sm:$0xff] }
 0x132   : > { %6212 = vmatprep.subr.bf16.mxu0 %v6211_v32  ;;  %v770_v27 = vld [vmem:[#allocation3 + $0x1f8] sm:$0xff]  ;;  %v6249_v28 = vpack.c.bf16 %v765_v25, %v763_v24  ;;  %v767_v30 = vld [vmem:[#allocation3 + $0x1e0] sm:$0xff]  ;;  %v769_v31 = vld [vmem:[#allocation3 + $0x1f0] sm:$0xff] }
 0x133   : > { %v6251_v29 = vpack.c.bf16 %v770_v27, %v768_v26  ;;  %v6253_v32 = vpack.c.bf16 %v769_v31, %v767_v30  ;;  %v691_v33 = vld [vmem:[%s7905_s26] sm:$0xff]  ;;  %v694_v34 = vld [vmem:[%s7905_s26 + $0x18] sm:$0xff]  ;;  %v693_v35 = vld [vmem:[%s7905_s26 + $0x10] sm:$0xff] }
 0x134   : > { %v696_v36 = vld [vmem:[%s7905_s26 + $0x28] sm:$0xff]  ;;  %v697_v39 = vld [vmem:[%s7905_s26 + $0x30] sm:$0xff]  ;;  %v699_v41 = vld [vmem:[%s7905_s26 + $0x40] sm:$0xff] }
 0x135   : > { %6214 = vmatpush1.bf16.msra.mxu0 %v6213_v37  ;;  %v695_v37 = vld [vmem:[%s7905_s26 + $0x20] sm:$0xff]  ;;  %v700_v40 = vld [vmem:[%s7905_s26 + $0x48] sm:$0xff]  ;;  %v702_v42 = vld [vmem:[%s7905_s26 + $0x58] sm:$0xff] }
 0x136   : > { %6216 = vmatprep.subr.bf16.mxu0 %v6215_v38  ;;  %v698_v38 = vld [vmem:[%s7905_s26 + $0x38] sm:$0xff]  ;;  %v701_v43 = vld [vmem:[%s7905_s26 + $0x50] sm:$0xff]  ;;  %vm8130_vm1 = vmpackc.low %vm1173_vm0, %vm1173_vm0 }
 0x137   : > { %v706_v46 = vld [vmem:[%s7905_s26 + $0x78] sm:$0xff]  ;;  %v705_v47 = vld [vmem:[%s7905_s26 + $0x70] sm:$0xff] }
 0x138   : > { %v993_v48 = vld [vmem:[#allocation7 + $0x8] sm:$0xff]  ;;  %v995_v49 = vld [vmem:[#allocation7 + $0x18] sm:$0xff]  ;;  %v994_v52 = vld [vmem:[#allocation7 + $0x10] sm:$0xff] }
 0x139   : > { %6218 = vmatpush1.bf16.msra.mxu0 %v6217_v44  ;;  %v704_v44 = vld [vmem:[%s7905_s26 + $0x68] sm:$0xff]  ;;  %v999_v55 = vld [vmem:[#allocation7 + $0x38] sm:$0xff]  ;;  %v998_v58 = vld [vmem:[#allocation7 + $0x30] sm:$0xff] }
 0x13a   : > { %6220 = vmatprep.subr.bf16.mxu0 %v6219_v45  ;;  %v703_v45 = vld [vmem:[%s7905_s26 + $0x60] sm:$0xff]  ;;  %v997_v54 = vld [vmem:[#allocation7 + $0x28] sm:$0xff]  ;;  %v1002_v0 = vld [vmem:[#allocation7 + $0x50] sm:$0xff] }
 0x13b   : > { %v1001_v60 = vld [vmem:[#allocation7 + $0x48] sm:$0xff]  ;;  %v1003_v61 = vld [vmem:[#allocation7 + $0x58] sm:$0xff]  ;;  %v1006_v6 = vld [vmem:[#allocation7 + $0x70] sm:$0xff] }
 0x13c   : > { %v1005_v2 = vld [vmem:[#allocation7 + $0x68] sm:$0xff]  ;;  %v1007_v3 = vld [vmem:[#allocation7 + $0x78] sm:$0xff]  ;;  %v1010_v12 = vld [vmem:[#allocation7 + $0x90] sm:$0xff] }
 0x13d   : > { %6222 = vmatpush1.bf16.msra.mxu0 %v6221_v50  ;;  %v6255_v50 = vpack.c.bf16 %v995_v49, %v993_v48  ;;  %v1009_v8 = vld [vmem:[#allocation7 + $0x88] sm:$0xff]  ;;  %v1011_v9 = vld [vmem:[#allocation7 + $0x98] sm:$0xff]  ;;  %v1014_v18 = vld [vmem:[#allocation7 + $0xb0] sm:$0xff] }
 0x13e   : > { %6224 = vmatprep.subr.bf16.mxu0 %v6223_v51  ;;  %v992_v51 = vld [vmem:[#allocation7] sm:$0xff]  ;;  %v1013_v14 = vld [vmem:[#allocation7 + $0xa8] sm:$0xff]  ;;  %v1015_v15 = vld [vmem:[#allocation7 + $0xb8] sm:$0xff] }
 0x13f   : > { %v6257_v53 = vpack.c.bf16 %v994_v52, %v992_v51  ;;  %6256 = vmatprep.subr.bf16.mxu1 %v6255_v50  ;;  %v1017_v20 = vld [vmem:[#allocation7 + $0xc8] sm:$0xff]  ;;  %v1019_v21 = vld [vmem:[#allocation7 + $0xd8] sm:$0xff]  ;;  %v1018_v24 = vld [vmem:[#allocation7 + $0xd0] sm:$0xff] }
 0x140   : > { %v1021_v26 = vld [vmem:[#allocation7 + $0xe8] sm:$0xff]  ;;  %v1023_v27 = vld [vmem:[#allocation7 + $0xf8] sm:$0xff]  ;;  %v1022_v30 = vld [vmem:[#allocation7 + $0xf0] sm:$0xff] }
 0x141   : > { %6226 = vmatpush1.bf16.msra.mxu0 %v6225_v56  ;;  %6258 = vmatpush1.bf16.msra.mxu1 %v6257_v53  ;;  %v6259_v56 = vpack.c.bf16 %v999_v55, %v997_v54 }
 0x142   : > { %6228 = vmatprep.subr.bf16.mxu0 %v6227_v57  ;;  %v996_v57 = vld [vmem:[#allocation7 + $0x20] sm:$0xff] }
 0x143   : > { %v6261_v59 = vpack.c.bf16 %v998_v58, %v996_v57  ;;  %6260 = vmatprep.subr.bf16.mxu1 %v6259_v56 }
 0x145   : > { %6230 = vmatpush1.bf16.msra.mxu0 %v6229_v62  ;;  %6262 = vmatpush1.bf16.msra.mxu1 %v6261_v59  ;;  %v6263_v62 = vpack.c.bf16 %v1003_v61, %v1001_v60 }
 0x146   : > { %6232 = vmatprep.subr.bf16.mxu0 %v6231_v63  ;;  %v1000_v63 = vld [vmem:[#allocation7 + $0x40] sm:$0xff] }
 0x147   : > { %v6265_v1 = vpack.c.bf16 %v1002_v0, %v1000_v63  ;;  %6264 = vmatprep.subr.bf16.mxu1 %v6263_v62 }
 0x149   : > { %6234 = vmatpush1.bf16.msra.mxu0 %v6233_v4  ;;  %6266 = vmatpush1.bf16.msra.mxu1 %v6265_v1  ;;  %v6267_v4 = vpack.c.bf16 %v1007_v3, %v1005_v2 }
 0x14a   : > { %6236 = vmatprep.subr.bf16.mxu0 %v6235_v5  ;;  %v1004_v5 = vld [vmem:[#allocation7 + $0x60] sm:$0xff] }
 0x14b   : > { %v6269_v7 = vpack.c.bf16 %v1006_v6, %v1004_v5  ;;  %6268 = vmatprep.subr.bf16.mxu1 %v6267_v4 }
 0x14d   : > { %6238 = vmatpush1.bf16.msra.mxu0 %v6237_v10  ;;  %6270 = vmatpush1.bf16.msra.mxu1 %v6269_v7  ;;  %v6271_v10 = vpack.c.bf16 %v1011_v9, %v1009_v8 }
 0x14e   : > { %6240 = vmatprep.subr.bf16.mxu0 %v6239_v11  ;;  %v1008_v11 = vld [vmem:[#allocation7 + $0x80] sm:$0xff] }
 0x14f   : > { %v6273_v13 = vpack.c.bf16 %v1010_v12, %v1008_v11  ;;  %6272 = vmatprep.subr.bf16.mxu1 %v6271_v10 }
 0x151   : > { %6242 = vmatpush1.bf16.msra.mxu0 %v6241_v16  ;;  %6274 = vmatpush1.bf16.msra.mxu1 %v6273_v13  ;;  %v6275_v16 = vpack.c.bf16 %v1015_v15, %v1013_v14 }
 0x152   : > { %6244 = vmatprep.subr.bf16.mxu0 %v6243_v17  ;;  %v1012_v17 = vld [vmem:[#allocation7 + $0xa0] sm:$0xff] }
 0x153   : > { %v6277_v19 = vpack.c.bf16 %v1014_v18, %v1012_v17  ;;  %6276 = vmatprep.subr.bf16.mxu1 %v6275_v16 }
 0x155   : > { %6246 = vmatpush1.bf16.msra.mxu0 %v6245_v22  ;;  %6278 = vmatpush1.bf16.msra.mxu1 %v6277_v19  ;;  %v6279_v22 = vpack.c.bf16 %v1019_v21, %v1017_v20 }
 0x156   : > { %6248 = vmatprep.subr.bf16.mxu0 %v6247_v23  ;;  %v1016_v23 = vld [vmem:[#allocation7 + $0xc0] sm:$0xff] }
 0x157   : > { %v6281_v25 = vpack.c.bf16 %v1018_v24, %v1016_v23  ;;  %6280 = vmatprep.subr.bf16.mxu1 %v6279_v22 }
 0x159   : > { %6250 = vmatpush1.bf16.msra.mxu0 %v6249_v28  ;;  %6282 = vmatpush1.bf16.msra.mxu1 %v6281_v25  ;;  %v6283_v28 = vpack.c.bf16 %v1023_v27, %v1021_v26 }
 0x15a   : > { %6252 = vmatprep.subr.bf16.mxu0 %v6251_v29  ;;  %v1020_v29 = vld [vmem:[#allocation7 + $0xe0] sm:$0xff] }
 0x15b   : > { %v6285_v31 = vpack.c.bf16 %v1022_v30, %v1020_v29  ;;  %6284 = vmatprep.subr.bf16.mxu1 %v6283_v28 }
 0x15d   : > { %6254 = vmatpush1.bf16.msra.mxu0 %v6253_v32  ;;  %6286 = vmatpush1.bf16.msra.mxu1 %v6285_v31  ;;  %v9366_v32 = vmov 0.0  }
 0x15e   : > { %1100 = vmatprep.mubr.f32.mxu1 %v9366_v32 }
 0x160   : > { %848 = vmatmul.mubr.f32.vlgmr.msra.gmra.mrb[0].mxu0 %v691_v33  ;;  %v773_v33 = vlaneseq }
 0x161   : > { %853 = vmatprep.mubr.f32.mxu0 %v694_v34 }
 0x162   : > { %v774_v34 = vshrl.u32 %v773_v33, 7 }
 0x164   : > { %854 = vmatmul.mubr.f32.gmra.mrb[2].mxu0 %v693_v35  ;;  %v7924_v35 = vsub.s32 0, %v774_v34 }
 0x165   : > { %859 = vmatprep.mubr.f32.mxu0 %v696_v36  ;;  %v771_v36 = vld [vmem:[#allocation5] sm:$0x3] }
 0x166   : > { %9411 = vst [vmem:[#allocation26_spill] sm:$0xff] %v7924_v35 }
 0x168   : > { %860 = vmatmul.mubr.f32.gmra.mrb[4].mxu0 %v695_v37  ;;  %v7926_v37 = vsub.s32 1, %v774_v34 }
 0x169   : > { %865 = vmatprep.mubr.f32.mxu0 %v698_v38  ;;  %v7929_v38 = vrot.slane %v771_v36, %v7924_v35 }
 0x16a   : > { %9412 = vst [vmem:[#allocation27_spill] sm:$0xff] %v7926_v37 }
 0x16c   : > { %866 = vmatmul.mubr.f32.gmra.mrb[6].mxu0 %v697_v39  ;;  %v7932_v39 = vrot.slane %v771_v36, %v7926_v37 }
 0x16d   : > { %871 = vmatprep.mubr.f32.mxu0 %v700_v40 }
 0x170   : > { %872 = vmatmul.mubr.f32.gmra.mrb[8].mxu0 %v699_v41 }
 0x171   : > { %877 = vmatprep.mubr.f32.mxu0 %v702_v42 }
 0x174   : > { %878 = vmatmul.mubr.f32.gmra.mrb[10].mxu0 %v701_v43 }
 0x175   : > { %883 = vmatprep.mubr.f32.mxu0 %v704_v44 }
 0x178   : > { %884 = vmatmul.mubr.f32.gmra.mrb[12].mxu0 %v703_v45 }
 0x179   : > { %889 = vmatprep.mubr.f32.mxu0 %v706_v46 }
 0x17c   : > { %890 = vmatmul.mubr.f32.gmra.mrb[14].mxu0 %v705_v47 }
 0x233   : > { %v849_v40 = vpop.f32.mrb[0].mxu0 }
 0x234   : > { %v7935_v41 = vadd.f32 %v849_v40, %v7929_v38  ;;  %v851_v42 = vpop.f32.mrb[1].mxu0 }
 0x235   : > { %v7938_v43 = vadd.f32 %v851_v42, %v7932_v39 }
 0x236   : > { %v896_v44 = vsub.f32 0.0, %v7935_v41 }
 0x237   : > { %v897_v45 = vsub.f32 0.0, %v7938_v43  ;;  %v855_v46 = vpop.f32.mrb[2].mxu0 }
 0x238   : > { %v912_v47 = vmul.f32 1.442695, %v896_v44  ;;  %v7943_v48 = vadd.f32 %v855_v46, %v7929_v38  ;;  %v857_v49 = vpop.f32.mrb[3].mxu0 }
 0x239   : > { %v914_v50 = vmul.f32 1.442695, %v897_v45  ;;  %v7946_v51 = vadd.f32 %v857_v49, %v7932_v39 }
 0x23a   : > { %6859 = vpow2.f32 %v912_v47  ;;  %v898_v52 = vsub.f32 0.0, %v7943_v48 }
 0x23b   : > { %6861 = vpow2.f32 %v914_v50  ;;  %v899_v53 = vsub.f32 0.0, %v7946_v51  ;;  %v861_v54 = vpop.f32.mrb[4].mxu0 }
 0x23c   : > { %v916_v55 = vmul.f32 1.442695, %v898_v52  ;;  %v7951_v56 = vadd.f32 %v861_v54, %v7929_v38  ;;  %v863_v57 = vpop.f32.mrb[5].mxu0 }
 0x23d   : > { %v918_v58 = vmul.f32 1.442695, %v899_v53  ;;  %v7954_v59 = vadd.f32 %v863_v57, %v7932_v39 }
 0x23e   : > { %6863 = vpow2.f32 %v916_v55  ;;  %v900_v60 = vsub.f32 0.0, %v7951_v56 }
 0x23f   : > { %6865 = vpow2.f32 %v918_v58  ;;  %v901_v61 = vsub.f32 0.0, %v7954_v59  ;;  %v867_v62 = vpop.f32.mrb[6].mxu0 }
 0x240   : > { %v920_v63 = vmul.f32 1.442695, %v900_v60  ;;  %v7959_v0 = vadd.f32 %v867_v62, %v7929_v38  ;;  %v869_v1 = vpop.f32.mrb[7].mxu0 }
 0x241   : > { %v922_v2 = vmul.f32 1.442695, %v901_v61  ;;  %v7962_v3 = vadd.f32 %v869_v1, %v7932_v39 }
 0x242   : > { %6867 = vpow2.f32 %v920_v63  ;;  %v902_v4 = vsub.f32 0.0, %v7959_v0 }
 0x243   : > { %6869 = vpow2.f32 %v922_v2  ;;  %v903_v5 = vsub.f32 0.0, %v7962_v3  ;;  %v873_v6 = vpop.f32.mrb[8].mxu0 }
 0x244   : > { %v6860_v7 = vpop.eup %6859  ;;  %v924_v8 = vmul.f32 1.442695, %v902_v4  ;;  %v7967_v9 = vadd.f32 %v873_v6, %v7929_v38  ;;  %v875_v10 = vpop.f32.mrb[9].mxu0 }
 0x245   : > { %v6862_v11 = vpop.eup %6861  ;;  %v944_v12 = vadd.f32 1.0, %v6860_v7  ;;  %v926_v13 = vmul.f32 1.442695, %v903_v5  ;;  %v7970_v14 = vadd.f32 %v875_v10, %v7932_v39 }
 0x246   : > { %v945_v15 = vadd.f32 1.0, %v6862_v11  ;;  %6871 = vpow2.f32 %v924_v8  ;;  %v904_v16 = vsub.f32 0.0, %v7967_v9 }
 0x247   : > { %6873 = vrcp.f32 %v944_v12  ;;  %v905_v17 = vsub.f32 0.0, %v7970_v14  ;;  %v879_v18 = vpop.f32.mrb[10].mxu0 }
 0x248   : > { %v6864_v19 = vpop.eup %6863  ;;  %6875 = vrcp.f32 %v945_v15  ;;  %v928_v20 = vmul.f32 1.442695, %v904_v16  ;;  %v7975_v21 = vadd.f32 %v879_v18, %v7929_v38  ;;  %v881_v22 = vpop.f32.mrb[11].mxu0 }
 0x249   : > { %v6866_v23 = vpop.eup %6865  ;;  %v946_v24 = vadd.f32 1.0, %v6864_v19  ;;  %6877 = vpow2.f32 %v926_v13  ;;  %v930_v25 = vmul.f32 1.442695, %v905_v17  ;;  %v7978_v26 = vadd.f32 %v881_v22, %v7932_v39 }
 0x24a   : > { %v947_v27 = vadd.f32 1.0, %v6866_v23  ;;  %6879 = vpow2.f32 %v928_v20  ;;  %v906_v28 = vsub.f32 0.0, %v7975_v21 }
 0x24b   : > { %6881 = vrcp.f32 %v946_v24  ;;  %v907_v29 = vsub.f32 0.0, %v7978_v26  ;;  %v885_v30 = vpop.f32.mrb[12].mxu0 }
 0x24c   : > { %v6868_v31 = vpop.eup %6867  ;;  %6883 = vrcp.f32 %v947_v27  ;;  %v932_v33 = vmul.f32 1.442695, %v906_v28  ;;  %v7983_v34 = vadd.f32 %v885_v30, %v7929_v38  ;;  %v887_v36 = vpop.f32.mrb[13].mxu0 }
 0x24d   : > { %v6870_v40 = vpop.eup %6869  ;;  %v948_v42 = vadd.f32 1.0, %v6868_v31  ;;  %6885 = vpow2.f32 %v930_v25  ;;  %v934_v44 = vmul.f32 1.442695, %v907_v29  ;;  %v7986_v45 = vadd.f32 %v887_v36, %v7932_v39 }
 0x24e   : > { %v949_v46 = vadd.f32 1.0, %v6870_v40  ;;  %6887 = vpow2.f32 %v932_v33  ;;  %v908_v47 = vsub.f32 0.0, %v7983_v34 }
 0x24f   : > { %6889 = vrcp.f32 %v948_v42  ;;  %v909_v49 = vsub.f32 0.0, %v7986_v45  ;;  %v891_v50 = vpop.f32.mrb[14].mxu0 }
 0x250   : > { %v6872_v52 = vpop.eup %6871  ;;  %6891 = vrcp.f32 %v949_v46  ;;  %v936_v53 = vmul.f32 1.442695, %v908_v47  ;;  %v7991_v54 = vadd.f32 %v891_v50, %v7929_v38  ;;  %v893_v55 = vpop.f32.mrb[15].mxu0 }
 0x251   : > { %v6874_v57 = vpop.eup %6873  ;;  %v950_v58 = vadd.f32 1.0, %v6872_v52  ;;  %6893 = vpow2.f32 %v934_v44  ;;  %v938_v60 = vmul.f32 1.442695, %v909_v49  ;;  %v7994_v61 = vadd.f32 %v893_v55, %v7932_v39 }
 0x252   : > { %v6876_v62 = vpop.eup %6875  ;;  %6895 = vpow2.f32 %v936_v53  ;;  %v910_v63 = vsub.f32 0.0, %v7991_v54  ;;  %v961_v11 = vmul.f32 %v6874_v57, %v7935_v41 }
 0x253   : > { %v6878_v1 = vpop.eup %6877  ;;  %v7998_v2 = vmul.f32 %v6876_v62, %v7938_v43  ;;  %6897 = vrcp.f32 %v950_v58  ;;  %v911_v38 = vsub.f32 0.0, %v7994_v61 }
 0x254   : > { %v6880_v4 = vpop.eup %6879  ;;  %v951_v5 = vadd.f32 1.0, %v6878_v1  ;;  %6899 = vpow2.f32 %v938_v60  ;;  %v940_v6 = vmul.f32 1.442695, %v910_v63 }
 0x255   : > { %v6882_v7 = vpop.eup %6881  ;;  %v952_v8 = vadd.f32 1.0, %v6880_v4  ;;  %v942_v10 = vmul.f32 1.442695, %v911_v38  ;;  %1101 = vmatmul.mubr.f32.vlgmr.msra.gmra.mrb[0].mxu1 %v7998_v2 }
 0x256   : > { %v6884_v39 = vpop.eup %6883  ;;  %v965_v12 = vmul.f32 %v6882_v7, %v7943_v48  ;;  %6901 = vrcp.f32 %v951_v5  ;;  %1106 = vmatprep.mubr.f32.mxu1 %v9366_v32 }
 0x257   : > { %v6886_v43 = vpop.eup %6885  ;;  %v8006_v13 = vmul.f32 %v6884_v39, %v7946_v51  ;;  %6903 = vrcp.f32 %v952_v8 }
 0x258   : > { %v6888_v15 = vpop.eup %6887  ;;  %v8008_v16 = vpack.c.bf16 %v965_v12, %v961_v11  ;;  %v953_v17 = vadd.f32 1.0, %v6886_v43  ;;  %6905 = vpow2.f32 %v940_v6 }
 0x259   : > { %9413 = vst [vmem:[#allocation28_spill] sm:$0xff] %v8006_v13  ;;  %v6890_v18 = vpop.eup %6889  ;;  %v954_v19 = vadd.f32 1.0, %v6888_v15  ;;  %6907 = vpow2.f32 %v942_v10  ;;  %1107 = vmatmul.mubr.f32.gmra.mrb[2].mxu1 %v8006_v13 }
 0x25a   : > { %v6892_v41 = vpop.eup %6891  ;;  %6909 = vrcp.f32 %v953_v17  ;;  %1112 = vmatprep.mubr.f32.mxu1 %v9366_v32  ;;  %v969_v25 = vmul.f32 %v6890_v18, %v7951_v56 }
 0x25b   : > { %v6894_v48 = vpop.eup %6893  ;;  %v8013_v20 = vmul.f32 %v6892_v41, %v7954_v59  ;;  %6911 = vrcp.f32 %v954_v19 }
 0x25c   : > { %v6896_v51 = vpop.eup %6895  ;;  %v955_v22 = vadd.f32 1.0, %v6894_v48 }
 0x25d   : > { %9414 = vst [vmem:[#allocation29_spill] sm:$0xff] %v8013_v20  ;;  %v6898_v23 = vpop.eup %6897  ;;  %1113 = vmatmul.mubr.f32.gmra.mrb[4].mxu1 %v8013_v20  ;;  %v956_v28 = vadd.f32 1.0, %v6896_v51 }
 0x25e   : > { %v6900_v24 = vpop.eup %6899  ;;  %v973_v27 = vmul.f32 %v6898_v23, %v7959_v0  ;;  %6913 = vrcp.f32 %v955_v22  ;;  %1118 = vmatprep.mubr.f32.mxu1 %v9366_v32 }
 0x25f   : > { %v957_v29 = vadd.f32 1.0, %v6900_v24 }
 0x260   : > { %v6902_v30 = vpop.eup %6901  ;;  %v8019_v31 = vpack.c.bf16 %v973_v27, %v969_v25 }
 0x261   : > { %v6904_v59 = vpop.eup %6903  ;;  %v8022_v33 = vmul.f32 %v6902_v30, %v7962_v3  ;;  %6915 = vrcp.f32 %v957_v29 }
 0x262   : > { %9415 = vst [vmem:[#allocation30_spill] sm:$0xff] %v8019_v31  ;;  %v6906_v36 = vpop.eup %6905  ;;  %6917 = vrcp.f32 %v956_v28  ;;  %v977_v47 = vmul.f32 %v6904_v59, %v7967_v9  ;;  %v3474_v31 = vld [vmem:[#allocation11 + $0x40] sm:$0xff] }
 0x263   : > { %9416 = vst [vmem:[#allocation31_spill] sm:$0xff] %v8022_v33  ;;  %v6908_v40 = vpop.eup %6907  ;;  %v958_v42 = vadd.f32 1.0, %v6906_v36  ;;  %1119 = vmatmul.mubr.f32.gmra.mrb[6].mxu1 %v8022_v33 }
 0x264   : > { %v6910_v56 = vpop.eup %6909  ;;  %v959_v0 = vadd.f32 1.0, %v6908_v40  ;;  %1124 = vmatprep.mubr.f32.mxu1 %v9366_v32 }
 0x265   : > { %v6912_v44 = vpop.eup %6911  ;;  %v8027_v46 = vmul.f32 %v6910_v56, %v7970_v14  ;;  %6919 = vrcp.f32 %v958_v42 }
 0x266   : > { %v981_v3 = vmul.f32 %v6912_v44, %v7975_v21  ;;  %6921 = vrcp.f32 %v959_v0 }
 0x267   : > { %9417 = vst [vmem:[#allocation32_spill] sm:$0xff] %v8027_v46  ;;  %1125 = vmatmul.mubr.f32.gmra.mrb[8].mxu1 %v8027_v46 }
 0x268   : > { %v6914_v49 = vpop.eup %6913  ;;  %v8032_v50 = vpack.c.bf16 %v981_v3, %v977_v47  ;;  %1130 = vmatprep.mubr.f32.mxu1 %v9366_v32 }
 0x269   : > { %v8036_v52 = vmul.f32 %v6914_v49, %v7978_v26 }
 0x26a   : > { %9418 = vst [vmem:[#allocation33_spill] sm:$0xff] %v8032_v50 }
 0x26b   : > { %9419 = vst [vmem:[#allocation34_spill] sm:$0xff] %v8036_v52  ;;  %v6916_v53 = vpop.eup %6915  ;;  %1131 = vmatmul.mubr.f32.gmra.mrb[10].mxu1 %v8036_v52 }
 0x26c   : > { %v8040_v14 = vmul.f32 %v6916_v53, %v7986_v45  ;;  %1136 = vmatprep.mubr.f32.mxu1 %v9366_v32  ;;  %v6918_v9 = vpop.eup %6917  ;;  %v1024_v45 = vld [vmem:[#allocation8] sm:$0x3] }
 0x26d   : > { %v985_v57 = vmul.f32 %v6918_v9, %v7983_v34  ;;  %v1029_v62 = vrot.slane %v1024_v45, %v7924_v35  ;;  %v1033_v34 = vrot.slane %v1024_v45, %v7926_v37  ;;  %v3475_v37 = vld [vmem:[#allocation11 + $0x48] sm:$0xff] }
 0x26e   : > { %9420 = vst [vmem:[#allocation35_spill] sm:$0xff] %v8040_v14 }
 0x26f   : > { %v6920_v21 = vpop.eup %6919  ;;  %1137 = vmatmul.mubr.f32.gmra.mrb[12].mxu1 %v8040_v14 }
 0x270   : > { %v6922_v55 = vpop.eup %6921  ;;  %v989_v58 = vmul.f32 %v6920_v21, %v7991_v54  ;;  %1142 = vmatprep.mubr.f32.mxu1 %v9366_v32 }
 0x271   : > { %v8048_v26 = vmul.f32 %v6922_v55, %v7994_v61 }
 0x272   : > { %v8050_v60 = vpack.c.bf16 %v989_v58, %v985_v57 }
 0x273   : > { %9421 = vst [vmem:[#allocation36_spill] sm:$0xff] %v8048_v26  ;;  %1143 = vmatmul.mubr.f32.gmra.mrb[14].mxu1 %v8048_v26 }
 0x274   : > { %9422 = vst [vmem:[#allocation37_spill] sm:$0xff] %v8050_v60  ;;  %v3473_v60 = vld [vmem:[#allocation11 + $0x38] sm:$0xff] }
 0x328   : > { %v1102_v63 = vpop.f32.mrb[0].mxu1 }
 0x329   : > { %v1103_v1 = vadd.f32 %v1102_v63, %v1029_v62  ;;  %v1104_v38 = vpop.f32.mrb[1].mxu1 }
 0x32a   : > { %v8058_v5 = vadd.f32 %v1104_v38, %v1033_v34 }
 0x32b   : > { %5671 = vmatprep.mubr.msk.f32.mxu1 %vm1173_vm0, %v1103_v1 }
 0x32c   : > { %v1108_v54 = vpop.f32.mrb[2].mxu1 }
 0x32d   : > { %v8056_v4 = vadd.f32 %v1108_v54, %v1029_v62  ;;  %v1110_v61 = vpop.f32.mrb[3].mxu1 }
 0x32e   : > { %v8060_v6 = vadd.f32 %v1110_v61, %v1033_v34 }
 0x32f   : > { %v6797_v7 = vpack.i.bf16 %v8056_v4, %v1103_v1 }
 0x330   : > { %v6837_v8 = vpack.i.bf16 %v8060_v6, %v8058_v5  ;;  %v8067_v10 = vpack.c.bf16 %v8060_v6, %v8058_v5  ;;  %v1114_v39 = vpop.f32.mrb[4].mxu1 }
 0x331   : > { %v1116_v11 = vpop.f32.mrb[5].mxu1  ;;  %6798 = vrot.lane.b32.xlu0 %v6797_v7, %s7506_s19  ;;  %v8070_v43 = vadd.f32 %v1114_v39, %v1029_v62 }
 0x332   : > { %v8074_v18 = vadd.f32 %v1116_v11, %v1033_v34 }
 0x336   : > { %v1120_v12 = vpop.f32.mrb[6].mxu1 }
 0x337   : > { %v8072_v15 = vadd.f32 %v1120_v12, %v1029_v62  ;;  %v1122_v17 = vpop.f32.mrb[7].mxu1 }
 0x338   : > { %v8076_v19 = vadd.f32 %v1122_v17, %v1033_v34 }
 0x339   : > { %v6802_v41 = vpack.i.bf16 %v8072_v15, %v8070_v43 }
 0x33a   : > { %v6842_v48 = vpack.i.bf16 %v8076_v19, %v8074_v18  ;;  %v8084_v51 = vpack.c.bf16 %v8076_v19, %v8074_v18  ;;  %v1126_v22 = vpop.f32.mrb[8].mxu1  ;;  %v2981_v18 = vld [vmem:[#allocation10 + $0x1b8] sm:$0xff]  ;;  %v3292_v19 = vld [vmem:[#allocation10 + $0x200] sm:$0xff] }
 0x33b   : > { %v1128_v23 = vpop.f32.mrb[9].mxu1  ;;  %6803 = vrot.lane.b32.xlu0 %v6802_v41, %s7506_s19  ;;  %v8087_v25 = vadd.f32 %v1126_v22, %v1029_v62 }
 0x33c   : > { %v8091_v29 = vadd.f32 %v1128_v23, %v1033_v34 }
 0x33e   : > { %v1132_v24 = vpop.f32.mrb[10].mxu1 }
 0x33f   : > { %v8089_v27 = vadd.f32 %v1132_v24, %v1029_v62  ;;  %v1134_v28 = vpop.f32.mrb[11].mxu1 }
 0x340   : > { %v8093_v30 = vadd.f32 %v1134_v28, %v1033_v34 }
 0x341   : > { %v6807_v59 = vpack.i.bf16 %v8089_v27, %v8087_v25 }
 0x342   : > { %v6847_v36 = vpack.i.bf16 %v8093_v30, %v8091_v29  ;;  %v8101_v40 = vpack.c.bf16 %v8093_v30, %v8091_v29  ;;  %v1138_v42 = vpop.f32.mrb[12].mxu1  ;;  %v2978_v29 = vld [vmem:[#allocation10 + $0x1a0] sm:$0xff]  ;;  %v2979_v30 = vld [vmem:[#allocation10 + $0x1a8] sm:$0xff] }
 0x343   : > { %v1140_v56 = vpop.f32.mrb[13].mxu1  ;;  %6808 = vrot.lane.b32.xlu1 %v6807_v59, %s7506_s19  ;;  %v8104_v44 = vadd.f32 %v1138_v42, %v1029_v62 }
 0x344   : > { %v8108_v49 = vadd.f32 %v1140_v56, %v1033_v34 }
 0x346   : > { %v1144_v0 = vpop.f32.mrb[14].mxu1 }
 0x347   : > { %v8106_v47 = vadd.f32 %v1144_v0, %v1029_v62  ;;  %v1146_v3 = vpop.f32.mrb[15].mxu1  ;;  %6813 = vrot.lane.b32.xlu1 %v6797_v7, %s7507_s22 }
 0x348   : > { %v8110_v53 = vadd.f32 %v1146_v3, %v1033_v34 }
 0x349   : > { %v6817_v9 = vpack.i.bf16 %v8106_v47, %v8104_v44 }
 0x34a   : > { %v6852_v21 = vpack.i.bf16 %v8110_v53, %v8108_v49  ;;  %v8118_v55 = vpack.c.bf16 %v8110_v53, %v8108_v49  ;;  %v3293_v49 = vld [vmem:[#allocation10 + $0x208] sm:$0xff] }
 0x34b   : > { %6823 = vrot.lane.b32.xlu1 %v6802_v41, %s7507_s22  ;;  %6818 = vrot.lane.b32.xlu0 %v6817_v9, %s7506_s19 }
 0x34f   : > { %6833 = vrot.lane.b32.xlu1 %v6817_v9, %s7507_s22  ;;  %6828 = vrot.lane.b32.xlu0 %v6807_v59, %s7507_s22 }
 0x353   : > { %1547 = vrot.lane.b32.xlu1 %v8056_v4, %s7508_s18  ;;  %1545 = vrot.lane.b32.xlu0 %v1103_v1, %s7508_s18 }
 0x357   : > { %1551 = vrot.lane.b32.xlu1 %v8072_v15, %s7508_s18  ;;  %1549 = vrot.lane.b32.xlu0 %v8070_v43, %s7508_s18 }
 0x35b   : > { %1555 = vrot.lane.b32.xlu1 %v8089_v27, %s7508_s18  ;;  %1553 = vrot.lane.b32.xlu0 %v8087_v25, %s7508_s18 }
 0x35f   : > { %1559 = vrot.lane.b32.xlu1 %v8106_v47, %s7508_s18  ;;  %1557 = vrot.lane.b32.xlu0 %v8104_v44, %s7508_s18 }
 0x3a3   : > { %v6799_v57 = vpop.permute.xlu0 %6798 }
 0x3a4   : > { %v6801_v58 = vunpack.i.h.bf16 %v6799_v57  ;;  %v6800_v45 = vunpack.i.l.bf16 %v6799_v57 }
 0x3a6   : > { %v6287_v63 = vpack.c.bf16 %v6801_v58, %v6800_v45 }
 0x3a8   : > { %6289 = vmatprep.subr.msk.bf16.mxu1 %vm8130_vm1, %v6287_v63 }
 0x3a9   : > { %6292 = vmatpush3.bf16.xpose.msk.msra.mxu1 %vm8130_vm1, %v6287_v63 }
 0x3ad   : > { %v6804_v1 = vpop.permute.xlu0 %6803 }
 0x3ae   : > { %v6806_v38 = vunpack.i.h.bf16 %v6804_v1  ;;  %v6805_v34 = vunpack.i.l.bf16 %v6804_v1 }
 0x3b0   : > { %v6293_v54 = vpack.c.bf16 %v6806_v38, %v6805_v34 }
 0x3b2   : > { %6295 = vmatprep.subr.msk.bf16.mxu1 %vm8130_vm1, %v6293_v54 }
 0x3b3   : > { %6298 = vmatpush3.bf16.xpose.msk.msra.mxu1 %vm8130_vm1, %v6293_v54 }
 0x3b5   : > { %v6809_v61 = vpop.permute.xlu1 %6808 }
 0x3b6   : > { %v6811_v7 = vunpack.i.h.bf16 %v6809_v61  ;;  %v6810_v39 = vunpack.i.l.bf16 %v6809_v61  ;;  %v2021_v61 = vld [vmem:[#allocation10 + $0x8] sm:$0xff] }
 0x3b8   : > { %v6299_v11 = vpack.c.bf16 %v6811_v7, %v6810_v39  ;;  %v2022_v7 = vld [vmem:[#allocation10 + $0x10] sm:$0xff]  ;;  %v2023_v39 = vld [vmem:[#allocation10 + $0x18] sm:$0xff] }
 0x3b9   : > { %v6814_v12 = vpop.permute.xlu1 %6813 }
 0x3ba   : > { %v6816_v17 = vunpack.i.h.bf16 %v6814_v12  ;;  %v6815_v41 = vunpack.i.l.bf16 %v6814_v12  ;;  %6301 = vmatprep.subr.msk.bf16.mxu1 %vm8130_vm1, %v6299_v11  ;;  %v2025_v12 = vld [vmem:[#allocation10 + $0x28] sm:$0xff] }
 0x3bb   : > { %6304 = vmatpush3.bf16.xpose.msk.msra.mxu1 %vm8130_vm1, %v6299_v11  ;;  %v2024_v11 = vld [vmem:[#allocation10 + $0x20] sm:$0xff] }
 0x3bc   : > { %v6327_v22 = vpack.c.bf16 %v6816_v17, %v6815_v41  ;;  %v2026_v17 = vld [vmem:[#allocation10 + $0x30] sm:$0xff]  ;;  %v2027_v41 = vld [vmem:[#allocation10 + $0x38] sm:$0xff] }
 0x3bd   : > { %v6824_v23 = vpop.permute.xlu1 %6823  ;;  %v6819_v24 = vpop.permute.xlu0 %6818 }
 0x3be   : > { %v6826_v28 = vunpack.i.h.bf16 %v6824_v23  ;;  %v6825_v59 = vunpack.i.l.bf16 %v6824_v23  ;;  %v6821_v42 = vunpack.i.h.bf16 %v6819_v24  ;;  %v6820_v56 = vunpack.i.l.bf16 %v6819_v24  ;;  %6329 = vmatprep.subr.msk.bf16.mxu0 %vm8130_vm1, %v6327_v22  ;;  %v2339_v23 = vld [vmem:[#allocation10 + $0x88] sm:$0xff]  ;;  %v2340_v24 = vld [vmem:[#allocation10 + $0x90] sm:$0xff] }
 0x3bf   : > { %6332 = vmatpush3.bf16.xpose.msk.msra.mxu0 %vm8130_vm1, %v6327_v22  ;;  %v2338_v22 = vld [vmem:[#allocation10 + $0x80] sm:$0xff] }
 0x3c0   : > { %v6333_v0 = vpack.c.bf16 %v6826_v28, %v6825_v59  ;;  %v6305_v3 = vpack.c.bf16 %v6821_v42, %v6820_v56  ;;  %v2341_v28 = vld [vmem:[#allocation10 + $0x98] sm:$0xff]  ;;  %v2342_v59 = vld [vmem:[#allocation10 + $0xa0] sm:$0xff]  ;;  %v2343_v42 = vld [vmem:[#allocation10 + $0xa8] sm:$0xff] }
 0x3c1   : > { %v6829_v9 = vpop.permute.xlu0 %6828  ;;  %v6834_v1 = vpop.permute.xlu1 %6833  ;;  %v2344_v56 = vld [vmem:[#allocation10 + $0xb0] sm:$0xff] }
 0x3c2   : > { %v6831_v57 = vunpack.i.h.bf16 %v6829_v9  ;;  %v6830_v58 = vunpack.i.l.bf16 %v6829_v9  ;;  %6307 = vmatprep.subr.msk.bf16.mxu1 %vm8130_vm1, %v6305_v3  ;;  %6335 = vmatprep.subr.msk.bf16.mxu0 %vm8130_vm1, %v6333_v0  ;;  %v6836_v38 = vunpack.i.h.bf16 %v6834_v1  ;;  %v6835_v34 = vunpack.i.l.bf16 %v6834_v1  ;;  %v2657_v9 = vld [vmem:[#allocation10 + $0x108] sm:$0xff]  ;;  %v2662_v1 = vld [vmem:[#allocation10 + $0x130] sm:$0xff] }
 0x3c3   : > { %6310 = vmatpush3.bf16.xpose.msk.msra.mxu1 %vm8130_vm1, %v6305_v3  ;;  %v2656_v3 = vld [vmem:[#allocation10 + $0x100] sm:$0xff] }
 0x3c4   : > { %6312 = vmatprep.subr.bf16.mxu1 %v8067_v10  ;;  %v6339_v63 = vpack.c.bf16 %v6831_v57, %v6830_v58  ;;  %v6345_v54 = vpack.c.bf16 %v6836_v38, %v6835_v34  ;;  %v2658_v57 = vld [vmem:[#allocation10 + $0x110] sm:$0xff]  ;;  %v2659_v58 = vld [vmem:[#allocation10 + $0x118] sm:$0xff]  ;;  %v2974_v34 = vld [vmem:[#allocation10 + $0x180] sm:$0xff] }
 0x3c5   : > { %v1546_v45 = vpop.permute.xlu0 %1545  ;;  %v2663_v38 = vld [vmem:[#allocation10 + $0x138] sm:$0xff] }
 0x3c6   : > { %5727 = vmatprep.mubr.msk.f32.mxu0 %vm1173_vm0, %v1546_v45  ;;  %v2660_v45 = vld [vmem:[#allocation10 + $0x120] sm:$0xff] }
 0x3c7   : > { %6338 = vmatpush3.bf16.xpose.msk.msra.mxu0 %vm8130_vm1, %v6333_v0  ;;  %v2345_v0 = vld [vmem:[#allocation10 + $0xb8] sm:$0xff] }
 0x3c8   : > { %6341 = vmatprep.subr.msk.bf16.mxu0 %vm8130_vm1, %v6339_v63 }
 0x3ca   : > { %5672 = vmatmul.mubr.msk.f32.vlgmr.msra.gmra.mrb[16].mxu1 %vm1173_vm0, %v8056_v4  ;;  %v1548_v4 = vpop.permute.xlu1 %1547 }
 0x3cb   : > { %5674 = vmatprep.mubr.msk.f32.mxu1 %vm1173_vm0, %v8070_v43  ;;  %6314 = vmatpush3.bf16.msra.mxu1 %v8067_v10  ;;  %v1550_v43 = vpop.permute.xlu0 %1549 }
 0x3cc   : > { %6316 = vmatprep.subr.bf16.mxu1 %v8084_v51 }
 0x3ce   : > { %5675 = vmatmul.mubr.msk.f32.gmra.mrb[18].mxu1 %vm1173_vm0, %v8072_v15  ;;  %v1552_v15 = vpop.permute.xlu1 %1551 }
 0x3cf   : > { %5677 = vmatprep.mubr.msk.f32.mxu1 %vm1173_vm0, %v8087_v25  ;;  %6318 = vmatpush3.bf16.msra.mxu1 %v8084_v51  ;;  %v1554_v25 = vpop.permute.xlu0 %1553 }
 0x3d0   : > { %6344 = vmatpush3.bf16.xpose.msk.msra.mxu0 %vm8130_vm1, %v6339_v63  ;;  %6320 = vmatprep.subr.bf16.mxu1 %v8101_v40  ;;  %v2661_v63 = vld [vmem:[#allocation10 + $0x128] sm:$0xff] }
 0x3d1   : > { %6347 = vmatprep.subr.msk.bf16.mxu0 %vm8130_vm1, %v6345_v54 }
 0x3d2   : > { %5678 = vmatmul.mubr.msk.f32.gmra.mrb[20].mxu1 %vm1173_vm0, %v8089_v27  ;;  %v1556_v27 = vpop.permute.xlu1 %1555 }
 0x3d3   : > { %5680 = vmatprep.mubr.msk.f32.mxu1 %vm1173_vm0, %v8104_v44  ;;  %6322 = vmatpush3.bf16.msra.mxu1 %v8101_v40  ;;  %v1558_v44 = vpop.permute.xlu0 %1557 }
 0x3d4   : > { %6324 = vmatprep.subr.bf16.mxu1 %v8118_v55 }
 0x3d6   : > { %5681 = vmatmul.mubr.msk.f32.gmra.mrb[22].mxu1 %vm1173_vm0, %v8106_v47  ;;  %v2020_v47 = vld [vmem:[#allocation10] sm:$0xff]  ;;  %v1560_v62 = vpop.permute.xlu1 %1559 }
 0x3d7   : > { %6326 = vmatpush3.bf16.msra.mxu1 %v8118_v55 }
 0x3d8   : > { %6350 = vmatpush3.bf16.xpose.msk.msra.mxu0 %vm8130_vm1, %v6345_v54  ;;  %v2975_v54 = vld [vmem:[#allocation10 + $0x188] sm:$0xff] }
 0x3d9   : > { %6368 = vmatprep.subr.bf16.mxu0 %v8067_v10 }
 0x3df   : > { %5728 = vmatmul.mubr.msk.f32.vlgmr.msra.gmra.mrb[16].mxu0 %vm1173_vm0, %v1548_v4 }
 0x3e0   : > { %5730 = vmatprep.mubr.msk.f32.mxu0 %vm1173_vm0, %v1550_v43  ;;  %6370 = vmatpush3.bf16.msra.mxu0 %v8067_v10 }
 0x3e1   : > { %6372 = vmatprep.subr.bf16.mxu0 %v8084_v51 }
 0x3e3   : > { %5731 = vmatmul.mubr.msk.f32.gmra.mrb[18].mxu0 %vm1173_vm0, %v1552_v15 }
 0x3e4   : > { %5733 = vmatprep.mubr.msk.f32.mxu0 %vm1173_vm0, %v1554_v25  ;;  %6374 = vmatpush3.bf16.msra.mxu0 %v8084_v51 }
 0x3e5   : > { %6376 = vmatprep.subr.bf16.mxu0 %v8101_v40 }
 0x3e7   : > { %5734 = vmatmul.mubr.msk.f32.gmra.mrb[20].mxu0 %vm1173_vm0, %v1556_v27 }
 0x3e8   : > { %5736 = vmatprep.mubr.msk.f32.mxu0 %vm1173_vm0, %v1558_v44  ;;  %6378 = vmatpush3.bf16.msra.mxu0 %v8101_v40 }
 0x3e9   : > { %6380 = vmatprep.subr.bf16.mxu0 %v8118_v55 }
 0x3eb   : > { %5737 = vmatmul.mubr.msk.f32.gmra.mrb[22].mxu0 %vm1173_vm0, %v1560_v62 }
 0x3ec   : > { %6382 = vmatpush3.bf16.msra.mxu0 %v8118_v55  ;;  %5783 = vmatprep.mubr.msk.f32.mxu0 %vm1319_vm2, %v2020_v47 }
 0x3ed   : > { %6400 = vmatprep.subr.bf16.mxu0 %v8067_v10 }
 0x3ef   : > { %5784 = vmatmul.mubr.msk.f32.vlgmr.msra.gmra.mrb[24].mxu0 %vm1319_vm2, %v2021_v61 }
 0x3f0   : > { %6402 = vmatpush3.bf16.msra.mxu0 %v8067_v10  ;;  %5786 = vmatprep.mubr.msk.f32.mxu0 %vm1319_vm2, %v2022_v7 }
 0x3f1   : > { %6404 = vmatprep.subr.bf16.mxu0 %v8084_v51 }
 0x3f3   : > { %5787 = vmatmul.mubr.msk.f32.gmra.mrb[26].mxu0 %vm1319_vm2, %v2023_v39 }
 0x3f4   : > { %6406 = vmatpush3.bf16.msra.mxu0 %v8084_v51  ;;  %5789 = vmatprep.mubr.msk.f32.mxu0 %vm1319_vm2, %v2024_v11 }
 0x3f5   : > { %6408 = vmatprep.subr.bf16.mxu0 %v8101_v40 }
 0x3f7   : > { %5790 = vmatmul.mubr.msk.f32.gmra.mrb[28].mxu0 %vm1319_vm2, %v2025_v12 }
 0x3f8   : > { %6410 = vmatpush3.bf16.msra.mxu0 %v8101_v40  ;;  %5792 = vmatprep.mubr.msk.f32.mxu0 %vm1319_vm2, %v2026_v17 }
 0x3f9   : > { %6412 = vmatprep.subr.bf16.mxu0 %v8118_v55 }
 0x3fb   : > { %5793 = vmatmul.mubr.msk.f32.gmra.mrb[30].mxu0 %vm1319_vm2, %v2027_v41 }
 0x3fc   : > { %6414 = vmatpush3.bf16.msra.mxu0 %v8118_v55  ;;  %5839 = vmatprep.mubr.msk.f32.mxu0 %vm1319_vm2, %v2338_v22 }
 0x3fd   : > { %6432 = vmatprep.subr.bf16.mxu0 %v8067_v10 }
 0x3ff   : > { %5840 = vmatmul.mubr.msk.f32.vlgmr.msra.gmra.mrb[32].mxu0 %vm1319_vm2, %v2339_v23 }
 0x400   : > { %6434 = vmatpush3.bf16.msra.mxu0 %v8067_v10  ;;  %5842 = vmatprep.mubr.msk.f32.mxu0 %vm1319_vm2, %v2340_v24 }
 0x401   : > { %6436 = vmatprep.subr.bf16.mxu0 %v8084_v51 }
 0x403   : > { %5843 = vmatmul.mubr.msk.f32.gmra.mrb[34].mxu0 %vm1319_vm2, %v2341_v28 }
 0x404   : > { %6438 = vmatpush3.bf16.msra.mxu0 %v8084_v51  ;;  %5845 = vmatprep.mubr.msk.f32.mxu0 %vm1319_vm2, %v2342_v59 }
 0x405   : > { %6440 = vmatprep.subr.bf16.mxu0 %v8101_v40 }
 0x407   : > { %5846 = vmatmul.mubr.msk.f32.gmra.mrb[36].mxu0 %vm1319_vm2, %v2343_v42 }
 0x408   : > { %6442 = vmatpush3.bf16.msra.mxu0 %v8101_v40  ;;  %5848 = vmatprep.mubr.msk.f32.mxu0 %vm1319_vm2, %v2344_v56 }
 0x409   : > { %6444 = vmatprep.subr.bf16.mxu0 %v8118_v55 }
 0x40b   : > { %5849 = vmatmul.mubr.msk.f32.gmra.mrb[38].mxu0 %vm1319_vm2, %v2345_v0 }
 0x40c   : > { %6446 = vmatpush3.bf16.msra.mxu0 %v8118_v55  ;;  %5895 = vmatprep.mubr.msk.f32.mxu0 %vm1319_vm2, %v2656_v3 }
 0x40d   : > { %6464 = vmatprep.subr.bf16.mxu0 %v8067_v10 }
 0x40f   : > { %5896 = vmatmul.mubr.msk.f32.vlgmr.msra.gmra.mrb[40].mxu0 %vm1319_vm2, %v2657_v9 }
 0x410   : > { %6466 = vmatpush3.bf16.msra.mxu0 %v8067_v10  ;;  %5898 = vmatprep.mubr.msk.f32.mxu0 %vm1319_vm2, %v2658_v57 }
 0x411   : > { %6468 = vmatprep.subr.bf16.mxu0 %v8084_v51 }
 0x413   : > { %5899 = vmatmul.mubr.msk.f32.gmra.mrb[42].mxu0 %vm1319_vm2, %v2659_v58 }
 0x414   : > { %6470 = vmatpush3.bf16.msra.mxu0 %v8084_v51  ;;  %5901 = vmatprep.mubr.msk.f32.mxu0 %vm1319_vm2, %v2660_v45 }
 0x415   : > { %6472 = vmatprep.subr.bf16.mxu0 %v8101_v40 }
 0x417   : > { %5902 = vmatmul.mubr.msk.f32.gmra.mrb[44].mxu0 %vm1319_vm2, %v2661_v63 }
 0x418   : > { %6474 = vmatpush3.bf16.msra.mxu0 %v8101_v40  ;;  %5904 = vmatprep.mubr.msk.f32.mxu0 %vm1319_vm2, %v2662_v1 }
 0x419   : > { %6476 = vmatprep.subr.bf16.mxu0 %v8118_v55 }
 0x41b   : > { %5905 = vmatmul.mubr.msk.f32.gmra.mrb[46].mxu0 %vm1319_vm2, %v2663_v38 }
 0x41c   : > { %6478 = vmatpush3.bf16.msra.mxu0 %v8118_v55  ;;  %5951 = vmatprep.mubr.msk.f32.mxu0 %vm1319_vm2, %v2974_v34 }
 0x41d   : > { %6496 = vmatprep.subr.bf16.mxu0 %v8067_v10 }
 0x41f   : > { %5952 = vmatmul.mubr.msk.f32.vlgmr.msra.gmra.mrb[48].mxu0 %vm1319_vm2, %v2975_v54 }
 0x420   : > { %6498 = vmatpush3.bf16.msra.mxu0 %v8067_v10 }
 0x421   : > { %6500 = vmatprep.subr.bf16.mxu0 %v8084_v51 }
 0x424   : > { %6502 = vmatpush3.bf16.msra.mxu0 %v8084_v51 }
 0x425   : > { %6504 = vmatprep.subr.bf16.mxu0 %v8101_v40 }
 0x428   : > { %6506 = vmatpush3.bf16.msra.mxu0 %v8101_v40 }
 0x429   : > { %6508 = vmatprep.subr.bf16.mxu0 %v8118_v55 }
 0x42c   : > { %6510 = vmatpush3.bf16.msra.mxu0 %v8118_v55 }
 0x49d   : > { %v5673_v4 = vpop.f32.mrb[16].mxu1 }
 0x49e   : > { %v8262_v43 = vmul.f32 0.17677669, %v5673_v4  ;;  %v1272_v15 = vpop.f32.mrb[17].mxu1 }
 0x49f   : > { %v8264_v25 = vmul.f32 0.17677669, %v1272_v15 }
 0x4a0   : > { %v1323_v27 = vsel %vm1319_vm2, %v8262_v43, -inf }
 0x4a1   : > { %1324 = vmax.xlane.f32.xlu1 %v1323_v27  ;;  %v5676_v44 = vpop.f32.mrb[18].mxu1  ;;  %v1320_v47 = vsel %vm1319_vm2, %v8264_v25, -inf }
 0x4a2   : > { %1321 = vmax.xlane.f32.xlu0 %v1320_v47  ;;  %v1282_v62 = vpop.f32.mrb[19].mxu1  ;;  %v8272_v7 = vmul.f32 0.17677669, %v5676_v44 }
 0x4a3   : > { %v8270_v61 = vmul.f32 0.17677669, %v1282_v62 }
 0x4a4   : > { %v1329_v22 = vsel %vm1319_vm2, %v8272_v7, -inf }
 0x4a5   : > { %v5679_v39 = vpop.f32.mrb[20].mxu1  ;;  %v1326_v11 = vsel %vm1319_vm2, %v8270_v61, -inf }
 0x4a6   : > { %1327 = vmax.xlane.f32.xlu0 %v1326_v11  ;;  %v1292_v12 = vpop.f32.mrb[21].mxu1  ;;  %v8276_v17 = vmul.f32 0.17677669, %v5679_v39 }
 0x4a7   : > { %v8292_v57 = vmul.f32 0.17677669, %v1292_v12 }
 0x4a8   : > { %v1335_v28 = vsel %vm1319_vm2, %v8276_v17, -inf }
 0x4a9   : > { %v5682_v41 = vpop.f32.mrb[22].mxu1  ;;  %v1332_v4 = vsel %vm1319_vm2, %v8292_v57, -inf }
 0x4aa   : > { %1330 = vmax.xlane.f32.xlu0 %v1329_v22  ;;  %v1302_v23 = vpop.f32.mrb[23].mxu1  ;;  %v8280_v24 = vmul.f32 0.17677669, %v5682_v41 }
 0x4ab   : > { %v8316_v22 = vmul.f32 0.17677669, %v1302_v23 }
 0x4ac   : > { %v1341_v59 = vsel %vm1319_vm2, %v8280_v24, -inf }
 0x4ae   : > { %1336 = vmax.xlane.f32.xlu0 %v1335_v28 }
 0x4b2   : > { %v5729_v42 = vpop.f32.mrb[16].mxu0  ;;  %1342 = vmax.xlane.f32.xlu0 %v1341_v59 }
 0x4b3   : > { %v8286_v56 = vmul.f32 0.17677669, %v5729_v42  ;;  %v1675_v0 = vpop.f32.mrb[17].mxu0  ;;  %v1338_v42 = vsel %vm1319_vm2, %v8316_v22, -inf }
 0x4b4   : > { %v8288_v3 = vmul.f32 0.17677669, %v1675_v0 }
 0x4b5   : > { %v1725_v9 = vsel %vm1319_vm2, %v8286_v56, -inf }
 0x4b6   : > { %v5732_v58 = vpop.f32.mrb[18].mxu0  ;;  %v1722_v45 = vsel %vm1319_vm2, %v8288_v3, -inf  ;;  %1726 = vmax.xlane.f32.xlu0 %v1725_v9 }
 0x4b7   : > { %v8296_v63 = vmul.f32 0.17677669, %v5732_v58  ;;  %v1685_v1 = vpop.f32.mrb[19].mxu0  ;;  %1723 = vmax.xlane.f32.xlu1 %v1722_v45 }
 0x4b8   : > { %v8300_v34 = vmul.f32 0.17677669, %v1685_v1 }
 0x4b9   : > { %v1731_v38 = vsel %vm1319_vm2, %v8296_v63, -inf }
 0x4ba   : > { %v5735_v54 = vpop.f32.mrb[20].mxu0  ;;  %1732 = vmax.xlane.f32.xlu0 %v1731_v38  ;;  %v1728_v39 = vsel %vm1319_vm2, %v8300_v34, -inf }
 0x4bb   : > { %v8304_v15 = vmul.f32 0.17677669, %v5735_v54  ;;  %v1695_v27 = vpop.f32.mrb[21].mxu0  ;;  %1333 = vmax.xlane.f32.xlu1 %v1332_v4 }
 0x4bc   : > { %v8308_v47 = vmul.f32 0.17677669, %v1695_v27 }
 0x4bd   : > { %v1737_v44 = vsel %vm1319_vm2, %v8304_v15, -inf }
 0x4be   : > { %v5738_v62 = vpop.f32.mrb[22].mxu0  ;;  %1738 = vmax.xlane.f32.xlu0 %v1737_v44  ;;  %v1734_v28 = vsel %vm1319_vm2, %v8308_v47, -inf }
 0x4bf   : > { %v8312_v11 = vmul.f32 0.17677669, %v5738_v62  ;;  %v1705_v12 = vpop.f32.mrb[23].mxu0  ;;  %1729 = vmax.xlane.f32.xlu1 %v1728_v39 }
 0x4c0   : > { %v8320_v59 = vmul.f32 0.17677669, %v1705_v12 }
 0x4c1   : > { %v1743_v41 = vsel %vm1319_vm2, %v8312_v11, -inf }
 0x4c2   : > { %1744 = vmax.xlane.f32.xlu0 %v1743_v41  ;;  %v1740_v0 = vsel %vm1319_vm2, %v8320_v59, -inf }
 0x4c3   : > { %1735 = vmax.xlane.f32.xlu1 %v1734_v28 }
 0x4c7   : > { %1339 = vmax.xlane.f32.xlu1 %v1338_v42 }
 0x4cb   : > { %1741 = vmax.xlane.f32.xlu1 %v1740_v0 }
 0x4dc   : > { %6838 = vrot.lane.b32.xlu1 %v6837_v8, %s7506_s19 }
 0x52e   : > { %v1325_v23 = vpop.xlane.xlu1 %1324 }
 0x52f   : > { %v1345_v9 = vsub.f32 %v8262_v43, %v1325_v23  ;;  %v1322_v58 = vpop.xlane.xlu0 %1321 }
 0x530   : > { %v1344_v45 = vsub.f32 %v8264_v25, %v1322_v58 }
 0x531   : > { %v1354_v1 = vmul.f32 1.442695, %v1345_v9 }
 0x532   : > { %v1352_v38 = vmul.f32 1.442695, %v1344_v45 }
 0x533   : > { %6923 = vpow2.f32 %v1354_v1  ;;  %v1328_v54 = vpop.xlane.xlu0 %1327 }
 0x534   : > { %6925 = vpow2.f32 %v1352_v38  ;;  %v1346_v25 = vsub.f32 %v8270_v61, %v1328_v54 }
 0x536   : > { %v1356_v23 = vmul.f32 1.442695, %v1346_v25 }
 0x537   : > { %v1331_v4 = vpop.xlane.xlu0 %1330 }
 0x538   : > { %v1347_v43 = vsub.f32 %v8272_v7, %v1331_v4 }
 0x53a   : > { %v1358_v42 = vmul.f32 1.442695, %v1347_v43 }
 0x53b   : > { %v1337_v27 = vpop.xlane.xlu0 %1336 }
 0x53c   : > { %v1349_v7 = vsub.f32 %v8276_v17, %v1337_v27 }
 0x53d   : > { %v8332_v44 = vpop.eup %6923 }
 0x53e   : > { %v8334_v62 = vpop.eup %6925  ;;  %v1371_v5 = vsel %vm1319_vm2, %v8332_v44, 0.0  ;;  %v1362_v4 = vmul.f32 1.442695, %v1349_v7 }
 0x53f   : > { %1372 = vadd.xlane.f32.xlu0 %v1371_v5  ;;  %v1343_v6 = vpop.xlane.xlu0 %1342  ;;  %v1368_v8 = vsel %vm1319_vm2, %v8334_v62, 0.0 }
 0x540   : > { %1369 = vadd.xlane.f32.xlu1 %v1368_v8  ;;  %v1351_v17 = vsub.f32 %v8280_v24, %v1343_v6 }
 0x542   : > { %v1366_v6 = vmul.f32 1.442695, %v1351_v17 }
 0x543   : > { %v1727_v39 = vpop.xlane.xlu0 %1726 }
 0x544   : > { %v1724_v12 = vpop.xlane.xlu1 %1723  ;;  %v1747_v41 = vsub.f32 %v8286_v56, %v1727_v39 }
 0x545   : > { %v1746_v28 = vsub.f32 %v8288_v3, %v1724_v12 }
 0x546   : > { %v1756_v0 = vmul.f32 1.442695, %v1747_v41 }
 0x547   : > { %v1754_v9 = vmul.f32 1.442695, %v1746_v28  ;;  %v1733_v58 = vpop.xlane.xlu0 %1732 }
 0x548   : > { %6927 = vpow2.f32 %v1756_v0  ;;  %v1334_v45 = vpop.xlane.xlu1 %1333  ;;  %v1749_v1 = vsub.f32 %v8296_v63, %v1733_v58 }
 0x549   : > { %6929 = vpow2.f32 %v1754_v9  ;;  %v1348_v38 = vsub.f32 %v8292_v57, %v1334_v45 }
 0x54a   : > { %6931 = vpow2.f32 %v1358_v42  ;;  %v1760_v61 = vmul.f32 1.442695, %v1749_v1 }
 0x54b   : > { %6933 = vpow2.f32 %v1356_v23  ;;  %v1739_v56 = vpop.xlane.xlu0 %1738  ;;  %v1360_v8 = vmul.f32 1.442695, %v1348_v38 }
 0x54c   : > { %v1730_v54 = vpop.xlane.xlu1 %1729  ;;  %6935 = vpow2.f32 %v1760_v61  ;;  %v1751_v5 = vsub.f32 %v8304_v15, %v1739_v56 }
 0x54d   : > { %v1748_v3 = vsub.f32 %v8300_v34, %v1730_v54 }
 0x54e   : > { %v1764_v57 = vmul.f32 1.442695, %v1751_v5 }
 0x54f   : > { %v1758_v43 = vmul.f32 1.442695, %v1748_v3  ;;  %v1745_v12 = vpop.xlane.xlu0 %1744 }
 0x550   : > { %v1736_v25 = vpop.xlane.xlu1 %1735  ;;  %v1753_v0 = vsub.f32 %v8312_v11, %v1745_v12 }
 0x551   : > { %6937 = vpow2.f32 %v1758_v43  ;;  %v1750_v63 = vsub.f32 %v8308_v47, %v1736_v25 }
 0x552   : > { %v8350_v39 = vpop.eup %6927  ;;  %6939 = vpow2.f32 %v1362_v4 }
 0x553   : > { %v8353_v27 = vpop.eup %6929  ;;  %6941 = vpow2.f32 %v1360_v8  ;;  %v1762_v34 = vmul.f32 1.442695, %v1750_v63  ;;  %v1773_v15 = vsel %vm1319_vm2, %v8350_v39, 0.0 }
 0x554   : > { %v8357_v41 = vpop.eup %6931  ;;  %v1340_v28 = vpop.xlane.xlu1 %1339  ;;  %1774 = vadd.xlane.f32.xlu0 %v1773_v15  ;;  %v1770_v47 = vsel %vm1319_vm2, %v8353_v27, 0.0  ;;  %6943 = vpow2.f32 %v1764_v57 }
 0x555   : > { %v8361_v42 = vpop.eup %6933  ;;  %v1350_v24 = vsub.f32 %v8316_v22, %v1340_v28  ;;  %1771 = vadd.xlane.f32.xlu1 %v1770_v47  ;;  %6945 = vpow2.f32 %v1762_v34  ;;  %v1377_v9 = vsel %vm1319_vm2, %v8357_v41, 0.0  ;;  %v1768_v22 = vmul.f32 1.442695, %v1753_v0 }
 0x556   : > { %v8367_v58 = vpop.eup %6935  ;;  %v1374_v1 = vsel %vm1319_vm2, %v8361_v42, 0.0  ;;  %6947 = vpow2.f32 %v1366_v6 }
 0x557   : > { %v1364_v23 = vmul.f32 1.442695, %v1350_v24  ;;  %v1779_v11 = vsel %vm1319_vm2, %v8367_v58, 0.0 }
 0x558   : > { %v1742_v45 = vpop.xlane.xlu1 %1741  ;;  %1378 = vadd.xlane.f32.xlu0 %v1377_v9 }
 0x559   : > { %1375 = vadd.xlane.f32.xlu1 %v1374_v1  ;;  %v1752_v7 = vsub.f32 %v8320_v59, %v1742_v45  ;;  %6949 = vpow2.f32 %v1364_v23  ;;  %v2976_v45 = vld [vmem:[#allocation10 + $0x190] sm:$0xff]  ;;  %v2977_v1 = vld [vmem:[#allocation10 + $0x198] sm:$0xff] }
 0x55a   : > { %6951 = vpow2.f32 %v1768_v22  ;;  %5954 = vmatprep.mubr.msk.f32.mxu0 %vm1319_vm2, %v2976_v45 }
 0x55b   : > { %v8372_v61 = vpop.eup %6937  ;;  %v1766_v59 = vmul.f32 1.442695, %v1752_v7  ;;  %5955 = vmatmul.mubr.msk.f32.gmra.mrb[50].mxu0 %vm1319_vm2, %v2977_v1 }
 0x55c   : > { %v8376_v38 = vpop.eup %6939  ;;  %v6839_v56 = vpop.permute.xlu1 %6838  ;;  %1780 = vadd.xlane.f32.xlu0 %v1779_v11  ;;  %v1776_v54 = vsel %vm1319_vm2, %v8372_v61, 0.0  ;;  %5957 = vmatprep.mubr.msk.f32.mxu0 %vm1319_vm2, %v2978_v29 }
 0x55d   : > { %v8380_v3 = vpop.eup %6941  ;;  %v6841_v4 = vunpack.i.h.bf16 %v6839_v56  ;;  %v6840_v5 = vunpack.i.l.bf16 %v6839_v56  ;;  %1777 = vadd.xlane.f32.xlu1 %v1776_v54  ;;  %v1383_v43 = vsel %vm1319_vm2, %v8376_v38, 0.0  ;;  %6953 = vpow2.f32 %v1766_v59  ;;  %v3295_v56 = vld [vmem:[#allocation10 + $0x218] sm:$0xff]  ;;  %v3296_v54 = vld [vmem:[#allocation10 + $0x220] sm:$0xff] }
 0x55e   : > { %v8384_v25 = vpop.eup %6943  ;;  %v1380_v63 = vsel %vm1319_vm2, %v8380_v3, 0.0 }
 0x55f   : > { %v6351_v8 = vpack.c.bf16 %v6841_v4, %v6840_v5  ;;  %v8388_v17 = vpop.eup %6945  ;;  %v1785_v57 = vsel %vm1319_vm2, %v8384_v25, 0.0  ;;  %5958 = vmatmul.mubr.msk.f32.gmra.mrb[52].mxu0 %vm1319_vm2, %v2979_v30  ;;  %v3297_v4 = vld [vmem:[#allocation10 + $0x228] sm:$0xff]  ;;  %v3298_v5 = vld [vmem:[#allocation10 + $0x230] sm:$0xff] }
 0x560   : > { %1384 = vadd.xlane.f32.xlu0 %v1383_v43  ;;  %v8392_v34 = vpop.eup %6947  ;;  %v1782_v12 = vsel %vm1319_vm2, %v8388_v17, 0.0 }
 0x561   : > { %1381 = vadd.xlane.f32.xlu1 %v1380_v63  ;;  %6352 = vmatprep.subr.bf16.mxu1 %v6351_v8  ;;  %v1389_v28 = vsel %vm1319_vm2, %v8392_v34, 0.0 }
 0x563   : > { %v8396_v15 = vpop.eup %6949 }
 0x564   : > { %1786 = vadd.xlane.f32.xlu0 %v1785_v57  ;;  %v8400_v47 = vpop.eup %6951  ;;  %v1386_v24 = vsel %vm1319_vm2, %v8396_v15, 0.0 }
 0x565   : > { %1783 = vadd.xlane.f32.xlu1 %v1782_v12  ;;  %v1791_v6 = vsel %vm1319_vm2, %v8400_v47, 0.0 }
 0x567   : > { %v8406_v0 = vpop.eup %6953 }
 0x568   : > { %1390 = vadd.xlane.f32.xlu0 %v1389_v28  ;;  %v1788_v23 = vsel %vm1319_vm2, %v8406_v0, 0.0 }
 0x569   : > { %1387 = vadd.xlane.f32.xlu1 %v1386_v24 }
 0x56c   : > { %1792 = vadd.xlane.f32.xlu0 %v1791_v6 }
 0x570   : > { %1789 = vadd.xlane.f32.xlu0 %v1788_v23 }
 0x57a   : > { %6848 = vrot.lane.b32.xlu1 %v6847_v36, %s7506_s19  ;;  %v2980_v36 = vld [vmem:[#allocation10 + $0x1b0] sm:$0xff] }
 0x57b   : > { %5960 = vmatprep.mubr.msk.f32.mxu0 %vm1319_vm2, %v2980_v36 }
 0x57c   : > { %5961 = vmatmul.mubr.msk.f32.gmra.mrb[54].mxu0 %vm1319_vm2, %v2981_v18 }
 0x57d   : > { %6007 = vmatprep.mubr.msk.f32.mxu0 %vm1319_vm2, %v3292_v19 }
 0x57e   : > { %6853 = vrot.lane.b32.xlu1 %v6852_v21, %s7506_s19  ;;  %v3294_v21 = vld [vmem:[#allocation10 + $0x210] sm:$0xff] }
 0x580   : > { %6008 = vmatmul.mubr.msk.f32.vlgmr.msra.gmra.mrb[56].mxu0 %vm1319_vm2, %v3293_v49 }
 0x581   : > { %6010 = vmatprep.mubr.msk.f32.mxu0 %vm1319_vm2, %v3294_v21 }
 0x584   : > { %6011 = vmatmul.mubr.msk.f32.gmra.mrb[58].mxu0 %vm1319_vm2, %v3295_v56 }
 0x585   : > { %6013 = vmatprep.mubr.msk.f32.mxu0 %vm1319_vm2, %v3296_v54 }
 0x586   : > { %6843 = vrot.lane.b32.xlu0 %v6842_v48, %s7506_s19 }
 0x588   : > { %6014 = vmatmul.mubr.msk.f32.gmra.mrb[60].mxu0 %vm1319_vm2, %v3297_v4 }
 0x589   : > { %6016 = vmatprep.mubr.msk.f32.mxu0 %vm1319_vm2, %v3298_v5 }
 0x5cc   : > { %v1373_v9 = vpop.xlane.xlu0 %1372 }
 0x5cd   : > { %6955 = vrcp.f32 %v1373_v9  ;;  %v1370_v22 = vpop.xlane.xlu1 %1369 }
 0x5ce   : > { %6957 = vrcp.f32 %v1370_v22 }
 0x5d7   : > { %v6956_v48 = vpop.eup %6955 }
 0x5d8   : > { %v6958_v53 = vpop.eup %6957  ;;  %v1401_v11 = vmul.f32 %v6956_v48, %v8332_v44  ;;  %v3299_v44 = vld [vmem:[#allocation10 + $0x238] sm:$0xff] }
 0x5d9   : > { %v1400_v7 = vmul.f32 %v6958_v53, %v8334_v62  ;;  %6017 = vmatmul.mubr.msk.f32.gmra.mrb[62].mxu0 %vm1319_vm2, %v3299_v44 }
 0x5da   : > { %3710 = vmatprep.mubr.f32.mxu0 %v9366_v32  ;;  %v3472_v32 = vld [vmem:[#allocation11 + $0x30] sm:$0xff] }
 0x5db   : > { %5699 = vmatprep.mubr.msk.f32.mxu1 %vm1319_vm2, %v1400_v7  ;;  %v6523_v50 = vpack.c.bf16 %v3473_v60, %v3472_v32 }
 0x5dc   : > { %5700 = vmatmul.mubr.msk.f32.vlgmr.msra.gmra.mrb[24].mxu1 %vm1319_vm2, %v1401_v11 }
 0x5dd   : > { %6354 = vmatpush3.bf16.msra.mxu1 %v6351_v8 }
 0x5e1   : > { %v1775_v62 = vpop.xlane.xlu0 %1774 }
 0x5e2   : > { %v1772_v59 = vpop.xlane.xlu1 %1771 }
 0x5e5   : > { %v1379_v43 = vpop.xlane.xlu0 %1378 }
 0x5e6   : > { %6959 = vrcp.f32 %v1379_v43  ;;  %v1376_v63 = vpop.xlane.xlu1 %1375 }
 0x5e7   : > { %6961 = vrcp.f32 %v1376_v63 }
 0x5e9   : > { %v1781_v8 = vpop.xlane.xlu0 %1780 }
 0x5ea   : > { %v1778_v57 = vpop.xlane.xlu1 %1777 }
 0x5ed   : > { %v1385_v12 = vpop.xlane.xlu0 %1384 }
 0x5ee   : > { %6963 = vrcp.f32 %v1385_v12  ;;  %v1382_v28 = vpop.xlane.xlu1 %1381 }
 0x5ef   : > { %6965 = vrcp.f32 %v1382_v28 }
 0x5f0   : > { %v6960_v24 = vpop.eup %6959  ;;  %6967 = vrcp.f32 %v1772_v59 }
 0x5f1   : > { %v6962_v6 = vpop.eup %6961  ;;  %v1787_v23 = vpop.xlane.xlu0 %1786  ;;  %v1403_v9 = vmul.f32 %v6960_v24, %v8357_v41 }
 0x5f2   : > { %v1784_v45 = vpop.xlane.xlu1 %1783  ;;  %v1402_v1 = vmul.f32 %v6962_v6, %v8361_v42 }
 0x5f4   : > { %5702 = vmatprep.mubr.msk.f32.mxu1 %vm1319_vm2, %v1402_v1  ;;  %v2182_v1 = vld [vmem:[#allocation10 + $0x58] sm:$0xff] }
 0x5f5   : > { %5703 = vmatmul.mubr.msk.f32.gmra.mrb[26].mxu1 %vm1319_vm2, %v1403_v9  ;;  %v1391_v22 = vpop.xlane.xlu0 %1390 }
 0x5f6   : > { %6969 = vrcp.f32 %v1391_v22  ;;  %v1388_v29 = vpop.xlane.xlu1 %1387  ;;  %v2184_v22 = vld [vmem:[#allocation10 + $0x68] sm:$0xff] }
 0x5f7   : > { %6971 = vrcp.f32 %v1388_v29  ;;  %v2185_v29 = vld [vmem:[#allocation10 + $0x70] sm:$0xff] }
 0x5f8   : > { %v6964_v30 = vpop.eup %6963  ;;  %6973 = vrcp.f32 %v1775_v62 }
 0x5f9   : > { %v6966_v36 = vpop.eup %6965  ;;  %v1793_v18 = vpop.xlane.xlu0 %1792  ;;  %v1405_v19 = vmul.f32 %v6964_v30, %v8376_v38  ;;  %6975 = vrcp.f32 %v1778_v57  ;;  %v2186_v30 = vld [vmem:[#allocation10 + $0x78] sm:$0xff] }
 0x5fa   : > { %v1404_v48 = vmul.f32 %v6966_v36, %v8380_v3  ;;  %v6849_v41 = vpop.permute.xlu1 %6848  ;;  %v6968_v49 = vpop.eup %6967  ;;  %6977 = vrcp.f32 %v1781_v8  ;;  %v2497_v36 = vld [vmem:[#allocation10 + $0xc0] sm:$0xff] }
 0x5fb   : > { %v6851_v7 = vunpack.i.h.bf16 %v6849_v41  ;;  %v6850_v54 = vunpack.i.l.bf16 %v6849_v41  ;;  %v1802_v44 = vmul.f32 %v6968_v49, %v8353_v27  ;;  %6979 = vrcp.f32 %v1784_v45  ;;  %v2501_v41 = vld [vmem:[#allocation10 + $0xe0] sm:$0xff]  ;;  %v2503_v49 = vld [vmem:[#allocation10 + $0xf0] sm:$0xff] }
 0x5fc   : > { %5705 = vmatprep.mubr.msk.f32.mxu1 %vm1319_vm2, %v1404_v48  ;;  %6981 = vrcp.f32 %v1787_v23  ;;  %v2500_v48 = vld [vmem:[#allocation10 + $0xd8] sm:$0xff] }
 0x5fd   : > { %5706 = vmatmul.mubr.msk.f32.gmra.mrb[28].mxu1 %vm1319_vm2, %v1405_v19  ;;  %v1790_v42 = vpop.xlane.xlu0 %1789  ;;  %v6359_v43 = vpack.c.bf16 %v6851_v7, %v6850_v54  ;;  %v2499_v19 = vld [vmem:[#allocation10 + $0xd0] sm:$0xff]  ;;  %v2816_v7 = vld [vmem:[#allocation10 + $0x148] sm:$0xff]  ;;  %v2819_v54 = vld [vmem:[#allocation10 + $0x160] sm:$0xff] }
 0x5fe   : > { %v6854_v3 = vpop.permute.xlu1 %6853  ;;  %6983 = vrcp.f32 %v1790_v42  ;;  %v2502_v42 = vld [vmem:[#allocation10 + $0xe8] sm:$0xff] }
 0x5ff   : > { %v6856_v63 = vunpack.i.h.bf16 %v6854_v3  ;;  %v6855_v12 = vunpack.i.l.bf16 %v6854_v3  ;;  %6985 = vrcp.f32 %v1793_v18  ;;  %v2498_v18 = vld [vmem:[#allocation10 + $0xc8] sm:$0xff]  ;;  %v3135_v3 = vld [vmem:[#allocation10 + $0x1d0] sm:$0xff] }
 0x600   : > { %v6970_v53 = vpop.eup %6969 }
 0x601   : > { %v6972_v21 = vpop.eup %6971  ;;  %v6844_v11 = vpop.permute.xlu0 %6843  ;;  %v1407_v56 = vmul.f32 %v6970_v53, %v8392_v34  ;;  %v6363_v34 = vpack.c.bf16 %v6856_v63, %v6855_v12  ;;  %v2504_v53 = vld [vmem:[#allocation10 + $0xf8] sm:$0xff] }
 0x602   : > { %v6846_v4 = vunpack.i.h.bf16 %v6844_v11  ;;  %v6845_v5 = vunpack.i.l.bf16 %v6844_v11  ;;  %v1406_v38 = vmul.f32 %v6972_v21, %v8396_v15  ;;  %v6974_v15 = vpop.eup %6973  ;;  %v2815_v21 = vld [vmem:[#allocation10 + $0x140] sm:$0xff]  ;;  %v2817_v11 = vld [vmem:[#allocation10 + $0x150] sm:$0xff]  ;;  %v8533_v63 = vpop.f32.mrb[24].mxu0 }
 0x603   : > { %v6976_v62 = vpop.eup %6975  ;;  %v1803_v27 = vmul.f32 %v6974_v15, %v8350_v39  ;;  %v8535_v12 = vpop.f32.mrb[25].mxu0 }
 0x604   : > { %v6355_v59 = vpack.c.bf16 %v6846_v4, %v6845_v5  ;;  %5708 = vmatprep.mubr.msk.f32.mxu1 %vm1319_vm2, %v1406_v38  ;;  %v6978_v57 = vpop.eup %6977  ;;  %v1804_v28 = vmul.f32 %v6976_v62, %v8372_v61  ;;  %v2820_v4 = vld [vmem:[#allocation10 + $0x168] sm:$0xff]  ;;  %v2821_v5 = vld [vmem:[#allocation10 + $0x170] sm:$0xff]  ;;  %v3133_v38 = vld [vmem:[#allocation10 + $0x1c0] sm:$0xff] }
 0x605   : > { %5709 = vmatmul.mubr.msk.f32.gmra.mrb[30].mxu1 %vm1319_vm2, %v1407_v56  ;;  %v6980_v8 = vpop.eup %6979  ;;  %v1805_v24 = vmul.f32 %v6978_v57, %v8367_v58  ;;  %v2818_v56 = vld [vmem:[#allocation10 + $0x158] sm:$0xff] }
 0x606   : > { %5755 = vmatprep.mubr.msk.f32.mxu1 %vm1319_vm2, %v1802_v44  ;;  %6356 = vmatprep.subr.bf16.mxu1 %v6355_v59  ;;  %v6982_v6 = vpop.eup %6981  ;;  %v1806_v23 = vmul.f32 %v6980_v8, %v8388_v17  ;;  %v2179_v17 = vld [vmem:[#allocation10 + $0x40] sm:$0xff]  ;;  %v3138_v44 = vld [vmem:[#allocation10 + $0x1e8] sm:$0xff] }
 0x607   : > { %6358 = vmatpush3.bf16.msra.mxu1 %v6355_v59  ;;  %v1807_v61 = vmul.f32 %v6982_v6, %v8384_v25  ;;  %v2180_v25 = vld [vmem:[#allocation10 + $0x48] sm:$0xff]  ;;  %v3136_v59 = vld [vmem:[#allocation10 + $0x1d8] sm:$0xff] }
 0x608   : > { %6360 = vmatprep.subr.bf16.mxu1 %v6359_v43  ;;  %v6984_v39 = vpop.eup %6983 }
 0x609   : > { %v6986_v9 = vpop.eup %6985  ;;  %v1808_v45 = vmul.f32 %v6984_v39, %v8406_v0  ;;  %v2181_v0 = vld [vmem:[#allocation10 + $0x50] sm:$0xff] }
 0x60a   : > { %v1809_v58 = vmul.f32 %v6986_v9, %v8400_v47  ;;  %v2183_v47 = vld [vmem:[#allocation10 + $0x60] sm:$0xff] }
 0x60b   : > { %6362 = vmatpush3.bf16.msra.mxu1 %v6359_v43  ;;  %v3139_v43 = vld [vmem:[#allocation10 + $0x1f0] sm:$0xff] }
 0x60c   : > { %6364 = vmatprep.subr.bf16.mxu1 %v6363_v34 }
 0x60f   : > { %6366 = vmatpush3.bf16.msra.mxu1 %v6363_v34  ;;  %v8537_v34 = vpop.f32.mrb[26].mxu0 }
 0x610   : > { %6384 = vmatprep.subr.bf16.mxu1 %v8067_v10  ;;  %v8539_v15 = vpop.f32.mrb[27].mxu0 }
 0x611   : > { %v8541_v62 = vpop.f32.mrb[28].mxu0 }
 0x612   : > { %5756 = vmatmul.mubr.msk.f32.vlgmr.msra.gmra.mrb[32].mxu1 %vm1319_vm2, %v1803_v27  ;;  %v8543_v27 = vpop.f32.mrb[29].mxu0 }
 0x613   : > { %5758 = vmatprep.mubr.msk.f32.mxu1 %vm1319_vm2, %v1804_v28  ;;  %6386 = vmatpush3.bf16.msra.mxu1 %v8067_v10  ;;  %v8545_v57 = vpop.f32.mrb[30].mxu0 }
 0x614   : > { %6388 = vmatprep.subr.bf16.mxu1 %v8084_v51  ;;  %v8547_v28 = vpop.f32.mrb[31].mxu0 }
 0x615   : > { %v8549_v8 = vpop.f32.mrb[32].mxu0 }
 0x616   : > { %5759 = vmatmul.mubr.msk.f32.gmra.mrb[34].mxu1 %vm1319_vm2, %v1805_v24  ;;  %v8551_v24 = vpop.f32.mrb[33].mxu0 }
 0x617   : > { %5761 = vmatprep.mubr.msk.f32.mxu1 %vm1319_vm2, %v1806_v23  ;;  %6390 = vmatpush3.bf16.msra.mxu1 %v8084_v51  ;;  %v8553_v6 = vpop.f32.mrb[34].mxu0 }
 0x618   : > { %6392 = vmatprep.subr.bf16.mxu1 %v8101_v40  ;;  %v8555_v23 = vpop.f32.mrb[35].mxu0 }
 0x619   : > { %v8557_v39 = vpop.f32.mrb[36].mxu0 }
 0x61a   : > { %5762 = vmatmul.mubr.msk.f32.gmra.mrb[36].mxu1 %vm1319_vm2, %v1807_v61  ;;  %v8559_v61 = vpop.f32.mrb[37].mxu0 }
 0x61b   : > { %5764 = vmatprep.mubr.msk.f32.mxu1 %vm1319_vm2, %v1808_v45  ;;  %6394 = vmatpush3.bf16.msra.mxu1 %v8101_v40  ;;  %v8561_v9 = vpop.f32.mrb[38].mxu0 }
 0x61c   : > { %6396 = vmatprep.subr.bf16.mxu1 %v8118_v55  ;;  %v8563_v45 = vpop.f32.mrb[39].mxu0 }
 0x61e   : > { %5765 = vmatmul.mubr.msk.f32.gmra.mrb[38].mxu1 %vm1319_vm2, %v1809_v58  ;;  %v8565_v58 = vpop.f32.mrb[40].mxu0 }
 0x61f   : > { %6398 = vmatpush3.bf16.msra.mxu1 %v8118_v55  ;;  %5811 = vmatprep.mubr.msk.f32.mxu1 %vm1319_vm2, %v2179_v17  ;;  %v8567_v17 = vpop.f32.mrb[41].mxu0 }
 0x620   : > { %6416 = vmatprep.subr.bf16.mxu1 %v8067_v10 }
 0x622   : > { %5812 = vmatmul.mubr.msk.f32.vlgmr.msra.gmra.mrb[40].mxu1 %vm1319_vm2, %v2180_v25  ;;  %v8569_v25 = vpop.f32.mrb[42].mxu0 }
 0x623   : > { %6418 = vmatpush3.bf16.msra.mxu1 %v8067_v10  ;;  %5814 = vmatprep.mubr.msk.f32.mxu1 %vm1319_vm2, %v2181_v0  ;;  %v8571_v0 = vpop.f32.mrb[43].mxu0 }
 0x624   : > { %6420 = vmatprep.subr.bf16.mxu1 %v8084_v51 }
 0x626   : > { %5815 = vmatmul.mubr.msk.f32.gmra.mrb[42].mxu1 %vm1319_vm2, %v2182_v1  ;;  %v8573_v1 = vpop.f32.mrb[44].mxu0 }
 0x627   : > { %6422 = vmatpush3.bf16.msra.mxu1 %v8084_v51  ;;  %5817 = vmatprep.mubr.msk.f32.mxu1 %vm1319_vm2, %v2183_v47  ;;  %v8575_v47 = vpop.f32.mrb[45].mxu0 }
 0x628   : > { %6424 = vmatprep.subr.bf16.mxu1 %v8101_v40 }
 0x62a   : > { %5818 = vmatmul.mubr.msk.f32.gmra.mrb[44].mxu1 %vm1319_vm2, %v2184_v22  ;;  %v8577_v22 = vpop.f32.mrb[46].mxu0 }
 0x62b   : > { %6426 = vmatpush3.bf16.msra.mxu1 %v8101_v40  ;;  %5820 = vmatprep.mubr.msk.f32.mxu1 %vm1319_vm2, %v2185_v29  ;;  %v8579_v29 = vpop.f32.mrb[47].mxu0 }
 0x62c   : > { %6428 = vmatprep.subr.bf16.mxu1 %v8118_v55 }
 0x62e   : > { %5821 = vmatmul.mubr.msk.f32.gmra.mrb[46].mxu1 %vm1319_vm2, %v2186_v30  ;;  %v8581_v30 = vpop.f32.mrb[48].mxu0 }
 0x62f   : > { %6430 = vmatpush3.bf16.msra.mxu1 %v8118_v55  ;;  %5867 = vmatprep.mubr.msk.f32.mxu1 %vm1319_vm2, %v2497_v36  ;;  %v8583_v36 = vpop.f32.mrb[49].mxu0 }
 0x630   : > { %6448 = vmatprep.subr.bf16.mxu1 %v8067_v10 }
 0x632   : > { %5868 = vmatmul.mubr.msk.f32.vlgmr.msra.gmra.mrb[48].mxu1 %vm1319_vm2, %v2498_v18  ;;  %v8585_v18 = vpop.f32.mrb[50].mxu0 }
 0x633   : > { %6450 = vmatpush3.bf16.msra.mxu1 %v8067_v10  ;;  %5870 = vmatprep.mubr.msk.f32.mxu1 %vm1319_vm2, %v2499_v19  ;;  %v8587_v19 = vpop.f32.mrb[51].mxu0 }
 0x634   : > { %6452 = vmatprep.subr.bf16.mxu1 %v8084_v51 }
 0x636   : > { %5871 = vmatmul.mubr.msk.f32.gmra.mrb[50].mxu1 %vm1319_vm2, %v2500_v48  ;;  %v8589_v48 = vpop.f32.mrb[52].mxu0 }
 0x637   : > { %6454 = vmatpush3.bf16.msra.mxu1 %v8084_v51  ;;  %5873 = vmatprep.mubr.msk.f32.mxu1 %vm1319_vm2, %v2501_v41  ;;  %v8591_v41 = vpop.f32.mrb[53].mxu0 }
 0x638   : > { %6456 = vmatprep.subr.bf16.mxu1 %v8101_v40 }
 0x63a   : > { %5874 = vmatmul.mubr.msk.f32.gmra.mrb[52].mxu1 %vm1319_vm2, %v2502_v42 }
 0x63b   : > { %6458 = vmatpush3.bf16.msra.mxu1 %v8101_v40  ;;  %5876 = vmatprep.mubr.msk.f32.mxu1 %vm1319_vm2, %v2503_v49 }
 0x63c   : > { %6460 = vmatprep.subr.bf16.mxu1 %v8118_v55 }
 0x63e   : > { %5877 = vmatmul.mubr.msk.f32.gmra.mrb[54].mxu1 %vm1319_vm2, %v2504_v53 }
 0x63f   : > { %6462 = vmatpush3.bf16.msra.mxu1 %v8118_v55  ;;  %5923 = vmatprep.mubr.msk.f32.mxu1 %vm1319_vm2, %v2815_v21 }
 0x640   : > { %6480 = vmatprep.subr.bf16.mxu1 %v8067_v10 }
 0x642   : > { %5924 = vmatmul.mubr.msk.f32.vlgmr.msra.gmra.mrb[56].mxu1 %vm1319_vm2, %v2816_v7 }
 0x643   : > { %6482 = vmatpush3.bf16.msra.mxu1 %v8067_v10  ;;  %5926 = vmatprep.mubr.msk.f32.mxu1 %vm1319_vm2, %v2817_v11  ;;  %v2822_v10 = vld [vmem:[#allocation10 + $0x178] sm:$0xff] }
 0x644   : > { %6484 = vmatprep.subr.bf16.mxu1 %v8084_v51 }
 0x646   : > { %5927 = vmatmul.mubr.msk.f32.gmra.mrb[58].mxu1 %vm1319_vm2, %v2818_v56 }
 0x647   : > { %6486 = vmatpush3.bf16.msra.mxu1 %v8084_v51  ;;  %5929 = vmatprep.mubr.msk.f32.mxu1 %vm1319_vm2, %v2819_v54  ;;  %v3134_v51 = vld [vmem:[#allocation10 + $0x1c8] sm:$0xff] }
 0x648   : > { %6488 = vmatprep.subr.bf16.mxu1 %v8101_v40 }
 0x64a   : > { %5930 = vmatmul.mubr.msk.f32.gmra.mrb[60].mxu1 %vm1319_vm2, %v2820_v4 }
 0x64b   : > { %6490 = vmatpush3.bf16.msra.mxu1 %v8101_v40  ;;  %5932 = vmatprep.mubr.msk.f32.mxu1 %vm1319_vm2, %v2821_v5  ;;  %v3137_v40 = vld [vmem:[#allocation10 + $0x1e0] sm:$0xff] }
 0x64c   : > { %6492 = vmatprep.subr.bf16.mxu1 %v8118_v55 }
 0x64e   : > { %5933 = vmatmul.mubr.msk.f32.gmra.mrb[62].mxu1 %vm1319_vm2, %v2822_v10  ;;  %v3466_v10 = vld [vmem:[#allocation11] sm:$0xff] }
 0x64f   : > { %6494 = vmatpush3.bf16.msra.mxu1 %v8118_v55  ;;  %5979 = vmatprep.mubr.msk.f32.mxu1 %vm1319_vm2, %v3133_v38  ;;  %v3140_v55 = vld [vmem:[#allocation10 + $0x1f8] sm:$0xff]  ;;  %v8593_v42 = vpop.f32.mrb[54].mxu0  ;;  %v3467_v38 = vld [vmem:[#allocation11 + $0x8] sm:$0xff] }
 0x650   : > { %v8595_v49 = vpop.f32.mrb[55].mxu0 }
 0x652   : > { %5980 = vmatmul.mubr.msk.f32.vlgmr.msra.gmra.mrb[64].mxu1 %vm1319_vm2, %v3134_v51  ;;  %v3468_v51 = vld [vmem:[#allocation11 + $0x10] sm:$0xff] }
 0x653   : > { %5982 = vmatprep.mubr.msk.f32.mxu1 %vm1319_vm2, %v3135_v3  ;;  %v8597_v53 = vpop.f32.mrb[56].mxu0  ;;  %v6511_v3 = vpack.c.bf16 %v3467_v38, %v3466_v10  ;;  %v6527_v10 = vpack.c.bf16 %v3475_v37, %v3474_v31  ;;  %v3476_v37 = vld [vmem:[#allocation11 + $0x50] sm:$0xff]  ;;  %v3477_v31 = vld [vmem:[#allocation11 + $0x58] sm:$0xff] }
 0x654   : > { %v8599_v21 = vpop.f32.mrb[57].mxu0 }
 0x655   : > { %6512 = vmatprep.subr.bf16.mxu1 %v6511_v3 }
 0x656   : > { %5983 = vmatmul.mubr.msk.f32.gmra.mrb[66].mxu1 %vm1319_vm2, %v3136_v59  ;;  %v3469_v59 = vld [vmem:[#allocation11 + $0x18] sm:$0xff] }
 0x657   : > { %5985 = vmatprep.mubr.msk.f32.mxu1 %vm1319_vm2, %v3137_v40  ;;  %v8603_v56 = vpop.f32.mrb[58].mxu0  ;;  %6514 = vmatpush3.bf16.msra.mxu1 %v6511_v3 }
 0x658   : > { %v8605_v54 = vpop.f32.mrb[59].mxu0 }
 0x65a   : > { %5986 = vmatmul.mubr.msk.f32.gmra.mrb[68].mxu1 %vm1319_vm2, %v3138_v44  ;;  %v6515_v44 = vpack.c.bf16 %v3469_v59, %v3468_v51 }
 0x65b   : > { %5988 = vmatprep.mubr.msk.f32.mxu1 %vm1319_vm2, %v3139_v43  ;;  %v8607_v4 = vpop.f32.mrb[60].mxu0  ;;  %v3470_v43 = vld [vmem:[#allocation11 + $0x20] sm:$0xff] }
 0x65c   : > { %v8609_v5 = vpop.f32.mrb[61].mxu0  ;;  %6516 = vmatprep.subr.bf16.mxu1 %v6515_v44 }
 0x65d   : > { %6518 = vmatpush3.bf16.msra.mxu1 %v6515_v44  ;;  %v3478_v44 = vld [vmem:[#allocation11 + $0x60] sm:$0xff] }
 0x65e   : > { %5989 = vmatmul.mubr.msk.f32.gmra.mrb[70].mxu1 %vm1319_vm2, %v3140_v55  ;;  %v3471_v55 = vld [vmem:[#allocation11 + $0x28] sm:$0xff] }
 0x6ac   : > { %v8611_v40 = vpop.f32.mrb[62].mxu0 }
 0x6af   : > { %v5701_v7 = vpop.f32.mrb[24].mxu1 }
 0x6b0   : > { %1538 = vst.msk [vmem:[#allocation2 + $0x8] sm:$0xff] %vm1319_vm2, %v5701_v7  ;;  %v1498_v11 = vpop.f32.mrb[25].mxu1  ;;  %v8613_v7 = vpop.f32.mrb[63].mxu0 }
 0x6b1   : > { %1537 = vst.msk [vmem:[#allocation2] sm:$0xff] %vm1319_vm2, %v1498_v11  ;;  %v6519_v11 = vpack.c.bf16 %v3471_v55, %v3470_v43  ;;  %v3479_v43 = vld [vmem:[#allocation11 + $0x68] sm:$0xff] }
 0x6b2   : > { %v6535_v55 = vpack.c.bf16 %v3479_v43, %v3478_v44 }
 0x6b3   : > { %6520 = vmatprep.subr.bf16.mxu1 %v6519_v11 }
 0x6b4   : > { %6522 = vmatpush3.bf16.msra.mxu1 %v6519_v11  ;;  %v3480_v11 = vld [vmem:[#allocation11 + $0x70] sm:$0xff] }
 0x6b5   : > { %6524 = vmatprep.subr.bf16.mxu1 %v6523_v50 }
 0x6b8   : > { %6526 = vmatpush3.bf16.msra.mxu1 %v6523_v50  ;;  %v6531_v50 = vpack.c.bf16 %v3477_v31, %v3476_v37 }
 0x6b9   : > { %6528 = vmatprep.subr.bf16.mxu1 %v6527_v10 }
 0x6bc   : > { %6530 = vmatpush3.bf16.msra.mxu1 %v6527_v10  ;;  %v3481_v10 = vld [vmem:[#allocation11 + $0x78] sm:$0xff] }
 0x6bd   : > { %6532 = vmatprep.subr.bf16.mxu1 %v6531_v50 }
 0x6c0   : > { %6534 = vmatpush3.bf16.msra.mxu1 %v6531_v50  ;;  %v5208_v50 = vld [vmem:[%s9343_s6] ss:$0 sm:$0xff] }
 0x6c1   : > { %6536 = vmatprep.subr.bf16.mxu1 %v6535_v55  ;;  %v2163_v43 = vmul.f32 %v8533_v63, %v5208_v50  ;;  %v5226_v63 = vld [vmem:[%s9343_s6 + $0x2] ss:$0 sm:$0xff]  ;;  %v2167_v14 = vmul.f32 %v8541_v62, %v5208_v50 }
 0x6c2   : > { %v2483_v20 = vmul.f32 %v8553_v6, %v5226_v63 }
 0x6c4   : > { %6538 = vmatpush3.bf16.msra.mxu1 %v6535_v55 }
 0x6c8   : > { %v5704_v38 = vpop.f32.mrb[26].mxu1 }
 0x6c9   : > { %1540 = vst.msk [vmem:[#allocation2 + $0x18] sm:$0xff] %vm1319_vm2, %v5704_v38  ;;  %v1508_v51 = vpop.f32.mrb[27].mxu1  ;;  %v6539_v38 = vpack.c.bf16 %v3481_v10, %v3480_v11  ;;  %v2162_v11 = vmul.f32 %v5208_v50, %v8535_v12 }
 0x6ca   : > { %1539 = vst.msk [vmem:[#allocation2 + $0x10] sm:$0xff] %vm1319_vm2, %v1508_v51 }
 0x6cb   : > { %6540 = vmatprep.subr.bf16.mxu1 %v6539_v38 }
 0x6cc   : > { %6542 = vmatpush3.bf16.msra.mxu1 %v6539_v38  ;;  %v5217_v38 = vld [vmem:[%s9343_s6 + $0x1] ss:$0 sm:$0xff] }
 0x6d0   : > { %v5707_v3 = vpop.f32.mrb[28].mxu1 }
 0x6d1   : > { %1542 = vst.msk [vmem:[#allocation2 + $0x28] sm:$0xff] %vm1319_vm2, %v5707_v3  ;;  %v1518_v59 = vpop.f32.mrb[29].mxu1  ;;  %v3871_v3 = vld [vmem:[#allocation14 + $0x80] sm:$0xff] }
 0x6d2   : > { %1541 = vst.msk [vmem:[#allocation2 + $0x20] sm:$0xff] %vm1319_vm2, %v1518_v59  ;;  %v3872_v59 = vld [vmem:[#allocation14 + $0x88] sm:$0xff] }
 0x6d3   : > { %v6575_v35 = vpack.c.bf16 %v3872_v59, %v3871_v3  ;;  %v2165_v3 = vmul.f32 %v8537_v34, %v5208_v50  ;;  %v2166_v34 = vmul.f32 %v5208_v50, %v8543_v27 }
 0x6d5   : > { %6576 = vmatprep.subr.bf16.mxu1 %v6575_v35  ;;  %v5199_v35 = vld [vmem:[%s9344_s7] ss:$0 sm:$0xff] }
 0x6d6   : > { %v2170_v59 = vadd.f32 %v5199_v35, %v2162_v11  ;;  %v2173_v26 = vadd.f32 %v5199_v35, %v2165_v3  ;;  %v2174_v62 = vadd.f32 %v5199_v35, %v2166_v34 }
 0x6d8   : > { %v5710_v32 = vpop.f32.mrb[30].mxu1 }
 0x6d9   : > { %1544 = vst.msk [vmem:[#allocation2 + $0x38] sm:$0xff] %vm1319_vm2, %v5710_v32  ;;  %v1528_v60 = vpop.f32.mrb[31].mxu1 }
 0x6da   : > { %1543 = vst.msk [vmem:[#allocation2 + $0x30] sm:$0xff] %vm1319_vm2, %v1528_v60 }
 0x6e5   : > { %v5757_v51 = vpop.f32.mrb[32].mxu1 }
 0x6e6   : > { %v1932_v32 = vpop.f32.mrb[33].mxu1 }
 0x6e7   : > { %1979 = vrot.lane.b32.xlu1 %v1932_v32, %s7506_s19  ;;  %v2164_v32 = vmul.f32 %v5208_v50, %v8539_v15 }
 0x6e9   : > { %v5760_v60 = vpop.f32.mrb[34].mxu1 }
 0x6ea   : > { %v1942_v37 = vpop.f32.mrb[35].mxu1 }
 0x6eb   : > { %1981 = vrot.lane.b32.xlu1 %v5757_v51, %s7506_s19  ;;  %1983 = vrot.lane.b32.xlu0 %v1942_v37, %s7506_s19  ;;  %v2171_v51 = vadd.f32 %v5199_v35, %v2163_v43  ;;  %v2172_v43 = vadd.f32 %v5199_v35, %v2164_v32 }
 0x6ed   : > { %v5763_v31 = vpop.f32.mrb[36].mxu1 }
 0x6ee   : > { %v1952_v44 = vpop.f32.mrb[37].mxu1 }
 0x6ef   : > { %1985 = vrot.lane.b32.xlu1 %v5760_v60, %s7506_s19  ;;  %1987 = vrot.lane.b32.xlu0 %v1952_v44, %s7506_s19 }
 0x6f1   : > { %v5766_v55 = vpop.f32.mrb[38].mxu1 }
 0x6f2   : > { %v1962_v10 = vpop.f32.mrb[39].mxu1 }
 0x6f3   : > { %1989 = vrot.lane.b32.xlu1 %v5763_v31, %s7506_s19  ;;  %1991 = vrot.lane.b32.xlu0 %v1962_v10, %s7506_s19  ;;  %v2481_v31 = vmul.f32 %v8549_v8, %v5226_v63  ;;  %v2480_v10 = vmul.f32 %v5226_v63, %v8551_v24  ;;  %v2169_v24 = vmul.f32 %v8545_v57, %v5208_v50 }
 0x6f5   : > { %v5813_v12 = vpop.f32.mrb[40].mxu1 }
 0x6f6   : > { %v2322_v60 = vmul.f32 %v5813_v12, %v5217_v38  ;;  %v2277_v37 = vpop.f32.mrb[41].mxu1 }
 0x6f7   : > { %1993 = vrot.lane.b32.xlu1 %v5766_v55, %s7506_s19  ;;  %v2321_v44 = vmul.f32 %v5217_v38, %v2277_v37  ;;  %v2482_v55 = vmul.f32 %v5226_v63, %v8555_v23  ;;  %v2175_v37 = vadd.f32 %v5199_v35, %v2167_v14 }
 0x6f8   : > { %v2330_v52 = vadd.f32 %v2322_v60, %v2171_v51  ;;  %v2168_v51 = vmul.f32 %v5208_v50, %v8547_v28  ;;  %v2487_v50 = vmul.f32 %v8561_v9, %v5226_v63 }
 0x6f9   : > { %v2329_v11 = vadd.f32 %v2321_v44, %v2170_v59  ;;  %v5816_v46 = vpop.f32.mrb[42].mxu1  ;;  %v2484_v44 = vmul.f32 %v5226_v63, %v8559_v61  ;;  %v2486_v61 = vmul.f32 %v5226_v63, %v8563_v45 }
 0x6fa   : > { %v2324_v15 = vmul.f32 %v5816_v46, %v5217_v38  ;;  %v2489_v33 = vadd.f32 %v2481_v31, %v2330_v52  ;;  %v2287_v12 = vpop.f32.mrb[43].mxu1  ;;  %v2485_v52 = vmul.f32 %v8557_v39, %v5226_v63  ;;  %v2176_v14 = vadd.f32 %v5199_v35, %v2168_v51  ;;  %v8663_v39 = vld [vmem:[%s9343_s6 + $0x3] ss:$0 sm:$0xff] }
 0x6fb   : > { %v2323_v8 = vmul.f32 %v5217_v38, %v2287_v12  ;;  %v2488_v13 = vadd.f32 %v2480_v10, %v2329_v11  ;;  %v2177_v10 = vadd.f32 %v5199_v35, %v2169_v24  ;;  %v8669_v35 = vld [vmem:[%s9343_s6 + $0x4] ss:$0 sm:$0xff]  ;;  %v3603_v24 = vld [vmem:[#allocation13 + $0x8] sm:$0xff] }
 0x6fc   : > { %v2332_v3 = vadd.f32 %v2324_v15, %v2173_v26  ;;  %v2798_v51 = vmul.f32 %v8669_v35, %v8567_v17  ;;  %v2801_v17 = vmul.f32 %v8569_v25, %v8669_v35 }
 0x6fd   : > { %v2331_v32 = vadd.f32 %v2323_v8, %v2172_v43  ;;  %v5819_v27 = vpop.f32.mrb[44].mxu1 }
 0x6fe   : > { %v2326_v59 = vmul.f32 %v5819_v27, %v5217_v38  ;;  %v2491_v60 = vadd.f32 %v2483_v20, %v2332_v3  ;;  %v2297_v46 = vpop.f32.mrb[45].mxu1  ;;  %v3605_v3 = vld [vmem:[#allocation13 + $0x18] sm:$0xff]  ;;  %v3604_v27 = vld [vmem:[#allocation13 + $0x10] sm:$0xff] }
 0x6ff   : > { %v2325_v31 = vmul.f32 %v5217_v38, %v2297_v46  ;;  %v2490_v6 = vadd.f32 %v2482_v55, %v2331_v32  ;;  %v6543_v32 = vpack.c.bf16 %v3605_v3, %v3603_v24  ;;  %v3609_v46 = vld [vmem:[#allocation13 + $0x38] sm:$0xff] }
 0x700   : > { %v2334_v23 = vadd.f32 %v2326_v59, %v2175_v37  ;;  %v2799_v37 = vmul.f32 %v8565_v58, %v8669_v35  ;;  %v3607_v59 = vld [vmem:[#allocation13 + $0x28] sm:$0xff] }
 0x701   : > { %v2333_v11 = vadd.f32 %v2325_v31, %v2174_v62  ;;  %v5822_v57 = vpop.f32.mrb[46].mxu1  ;;  %v3602_v62 = vld [vmem:[#allocation13] sm:$0xff]  ;;  %v3611_v58 = vld [vmem:[#allocation13 + $0x48] sm:$0xff]  ;;  %6544 = vmatprep.subr.bf16.mxu0 %v6543_v32 }
 0x702   : > { %v2328_v26 = vmul.f32 %v5822_v57, %v5217_v38  ;;  %v8655_v34 = vadd.f32 %v2485_v52, %v2334_v23  ;;  %v2307_v28 = vpop.f32.mrb[47].mxu1  ;;  %v6545_v31 = vpack.c.bf16 %v3604_v27, %v3602_v62  ;;  %v3608_v23 = vld [vmem:[#allocation13 + $0x30] sm:$0xff]  ;;  %v3613_v57 = vld [vmem:[#allocation13 + $0x58] sm:$0xff] }
 0x703   : > { %v2327_v43 = vmul.f32 %v5217_v38, %v2307_v28  ;;  %v8658_v20 = vadd.f32 %v2484_v44, %v2333_v11  ;;  %v6547_v44 = vpack.c.bf16 %v3609_v46, %v3607_v59  ;;  %v3614_v59 = vld [vmem:[#allocation13 + $0x60] sm:$0xff]  ;;  %v3616_v46 = vld [vmem:[#allocation13 + $0x70] sm:$0xff] }
 0x704   : > { %v2336_v15 = vadd.f32 %v2328_v26, %v2177_v10  ;;  %v3606_v10 = vld [vmem:[#allocation13 + $0x20] sm:$0xff]  ;;  %6546 = vmatpush1.bf16.msra.mxu0 %v6545_v31  ;;  %v3619_v31 = vld [vmem:[#allocation13 + $0x88] sm:$0xff] }
 0x705   : > { %v2335_v12 = vadd.f32 %v2327_v43, %v2176_v14  ;;  %v5869_v8 = vpop.f32.mrb[48].mxu1  ;;  %v6549_v43 = vpack.c.bf16 %v3608_v23, %v3606_v10  ;;  %6548 = vmatprep.subr.bf16.mxu0 %v6547_v44  ;;  %v3621_v44 = vld [vmem:[#allocation13 + $0x98] sm:$0xff] }
 0x706   : > { %v8671_v55 = vadd.f32 %v2487_v50, %v2336_v15  ;;  %v2640_v9 = vmul.f32 %v5869_v8, %v8663_v39  ;;  %v2595_v38 = vpop.f32.mrb[49].mxu1  ;;  %v6551_v15 = vpack.c.bf16 %v3613_v57, %v3611_v58  ;;  %v3612_v8 = vld [vmem:[#allocation13 + $0x50] sm:$0xff] }
 0x707   : > { %v8676_v45 = vadd.f32 %v2486_v61, %v2335_v12  ;;  %v2639_v63 = vmul.f32 %v8663_v39, %v2595_v38  ;;  %v3610_v12 = vld [vmem:[#allocation13 + $0x40] sm:$0xff]  ;;  %v3615_v38 = vld [vmem:[#allocation13 + $0x68] sm:$0xff] }
 0x708   : > { %v2648_v52 = vadd.f32 %v2640_v9, %v2489_v33  ;;  %6550 = vmatpush1.bf16.msra.mxu0 %v6549_v43  ;;  %v6553_v32 = vpack.c.bf16 %v3612_v8, %v3610_v12  ;;  %v3620_v43 = vld [vmem:[#allocation13 + $0x90] sm:$0xff] }
 0x709   : > { %v2647_v14 = vadd.f32 %v2639_v63, %v2488_v13  ;;  %v5872_v11 = vpop.f32.mrb[50].mxu1  ;;  %v2800_v13 = vmul.f32 %v8669_v35, %v8571_v0  ;;  %6552 = vmatprep.subr.bf16.mxu0 %v6551_v15  ;;  %v3625_v15 = vld [vmem:[#allocation13 + $0xb8] sm:$0xff] }
 0x70a   : > { %v2642_v26 = vmul.f32 %v5872_v11, %v8663_v39  ;;  %v8682_v28 = vadd.f32 %v2799_v37, %v2648_v52  ;;  %v2605_v50 = vpop.f32.mrb[51].mxu1  ;;  %v3617_v37 = vld [vmem:[#allocation13 + $0x78] sm:$0xff]  ;;  %v2805_v11 = vmul.f32 %v8577_v22, %v8669_v35  ;;  %v6559_v22 = vpack.c.bf16 %v3621_v44, %v3619_v31 }
 0x70b   : > { %v2641_v33 = vmul.f32 %v8663_v39, %v2605_v50  ;;  %v8687_v61 = vadd.f32 %v2798_v51, %v2647_v14  ;;  %v2803_v51 = vmul.f32 %v8573_v1, %v8669_v35  ;;  %v8719_v50 = vld [vmem:[%s9343_s6 + $0x6] ss:$0 sm:$0xff] }
 0x70c   : > { %v2650_v9 = vadd.f32 %v2642_v26, %v2491_v60  ;;  %v2802_v60 = vmul.f32 %v8669_v35, %v8575_v47  ;;  %v8711_v47 = vld [vmem:[%s9343_s6 + $0x5] ss:$0 sm:$0xff]  ;;  %6554 = vmatpush1.bf16.msra.mxu0 %v6553_v32  ;;  %v3629_v32 = vld [vmem:[#allocation13 + $0xd8] sm:$0xff] }
 0x70d   : > { %v2649_v24 = vadd.f32 %v2641_v33, %v2490_v6  ;;  %v5875_v3 = vpop.f32.mrb[52].mxu1  ;;  %v6555_v6 = vpack.c.bf16 %v3617_v37, %v3615_v38 }
 0x70e   : > { %v2644_v25 = vmul.f32 %v5875_v3, %v8663_v39  ;;  %v8692_v62 = vadd.f32 %v2801_v17, %v2650_v9  ;;  %v2615_v63 = vpop.f32.mrb[53].mxu1  ;;  %v3618_v17 = vld [vmem:[#allocation13 + $0x80] sm:$0xff] }
 0x70f   : > { %v2643_v0 = vmul.f32 %v8663_v39, %v2615_v63  ;;  %v8697_v27 = vadd.f32 %v2800_v13, %v2649_v24  ;;  %6556 = vmatprep.subr.bf16.mxu0 %v6555_v6  ;;  %v3623_v13 = vld [vmem:[#allocation13 + $0xa8] sm:$0xff]  ;;  %v6561_v38 = vpack.c.bf16 %v3620_v43, %v3618_v17  ;;  %v3120_v17 = vmul.f32 %v8719_v50, %v8591_v41  ;;  %v5271_v41 = vld [vmem:[%s9343_s6 + $0x7] ss:$0 sm:$0xff] }
 0x710   : > { %v2652_v52 = vadd.f32 %v2644_v25, %v8655_v34  ;;  %v6557_v34 = vpack.c.bf16 %v3616_v46, %v3614_v59  ;;  %v6563_v3 = vpack.c.bf16 %v3625_v15, %v3623_v13  ;;  %v3622_v25 = vld [vmem:[#allocation13 + $0xa0] sm:$0xff]  ;;  %v3119_v46 = vmul.f32 %v8585_v18, %v8719_v50 }
 0x711   : > { %v2651_v10 = vadd.f32 %v2643_v0, %v8658_v20  ;;  %v5878_v1 = vpop.f32.mrb[54].mxu1  ;;  %v2804_v20 = vmul.f32 %v8669_v35, %v8579_v29  ;;  %v3117_v35 = vmul.f32 %v8581_v30, %v8719_v50 }
 0x712   : > { %v2646_v23 = vmul.f32 %v5878_v1, %v8663_v39  ;;  %v8704_v58 = vadd.f32 %v2803_v51, %v2652_v52  ;;  %v2625_v14 = vpop.f32.mrb[55].mxu1  ;;  %6558 = vmatpush1.bf16.msra.mxu0 %v6557_v34  ;;  %v3627_v51 = vld [vmem:[#allocation13 + $0xc8] sm:$0xff] }
 0x713   : > { %v2645_v57 = vmul.f32 %v8663_v39, %v2625_v14  ;;  %v2810_v26 = vadd.f32 %v2802_v60, %v2651_v10  ;;  %6560 = vmatprep.subr.bf16.mxu0 %v6559_v22  ;;  %v6567_v44 = vpack.c.bf16 %v3629_v32, %v3627_v51  ;;  %v3626_v10 = vld [vmem:[#allocation13 + $0xc0] sm:$0xff] }
 0x714   : > { %v2654_v33 = vadd.f32 %v2646_v23, %v8671_v55  ;;  %v3116_v55 = vmul.f32 %v8719_v50, %v8583_v36 }
 0x715   : > { %v2653_v12 = vadd.f32 %v2645_v57, %v8676_v45  ;;  %v5925_v39 = vpop.f32.mrb[56].mxu1  ;;  %v3624_v45 = vld [vmem:[#allocation13 + $0xb0] sm:$0xff]  ;;  %v3121_v57 = vmul.f32 %v8589_v48, %v8719_v50  ;;  %v3123_v48 = vmul.f32 %v8593_v42, %v8719_v50 }
 0x716   : > { %v2813_v8 = vadd.f32 %v2805_v11, %v2654_v33  ;;  %v2958_v9 = vmul.f32 %v5925_v39, %v8711_v47  ;;  %v2913_v29 = vpop.f32.mrb[57].mxu1  ;;  %6562 = vmatpush1.bf16.msra.mxu0 %v6561_v38  ;;  %v6565_v36 = vpack.c.bf16 %v3624_v45, %v3622_v25 }
 0x717   : > { %v2812_v37 = vadd.f32 %v2804_v20, %v2653_v12  ;;  %v2957_v24 = vmul.f32 %v8711_v47, %v2913_v29  ;;  %6564 = vmatprep.subr.bf16.mxu0 %v6563_v3 }
 0x718   : > { %v2966_v63 = vadd.f32 %v2958_v9, %v8682_v28  ;;  %v3118_v28 = vmul.f32 %v8719_v50, %v8587_v19 }
 0x719   : > { %v2965_v0 = vadd.f32 %v2957_v24, %v8687_v61  ;;  %v5928_v60 = vpop.f32.mrb[58].mxu1  ;;  %v3628_v61 = vld [vmem:[#allocation13 + $0xd0] sm:$0xff] }
 0x71a   : > { %v2960_v30 = vmul.f32 %v5928_v60, %v8711_v47  ;;  %v3125_v6 = vadd.f32 %v3117_v35, %v2966_v63  ;;  %v2923_v59 = vpop.f32.mrb[59].mxu1  ;;  %6566 = vmatpush1.bf16.msra.mxu0 %v6565_v36  ;;  %v6569_v20 = vpack.c.bf16 %v3628_v61, %v3626_v10 }
 0x71b   : > { %v2959_v52 = vmul.f32 %v8711_v47, %v2923_v59  ;;  %v3124_v31 = vadd.f32 %v3116_v55, %v2965_v0  ;;  %6568 = vmatprep.subr.bf16.mxu0 %v6567_v44 }
 0x71c   : > { %v2968_v1 = vadd.f32 %v2960_v30, %v8692_v62 }
 0x71d   : > { %v2967_v23 = vadd.f32 %v2959_v52, %v8697_v27  ;;  %v5931_v14 = vpop.f32.mrb[60].mxu1 }
 0x71e   : > { %v2962_v11 = vmul.f32 %v5931_v14, %v8711_v47  ;;  %v3127_v18 = vadd.f32 %v3119_v46, %v2968_v1  ;;  %v2933_v34 = vpop.f32.mrb[61].mxu1  ;;  %6570 = vmatpush1.bf16.msra.mxu0 %v6569_v20 }
 0x71f   : > { %v2961_v19 = vmul.f32 %v8711_v47, %v2933_v34  ;;  %v3126_v22 = vadd.f32 %v3118_v28, %v2967_v23 }
 0x720   : > { %v2970_v62 = vadd.f32 %v2962_v11, %v8704_v58  ;;  %v3122_v58 = vmul.f32 %v8719_v50, %v8595_v49 }
 0x721   : > { %v2969_v27 = vadd.f32 %v2961_v19, %v2810_v26  ;;  %v5934_v43 = vpop.f32.mrb[62].mxu1  ;;  %v5280_v26 = vld [vmem:[%s9343_s6 + $0x8] ss:$0 sm:$0xff] }
 0x722   : > { %v2964_v33 = vmul.f32 %v5934_v43, %v8711_v47  ;;  %v3129_v13 = vadd.f32 %v3121_v57, %v2970_v62  ;;  %v2943_v15 = vpop.f32.mrb[63].mxu1  ;;  %v3434_v25 = vmul.f32 %v5280_v26, %v8599_v21  ;;  %v3437_v0 = vmul.f32 %v8603_v56, %v5280_v26  ;;  %v3856_v43 = vld [vmem:[#allocation14 + $0x8] sm:$0xff] }
 0x723   : > { %v2963_v12 = vmul.f32 %v8711_v47, %v2943_v15  ;;  %v3128_v39 = vadd.f32 %v3120_v17, %v2969_v27  ;;  %v3435_v47 = vmul.f32 %v8597_v53, %v5280_v26  ;;  %v3436_v60 = vmul.f32 %v5280_v26, %v8605_v54  ;;  %v3855_v27 = vld [vmem:[#allocation14] sm:$0xff] }
 0x724   : > { %v2972_v9 = vadd.f32 %v2964_v33, %v2813_v8  ;;  %v3439_v21 = vmul.f32 %v8607_v4, %v5280_v26  ;;  %v3438_v28 = vmul.f32 %v5280_v26, %v8609_v5  ;;  %v3441_v54 = vmul.f32 %v8611_v40, %v5280_v26  ;;  %v3873_v33 = vld [vmem:[#allocation14 + $0x90] sm:$0xff] }
 0x725   : > { %v2971_v29 = vadd.f32 %v2963_v12, %v2812_v37  ;;  %v5981_v35 = vpop.f32.mrb[64].mxu1 }
 0x726   : > { %v3131_v38 = vadd.f32 %v3123_v48, %v2972_v9  ;;  %v3276_v42 = vmul.f32 %v5981_v35, %v5271_v41  ;;  %v3231_v24 = vpop.f32.mrb[65].mxu1  ;;  %v3858_v35 = vld [vmem:[#allocation14 + $0x18] sm:$0xff] }
 0x727   : > { %v3130_v55 = vadd.f32 %v3122_v58, %v2971_v29  ;;  %v3275_v3 = vmul.f32 %v5271_v41, %v3231_v24  ;;  %v3857_v29 = vld [vmem:[#allocation14 + $0x10] sm:$0xff] }
 0x728   : > { %v3284_v45 = vadd.f32 %v3276_v42, %v3125_v6  ;;  %v3876_v42 = vld [vmem:[#allocation14 + $0xa8] sm:$0xff] }
 0x729   : > { %v3283_v63 = vadd.f32 %v3275_v3, %v3124_v31  ;;  %v5984_v51 = vpop.f32.mrb[66].mxu1 }
 0x72a   : > { %v3443_v49 = vadd.f32 %v3435_v47, %v3284_v45  ;;  %v3278_v50 = vmul.f32 %v5984_v51, %v5271_v41  ;;  %v3241_v32 = vpop.f32.mrb[67].mxu1  ;;  %v3859_v51 = vld [vmem:[#allocation14 + $0x20] sm:$0xff] }
 0x72b   : > { %v3442_v8 = vadd.f32 %v3434_v25, %v3283_v63  ;;  %v3277_v37 = vmul.f32 %v5271_v41, %v3241_v32  ;;  %v3878_v32 = vld [vmem:[#allocation14 + $0xb8] sm:$0xff] }
 0x72c   : > { %v3286_v30 = vadd.f32 %v3278_v50, %v3127_v18  ;;  %v3440_v18 = vmul.f32 %v5280_v26, %v8613_v7  ;;  %v3877_v50 = vld [vmem:[#allocation14 + $0xb0] sm:$0xff] }
 0x72d   : > { %v3285_v59 = vadd.f32 %v3277_v37, %v3126_v22  ;;  %v5987_v46 = vpop.f32.mrb[68].mxu1 }
 0x72e   : > { %v3445_v53 = vadd.f32 %v3437_v0, %v3286_v30  ;;  %v3280_v36 = vmul.f32 %v5987_v46, %v5271_v41  ;;  %v3251_v52 = vpop.f32.mrb[69].mxu1  ;;  %v3861_v46 = vld [vmem:[#allocation14 + $0x30] sm:$0xff] }
 0x72f   : > { %v3444_v6 = vadd.f32 %v3436_v60, %v3285_v59  ;;  %v3279_v31 = vmul.f32 %v5271_v41, %v3251_v52  ;;  %v6587_v59 = vpack.c.bf16 %v3878_v32, %v3877_v50  ;;  %v3880_v52 = vld [vmem:[#allocation14 + $0xc8] sm:$0xff] }
 0x730   : > { %v3288_v44 = vadd.f32 %v3280_v36, %v3129_v13  ;;  %v3874_v13 = vld [vmem:[#allocation14 + $0x98] sm:$0xff] }
 0x731   : > { %v3287_v10 = vadd.f32 %v3279_v31, %v3128_v39  ;;  %v5990_v61 = vpop.f32.mrb[70].mxu1  ;;  %v6577_v39 = vpack.c.bf16 %v3856_v43, %v3855_v27  ;;  %v6579_v9 = vpack.c.bf16 %v3874_v13, %v3873_v33  ;;  %v3862_v36 = vld [vmem:[#allocation14 + $0x38] sm:$0xff]  ;;  %v3631_v27 = vld [vmem:[#allocation13 + $0xe8] sm:$0xff]  ;;  %v3630_v13 = vld [vmem:[#allocation13 + $0xe0] sm:$0xff] }
 0x732   : > { %v8764_v56 = vadd.f32 %v3439_v21, %v3288_v44  ;;  %v3282_v1 = vmul.f32 %v5990_v61, %v5271_v41  ;;  %v3261_v23 = vpop.f32.mrb[71].mxu1  ;;  %v3863_v44 = vld [vmem:[#allocation14 + $0x40] sm:$0xff]  ;;  %v3881_v61 = vld [vmem:[#allocation14 + $0xd0] sm:$0xff]  ;;  %v3633_v43 = vld [vmem:[#allocation13 + $0xf8] sm:$0xff] }
 0x733   : > { %v3446_v14 = vadd.f32 %v3438_v28, %v3287_v10  ;;  %v3281_v11 = vmul.f32 %v5271_v41, %v3261_v23  ;;  %v3864_v10 = vld [vmem:[#allocation14 + $0x48] sm:$0xff]  ;;  %v6571_v33 = vpack.c.bf16 %v3633_v43, %v3631_v27 }
 0x734   : > { %v3290_v34 = vadd.f32 %v3282_v1, %v3131_v38  ;;  %v3875_v38 = vld [vmem:[#allocation14 + $0xa0] sm:$0xff]  ;;  %v3882_v1 = vld [vmem:[#allocation14 + $0xd8] sm:$0xff] }
 0x735   : > { %v3289_v57 = vadd.f32 %v3281_v11, %v3130_v55  ;;  %v6581_v55 = vpack.c.bf16 %v3858_v35, %v3857_v29  ;;  %v6583_v63 = vpack.c.bf16 %v3876_v42, %v3875_v38  ;;  %v6595_v23 = vpack.c.bf16 %v3882_v1, %v3881_v61  ;;  %v3883_v11 = vld [vmem:[#allocation14 + $0xe0] sm:$0xff]  ;;  %6572 = vmatprep.subr.bf16.mxu0 %v6571_v33  ;;  %v9426_v42 = vld [vmem:[#allocation28_spill] sm:$0xff] }
 0x736   : > { %v8768_v4 = vadd.f32 %v3441_v54, %v3290_v34  ;;  %v3865_v54 = vld [vmem:[#allocation14 + $0x50] sm:$0xff]  ;;  %v9425_v38 = vmov 0.0  }
 0x737   : > { %v3448_v20 = vadd.f32 %v3440_v18, %v3289_v57  ;;  %v3884_v18 = vld [vmem:[#allocation14 + $0xe8] sm:$0xff] }
 0x738   : > { %v6599_v57 = vpack.c.bf16 %v3884_v18, %v3883_v11 }
 0x759   : > { %v1980_v5 = vpop.permute.xlu1 %1979 }
 0x75a   : > { %2004 = vst.msk [vmem:[#allocation2] sm:$0xff] %vm2003_vm3, %v1980_v5  ;;  %v3885_v5 = vld [vmem:[#allocation14 + $0xf0] sm:$0xff] }
 0x75d   : > { %v1982_v19 = vpop.permute.xlu1 %1981  ;;  %v1984_v22 = vpop.permute.xlu0 %1983 }
 0x75e   : > { %2005 = vst.msk [vmem:[#allocation2 + $0x8] sm:$0xff] %vm2003_vm3, %v1982_v19  ;;  %2006 = vst.msk [vmem:[#allocation2 + $0x10] sm:$0xff] %vm2003_vm3, %v1984_v22  ;;  %v3886_v19 = vld [vmem:[#allocation14 + $0xf8] sm:$0xff] }
 0x761   : > { %v1986_v40 = vpop.permute.xlu1 %1985  ;;  %v1988_v17 = vpop.permute.xlu0 %1987  ;;  %v3450_v62 = vld [vmem:[#allocation2] sm:$0xff] }
 0x762   : > { %2007 = vst.msk [vmem:[#allocation2 + $0x18] sm:$0xff] %vm2003_vm3, %v1986_v40  ;;  %2008 = vst.msk [vmem:[#allocation2 + $0x20] sm:$0xff] %vm2003_vm3, %v1988_v17  ;;  %v3458_v7 = vadd.f32 %v3450_v62, %v3442_v8  ;;  %v6603_v40 = vpack.c.bf16 %v3886_v19, %v3885_v5  ;;  %v3869_v17 = vld [vmem:[#allocation14 + $0x70] sm:$0xff]  ;;  %v3870_v62 = vld [vmem:[#allocation14 + $0x78] sm:$0xff] }
 0x764   : > { %6051 = vmatprep.mubr.f32.mxu1 %v3458_v7  ;;  %v6605_v7 = vpack.c.bf16 %v3870_v62, %v3869_v17 }
 0x765   : > { %v1990_v15 = vpop.permute.xlu1 %1989  ;;  %v1992_v48 = vpop.permute.xlu0 %1991  ;;  %v3451_v12 = vld [vmem:[#allocation2 + $0x8] sm:$0xff]  ;;  %v3452_v41 = vld [vmem:[#allocation2 + $0x10] sm:$0xff] }
 0x766   : > { %2009 = vst.msk [vmem:[#allocation2 + $0x28] sm:$0xff] %vm2003_vm3, %v1990_v15  ;;  %2010 = vst.msk [vmem:[#allocation2 + $0x30] sm:$0xff] %vm2003_vm3, %v1992_v48  ;;  %v3459_v58 = vadd.f32 %v3451_v12, %v3443_v49  ;;  %v3460_v26 = vadd.f32 %v3452_v41, %v3444_v6  ;;  %v3860_v49 = vld [vmem:[#allocation14 + $0x28] sm:$0xff]  ;;  %v6589_v6 = vpack.c.bf16 %v3862_v36, %v3861_v46  ;;  %v3632_v15 = vld [vmem:[#allocation13 + $0xf0] sm:$0xff] }
 0x767   : > { %v6585_v8 = vpack.c.bf16 %v3860_v49, %v3859_v51  ;;  %v6573_v48 = vpack.c.bf16 %v3632_v15, %v3630_v13  ;;  %v5281_v12 = vld [vmem:[%s9346_s9] ss:$0 sm:$0xff]  ;;  %v9428_v49 = vld [vmem:[#allocation31_spill] sm:$0xff] }
 0x768   : > { %6052 = vmatmul.mubr.f32.vlgmr.msra.gmra.mrb[72].mxu1 %v3459_v58  ;;  %v9431_v36 = vld [vmem:[#allocation35_spill] sm:$0xff] }
 0x769   : > { %6578 = vmatpush3.bf16.msra.mxu1 %v6577_v39  ;;  %v1994_v24 = vpop.permute.xlu1 %1993  ;;  %6054 = vmatprep.mubr.f32.mxu1 %v3460_v26  ;;  %v3453_v47 = vld [vmem:[#allocation2 + $0x18] sm:$0xff]  ;;  %v3454_v3 = vld [vmem:[#allocation2 + $0x20] sm:$0xff] }
 0x76a   : > { %2011 = vst.msk [vmem:[#allocation2 + $0x38] sm:$0xff] %vm2003_vm3, %v1994_v24  ;;  %6580 = vmatprep.subr.bf16.mxu1 %v6579_v9  ;;  %v3461_v25 = vadd.f32 %v3453_v47, %v3445_v53  ;;  %v3462_v45 = vadd.f32 %v3454_v3, %v3446_v14  ;;  %v3879_v53 = vld [vmem:[#allocation14 + $0xc0] sm:$0xff]  ;;  %v3866_v14 = vld [vmem:[#allocation14 + $0x58] sm:$0xff]  ;;  %6574 = vmatpush1.bf16.msra.mxu0 %v6573_v48 }
 0x76b   : > { %v6591_v28 = vpack.c.bf16 %v3880_v52, %v3879_v53  ;;  %v6597_v34 = vpack.c.bf16 %v3866_v14, %v3865_v54  ;;  %v9432_v52 = vld [vmem:[#allocation36_spill] sm:$0xff] }
 0x76c   : > { %6055 = vmatmul.mubr.f32.gmra.mrb[74].mxu1 %v3461_v25 }
 0x76d   : > { %6582 = vmatpush3.bf16.msra.mxu1 %v6581_v55  ;;  %6057 = vmatprep.mubr.f32.mxu1 %v3462_v45  ;;  %v3455_v0 = vld [vmem:[#allocation2 + $0x28] sm:$0xff]  ;;  %v3456_v37 = vld [vmem:[#allocation2 + $0x30] sm:$0xff]  ;;  %v9427_v45 = vld [vmem:[#allocation29_spill] sm:$0xff] }
 0x76e   : > { %6584 = vmatprep.subr.bf16.mxu1 %v6583_v63  ;;  %v3463_v60 = vadd.f32 %v3455_v0, %v8764_v56  ;;  %v3464_v30 = vadd.f32 %v3456_v37, %v3448_v20  ;;  %v6593_v56 = vpack.c.bf16 %v3864_v10, %v3863_v44  ;;  %v3867_v20 = vld [vmem:[#allocation14 + $0x60] sm:$0xff]  ;;  %v9434_v44 = vld [vmem:[#allocation27_spill] sm:$0xff] }
 0x770   : > { %6058 = vmatmul.mubr.f32.gmra.mrb[76].mxu1 %v3463_v60  ;;  %v9430_v60 = vld [vmem:[#allocation34_spill] sm:$0xff] }
 0x771   : > { %6586 = vmatpush3.bf16.msra.mxu1 %v6585_v8  ;;  %6060 = vmatprep.mubr.f32.mxu1 %v3464_v30  ;;  %v3457_v21 = vld [vmem:[#allocation2 + $0x38] sm:$0xff] }
 0x772   : > { %6588 = vmatprep.subr.bf16.mxu1 %v6587_v59  ;;  %v3465_v31 = vadd.f32 %v3457_v21, %v8768_v4  ;;  %v3868_v4 = vld [vmem:[#allocation14 + $0x68] sm:$0xff]  ;;  %v9429_v8 = vld [vmem:[#allocation32_spill] sm:$0xff] }
 0x773   : > { %v6601_v22 = vpack.c.bf16 %v3868_v4, %v3867_v20 }
 0x774   : > { %6061 = vmatmul.mubr.f32.gmra.mrb[78].mxu1 %v3465_v31  ;;  %v9433_v31 = vld [vmem:[#allocation26_spill] sm:$0xff] }
 0x775   : > { %6590 = vmatpush3.bf16.msra.mxu1 %v6589_v6  ;;  %v3634_v6 = vld [vmem:[%s9348_s11] sm:$0x3] }
 0x776   : > { %6592 = vmatprep.subr.bf16.mxu1 %v6591_v28  ;;  %v8827_v28 = vrot.slane %v3634_v6, %v9433_v31  ;;  %v8830_v10 = vrot.slane %v3634_v6, %v9434_v44 }
 0x779   : > { %6594 = vmatpush3.bf16.msra.mxu1 %v6593_v56 }
 0x77a   : > { %6596 = vmatprep.subr.bf16.mxu1 %v6595_v23 }
 0x77d   : > { %6598 = vmatpush3.bf16.msra.mxu1 %v6597_v34 }
 0x77e   : > { %6600 = vmatprep.subr.bf16.mxu1 %v6599_v57 }
 0x781   : > { %6602 = vmatpush3.bf16.msra.mxu1 %v6601_v22 }
 0x782   : > { %6604 = vmatprep.subr.bf16.mxu1 %v6603_v40 }
 0x785   : > { %6606 = vmatpush3.bf16.msra.mxu1 %v6605_v7 }
 0x786   : > { %6639 = vmatprep.subr.bf16.mxu1 %v8008_v16 }
 0x83b   : > { %v6053_v39 = vpop.f32.mrb[72].mxu1 }
 0x83c   : > { %v3555_v41 = vpop.f32.mrb[73].mxu1  ;;  %v3561_v26 = vadd.f32 %v6053_v39, %v5281_v12 }
 0x83d   : > { %v3556_v58 = vadd.f32 %v5281_v12, %v3555_v41 }
 0x83e   : > { %v8790_v24 = vadd.f32 %v3561_v26, %v9426_v42 }
 0x83f   : > { %v8785_v9 = vadd.f32 %v3556_v58, %v7998_v2  ;;  %v6056_v29 = vpop.f32.mrb[74].mxu1 }
 0x840   : > { %v3565_v35 = vpop.f32.mrb[75].mxu1  ;;  %v3571_v25 = vadd.f32 %v6056_v29, %v5281_v12 }
 0x841   : > { %3711 = vmatmul.mubr.f32.vlgmr.msra.gmra.mrb[64].mxu0 %v8785_v9  ;;  %v3566_v47 = vadd.f32 %v5281_v12, %v3565_v35 }
 0x842   : > { %3716 = vmatprep.mubr.f32.mxu0 %v9425_v38  ;;  %v8800_v50 = vadd.f32 %v3571_v25, %v9428_v49 }
 0x843   : > { %v6059_v55 = vpop.f32.mrb[76].mxu1  ;;  %v8795_v2 = vadd.f32 %v3566_v47, %v9427_v45 }
 0x844   : > { %v3575_v3 = vpop.f32.mrb[77].mxu1  ;;  %v3581_v0 = vadd.f32 %v6059_v55, %v5281_v12 }
 0x845   : > { %3717 = vmatmul.mubr.f32.gmra.mrb[66].mxu0 %v8790_v24  ;;  %v3576_v32 = vadd.f32 %v5281_v12, %v3575_v3 }
 0x846   : > { %3722 = vmatprep.mubr.f32.mxu0 %v9425_v38  ;;  %v8810_v30 = vadd.f32 %v3581_v0, %v9430_v60 }
 0x847   : > { %v6062_v63 = vpop.f32.mrb[78].mxu1  ;;  %v8805_v37 = vadd.f32 %v3576_v32, %v9429_v8 }
 0x848   : > { %v3585_v51 = vpop.f32.mrb[79].mxu1  ;;  %v3591_v46 = vadd.f32 %v6062_v63, %v5281_v12 }
 0x849   : > { %3723 = vmatmul.mubr.f32.gmra.mrb[68].mxu0 %v8795_v2  ;;  %v3586_v59 = vadd.f32 %v5281_v12, %v3585_v51 }
 0x84a   : > { %3728 = vmatprep.mubr.f32.mxu0 %v9425_v38  ;;  %v8820_v21 = vadd.f32 %v3591_v46, %v9432_v52 }
 0x84b   : > { %v8815_v53 = vadd.f32 %v3586_v59, %v9431_v36 }
 0x84d   : > { %3729 = vmatmul.mubr.f32.gmra.mrb[70].mxu0 %v8800_v50 }
 0x84e   : > { %3734 = vmatprep.mubr.f32.mxu0 %v9425_v38 }
 0x851   : > { %3735 = vmatmul.mubr.f32.gmra.mrb[72].mxu0 %v8805_v37 }
 0x852   : > { %3740 = vmatprep.mubr.f32.mxu0 %v9425_v38 }
 0x855   : > { %3741 = vmatmul.mubr.f32.gmra.mrb[74].mxu0 %v8810_v30 }
 0x856   : > { %3746 = vmatprep.mubr.f32.mxu0 %v9425_v38 }
 0x859   : > { %3747 = vmatmul.mubr.f32.gmra.mrb[76].mxu0 %v8815_v53 }
 0x85a   : > { %3752 = vmatprep.mubr.f32.mxu0 %v9425_v38 }
 0x85d   : > { %3753 = vmatmul.mubr.f32.gmra.mrb[78].mxu0 %v8820_v21 }
 0x914   : > { %v3712_v61 = vpop.f32.mrb[64].mxu0 }
 0x915   : > { %v8833_v1 = vadd.f32 %v3712_v61, %v8827_v28  ;;  %v3714_v56 = vpop.f32.mrb[65].mxu0 }
 0x916   : > { %v8836_v23 = vadd.f32 %v3714_v56, %v8830_v10 }
 0x917   : > { %v3759_v54 = vsub.f32 0.0, %v8833_v1 }
 0x918   : > { %v3760_v14 = vsub.f32 0.0, %v8836_v23  ;;  %v3718_v11 = vpop.f32.mrb[66].mxu0 }
 0x919   : > { %v3775_v18 = vmul.f32 1.442695, %v3759_v54  ;;  %v8841_v34 = vadd.f32 %v3718_v11, %v8827_v28  ;;  %v3720_v57 = vpop.f32.mrb[67].mxu0 }
 0x91a   : > { %v3777_v20 = vmul.f32 1.442695, %v3760_v14  ;;  %v8844_v4 = vadd.f32 %v3720_v57, %v8830_v10 }
 0x91b   : > { %6987 = vpow2.f32 %v3775_v18  ;;  %v3761_v5 = vsub.f32 0.0, %v8841_v34 }
 0x91c   : > { %6989 = vpow2.f32 %v3777_v20  ;;  %v3762_v19 = vsub.f32 0.0, %v8844_v4  ;;  %v3724_v22 = vpop.f32.mrb[68].mxu0 }
 0x91d   : > { %v3779_v40 = vmul.f32 1.442695, %v3761_v5  ;;  %v8849_v17 = vadd.f32 %v3724_v22, %v8827_v28  ;;  %v3726_v62 = vpop.f32.mrb[69].mxu0 }
 0x91e   : > { %v3781_v7 = vmul.f32 1.442695, %v3762_v19  ;;  %v8852_v27 = vadd.f32 %v3726_v62, %v8830_v10 }
 0x91f   : > { %6991 = vpow2.f32 %v3779_v40  ;;  %v3763_v43 = vsub.f32 0.0, %v8849_v17 }
 0x920   : > { %6993 = vpow2.f32 %v3781_v7  ;;  %v3764_v33 = vsub.f32 0.0, %v8852_v27  ;;  %v3730_v13 = vpop.f32.mrb[70].mxu0 }
 0x921   : > { %v3783_v15 = vmul.f32 1.442695, %v3763_v43  ;;  %v8857_v48 = vadd.f32 %v3730_v13, %v8827_v28  ;;  %v3732_v12 = vpop.f32.mrb[71].mxu0 }
 0x922   : > { %v3785_v39 = vmul.f32 1.442695, %v3764_v33  ;;  %v8860_v41 = vadd.f32 %v3732_v12, %v8830_v10 }
 0x923   : > { %6995 = vpow2.f32 %v3783_v15  ;;  %v3765_v58 = vsub.f32 0.0, %v8857_v48 }
 0x924   : > { %6997 = vpow2.f32 %v3785_v39  ;;  %v3766_v26 = vsub.f32 0.0, %v8860_v41  ;;  %v3736_v29 = vpop.f32.mrb[72].mxu0 }
 0x925   : > { %v6988_v35 = vpop.eup %6987  ;;  %v3787_v38 = vmul.f32 1.442695, %v3765_v58  ;;  %v8865_v42 = vadd.f32 %v3736_v29, %v8827_v28  ;;  %v3738_v47 = vpop.f32.mrb[73].mxu0 }
 0x926   : > { %v6990_v55 = vpop.eup %6989  ;;  %v3807_v3 = vadd.f32 1.0, %v6988_v35  ;;  %v3789_v25 = vmul.f32 1.442695, %v3766_v26  ;;  %v8868_v45 = vadd.f32 %v3738_v47, %v8830_v10 }
 0x927   : > { %v3808_v63 = vadd.f32 1.0, %v6990_v55  ;;  %6999 = vpow2.f32 %v3787_v38  ;;  %v3767_v51 = vsub.f32 0.0, %v8865_v42 }
 0x928   : > { %7001 = vrcp.f32 %v3807_v3  ;;  %v3768_v49 = vsub.f32 0.0, %v8868_v45  ;;  %v3742_v32 = vpop.f32.mrb[74].mxu0 }
 0x929   : > { %v6992_v0 = vpop.eup %6991  ;;  %7003 = vrcp.f32 %v3808_v63  ;;  %v3791_v8 = vmul.f32 1.442695, %v3767_v51  ;;  %v8873_v60 = vadd.f32 %v3742_v32, %v8827_v28  ;;  %v3744_v59 = vpop.f32.mrb[75].mxu0 }
 0x92a   : > { %v6994_v46 = vpop.eup %6993  ;;  %v3809_v36 = vadd.f32 1.0, %v6992_v0  ;;  %7005 = vpow2.f32 %v3789_v25  ;;  %v3793_v52 = vmul.f32 1.442695, %v3768_v49  ;;  %v8876_v6 = vadd.f32 %v3744_v59, %v8830_v10 }
 0x92b   : > { %v3810_v31 = vadd.f32 1.0, %v6994_v46  ;;  %7007 = vpow2.f32 %v3791_v8  ;;  %v3769_v44 = vsub.f32 0.0, %v8873_v60  ;;  %v9435_v46 = vld [vmem:[#allocation30_spill] sm:$0xff] }
 0x92c   : > { %7009 = vrcp.f32 %v3809_v36  ;;  %v3770_v61 = vsub.f32 0.0, %v8876_v6  ;;  %v3748_v56 = vpop.f32.mrb[76].mxu0 }
 0x92d   : > { %v6996_v54 = vpop.eup %6995  ;;  %7011 = vrcp.f32 %v3810_v31  ;;  %v3795_v14 = vmul.f32 1.442695, %v3769_v44  ;;  %v8881_v11 = vadd.f32 %v3748_v56, %v8827_v28  ;;  %v3750_v18 = vpop.f32.mrb[77].mxu0 }
 0x92e   : > { %v6998_v57 = vpop.eup %6997  ;;  %v3811_v20 = vadd.f32 1.0, %v6996_v54  ;;  %7013 = vpow2.f32 %v3793_v52  ;;  %v3797_v5 = vmul.f32 1.442695, %v3770_v61  ;;  %v8884_v19 = vadd.f32 %v3750_v18, %v8830_v10 }
 0x92f   : > { %v3812_v22 = vadd.f32 1.0, %v6998_v57  ;;  %7015 = vpow2.f32 %v3795_v14  ;;  %v3771_v40 = vsub.f32 0.0, %v8881_v11 }
 0x930   : > { %7017 = vrcp.f32 %v3811_v20  ;;  %v3772_v62 = vsub.f32 0.0, %v8884_v19  ;;  %v3754_v7 = vpop.f32.mrb[78].mxu0 }
 0x931   : > { %v7000_v43 = vpop.eup %6999  ;;  %7019 = vrcp.f32 %v3812_v22  ;;  %v3799_v33 = vmul.f32 1.442695, %v3771_v40  ;;  %v8889_v13 = vadd.f32 %v3754_v7, %v8827_v28  ;;  %v3756_v15 = vpop.f32.mrb[79].mxu0 }
 0x932   : > { %v7002_v12 = vpop.eup %7001  ;;  %v3813_v39 = vadd.f32 1.0, %v7000_v43  ;;  %7021 = vpow2.f32 %v3797_v5  ;;  %v3801_v58 = vmul.f32 1.442695, %v3772_v62  ;;  %v8892_v26 = vadd.f32 %v3756_v15, %v8830_v10  ;;  %v9436_v5 = vld [vmem:[#allocation33_spill] sm:$0xff] }
 0x933   : > { %v7004_v29 = vpop.eup %7003  ;;  %7023 = vpow2.f32 %v3799_v33  ;;  %v3773_v35 = vsub.f32 0.0, %v8889_v13  ;;  %v3824_v28 = vmul.f32 %v7002_v12, %v8833_v1 }
 0x934   : > { %v7006_v38 = vpop.eup %7005  ;;  %v3826_v47 = vmul.f32 %v7004_v29, %v8836_v23  ;;  %v3774_v55 = vsub.f32 0.0, %v8892_v26  ;;  %7025 = vpow2.f32 %v3801_v58  ;;  %v9437_v58 = vld [vmem:[#allocation37_spill] sm:$0xff] }
 0x935   : > { %v7008_v3 = vpop.eup %7007  ;;  %v3814_v25 = vadd.f32 1.0, %v7006_v38  ;;  %v3803_v63 = vmul.f32 1.442695, %v3773_v35  ;;  %7027 = vrcp.f32 %v3813_v39 }
 0x936   : > { %v7010_v51 = vpop.eup %7009  ;;  %v3815_v49 = vadd.f32 1.0, %v7008_v3  ;;  %v3805_v10 = vmul.f32 1.442695, %v3774_v55  ;;  %3958 = vmatprep.mubr.f32.mxu1 %v3826_v47 }
 0x937   : > { %v7012_v32 = vpop.eup %7011  ;;  %7029 = vrcp.f32 %v3814_v25  ;;  %3959 = vmatmul.mubr.f32.vlgmr.msra.gmra.mrb[80].mxu1 %v3824_v28  ;;  %v3828_v1 = vmul.f32 %v7010_v51, %v8841_v34  ;;  %v4011_v28 = vld [vmem:[#allocation16 + $0x20] sm:$0xff]  ;;  %v4013_v25 = vld [vmem:[#allocation16 + $0x30] sm:$0xff]  ;;  %v4016_v51 = vld [vmem:[#allocation16 + $0x48] sm:$0xff] }
 0x938   : > { %v7014_v0 = vpop.eup %7013  ;;  %v3830_v8 = vmul.f32 %v7012_v32, %v8844_v4  ;;  %7031 = vrcp.f32 %v3815_v49  ;;  %6643 = vmatpush3.bf16.xpose.msra.mxu1 %v8008_v16  ;;  %v4017_v49 = vld [vmem:[#allocation16 + $0x50] sm:$0xff] }
 0x939   : > { %v7016_v23 = vpop.eup %7015  ;;  %v3816_v59 = vadd.f32 1.0, %v7014_v0  ;;  %7033 = vpow2.f32 %v3803_v63  ;;  %6640 = vmatprep.subr.bf16.mxu1 %v9435_v46  ;;  %v4015_v63 = vld [vmem:[#allocation16 + $0x40] sm:$0xff]  ;;  %v4021_v32 = vld [vmem:[#allocation16 + $0x70] sm:$0xff]  ;;  %v4022_v0 = vld [vmem:[#allocation16 + $0x78] sm:$0xff] }
 0x93a   : > { %v7018_v36 = vpop.eup %7017  ;;  %v3817_v52 = vadd.f32 1.0, %v7016_v23  ;;  %7035 = vpow2.f32 %v3805_v10  ;;  %3963 = vmatprep.mubr.f32.mxu1 %v3830_v8  ;;  %v4020_v10 = vld [vmem:[#allocation16 + $0x68] sm:$0xff]  ;;  %v4023_v8 = vld [vmem:[#allocation16 + $0x80] sm:$0xff] }
 0x93b   : > { %v7020_v31 = vpop.eup %7019  ;;  %7037 = vrcp.f32 %v3816_v59  ;;  %3964 = vmatmul.mubr.f32.gmra.mrb[82].mxu1 %v3828_v1  ;;  %v3832_v56 = vmul.f32 %v7018_v36, %v8849_v17  ;;  %v4024_v23 = vld [vmem:[#allocation16 + $0x88] sm:$0xff]  ;;  %v7509_v1 = vmov 0   ;;  %v4521_v36 = vld [vmem:[%s9353_s16] sm:$0xff] }
 0x93c   : > { %v7022_v44 = vpop.eup %7021  ;;  %v3834_v4 = vmul.f32 %v7020_v31, %v8852_v27  ;;  %7039 = vrcp.f32 %v3817_v52  ;;  %6858 = vset.pattern.permute.xlu1 %v7509_v1  ;;  %v4522_v59 = vld [vmem:[%s9353_s16 + $0x8] sm:$0xff]  ;;  %6857 = vset.pattern.permute.xlu0 %v7509_v1  ;;  %v4025_v52 = vld [vmem:[#allocation16 + $0x90] sm:$0xff]  ;;  %v4026_v31 = vld [vmem:[#allocation16 + $0x98] sm:$0xff] }
 0x93d   : > { %v7024_v61 = vpop.eup %7023  ;;  %v3818_v54 = vadd.f32 1.0, %v7022_v44  ;;  %4560 = vperm.xlu1 %6858, %v4522_v59   ;;  %4555 = vperm.xlu0 %6857, %v4521_v36   ;;  %v4523_v44 = vld [vmem:[%s9353_s16 + $0x10] sm:$0xff]  ;;  %v4550_v1 = vld [vmem:[%s9353_s16 + $0xe8] sm:$0xff] }
 0x93e   : > { %v3819_v34 = vadd.f32 1.0, %v7024_v61  ;;  %3968 = vmatprep.mubr.f32.mxu1 %v3834_v4  ;;  %v7026_v14 = vpop.eup %7025  ;;  %v4524_v4 = vld [vmem:[%s9353_s16 + $0x18] sm:$0xff]  ;;  %v4027_v61 = vld [vmem:[#allocation16 + $0xa0] sm:$0xff] }
 0x93f   : > { %7041 = vrcp.f32 %v3818_v54  ;;  %3969 = vmatmul.mubr.f32.gmra.mrb[84].mxu1 %v3832_v56  ;;  %v7028_v18 = vpop.eup %7027  ;;  %v3820_v57 = vadd.f32 1.0, %v7026_v14  ;;  %v4028_v56 = vld [vmem:[#allocation16 + $0xa8] sm:$0xff]  ;;  %v4525_v54 = vld [vmem:[%s9353_s16 + $0x20] sm:$0xff]  ;;  %v4029_v14 = vld [vmem:[#allocation16 + $0xb0] sm:$0xff] }
 0x940   : > { %6644 = vmatpush3.bf16.xpose.msra.mxu1 %v9435_v46  ;;  %7043 = vrcp.f32 %v3819_v34  ;;  %v3836_v40 = vmul.f32 %v7028_v18, %v8857_v48  ;;  %v4526_v34 = vld [vmem:[%s9353_s16 + $0x28] sm:$0xff]  ;;  %v4030_v18 = vld [vmem:[#allocation16 + $0xb8] sm:$0xff] }
 0x941   : > { %v7030_v20 = vpop.eup %7029  ;;  %6641 = vmatprep.subr.bf16.mxu1 %v9436_v5  ;;  %7045 = vrcp.f32 %v3820_v57  ;;  %4565 = vperm.xlu1 %6858, %v4523_v44   ;;  %v4527_v57 = vld [vmem:[%s9353_s16 + $0x30] sm:$0xff] }
 0x942   : > { %v7032_v22 = vpop.eup %7031  ;;  %v3838_v27 = vmul.f32 %v7030_v20, %v8860_v41  ;;  %4570 = vperm.xlu0 %6857, %v4524_v4   ;;  %v4528_v20 = vld [vmem:[%s9353_s16 + $0x38] sm:$0xff] }
 0x943   : > { %v7034_v17 = vpop.eup %7033  ;;  %v3840_v12 = vmul.f32 %v7032_v22, %v8865_v42  ;;  %v4031_v22 = vld [vmem:[#allocation16 + $0xc0] sm:$0xff] }
 0x944   : > { %v7036_v62 = vpop.eup %7035  ;;  %v3821_v7 = vadd.f32 1.0, %v7034_v17  ;;  %3973 = vmatprep.mubr.f32.mxu1 %v3838_v27  ;;  %v4032_v27 = vld [vmem:[#allocation16 + $0xc8] sm:$0xff]  ;;  %v4529_v17 = vld [vmem:[%s9353_s16 + $0x40] sm:$0xff] }
 0x945   : > { %v7038_v43 = vpop.eup %7037  ;;  %v3822_v33 = vadd.f32 1.0, %v7036_v62  ;;  %3974 = vmatmul.mubr.f32.gmra.mrb[86].mxu1 %v3836_v40  ;;  %4575 = vperm.xlu1 %6858, %v4525_v54   ;;  %v4530_v40 = vld [vmem:[%s9353_s16 + $0x48] sm:$0xff]  ;;  %v4033_v62 = vld [vmem:[#allocation16 + $0xd0] sm:$0xff] }
 0x946   : > { %v3842_v15 = vmul.f32 %v7038_v43, %v8868_v45  ;;  %7047 = vrcp.f32 %v3821_v7  ;;  %v7040_v39 = vpop.eup %7039  ;;  %4580 = vperm.xlu0 %6857, %v4526_v34   ;;  %v4034_v7 = vld [vmem:[#allocation16 + $0xd8] sm:$0xff]  ;;  %v4531_v43 = vld [vmem:[%s9353_s16 + $0x50] sm:$0xff] }
 0x947   : > { %7049 = vrcp.f32 %v3822_v33  ;;  %v3844_v35 = vmul.f32 %v7040_v39, %v8873_v60  ;;  %v4039_v60 = vld [vmem:[#allocation17] sm:$0xff]  ;;  %v4532_v33 = vld [vmem:[%s9353_s16 + $0x58] sm:$0xff] }
 0x948   : > { %3978 = vmatprep.mubr.f32.mxu1 %v3842_v15  ;;  %6645 = vmatpush3.bf16.xpose.msra.mxu1 %v9436_v5  ;;  %v4035_v15 = vld [vmem:[#allocation16 + $0xe0] sm:$0xff] }
 0x949   : > { %v7042_v41 = vpop.eup %7041  ;;  %3979 = vmatmul.mubr.f32.gmra.mrb[88].mxu1 %v3840_v12  ;;  %6642 = vmatprep.subr.bf16.mxu1 %v9437_v58  ;;  %v4036_v12 = vld [vmem:[#allocation16 + $0xe8] sm:$0xff]  ;;  %v4533_v39 = vld [vmem:[%s9353_s16 + $0x60] sm:$0xff] }
 0x94a   : > { %v3846_v48 = vmul.f32 %v7042_v41, %v8876_v6  ;;  %v7044_v29 = vpop.eup %7043  ;;  %6079 = vmatprep.mubr.f32.mxu0 %v4039_v60  ;;  %4585 = vperm.xlu1 %6858, %v4527_v57   ;;  %v4534_v41 = vld [vmem:[%s9353_s16 + $0x68] sm:$0xff]  ;;  %v4543_v60 = vld [vmem:[%s9353_s16 + $0xb0] sm:$0xff] }
 0x94b   : > { %v7046_v38 = vpop.eup %7045  ;;  %v3848_v42 = vmul.f32 %v7044_v29, %v8881_v11  ;;  %v4014_v11 = vld [vmem:[#allocation16 + $0x38] sm:$0xff]  ;;  %4590 = vperm.xlu0 %6857, %v4528_v20  }
 0x94c   : > { %3983 = vmatprep.mubr.f32.mxu1 %v3846_v48  ;;  %v3850_v45 = vmul.f32 %v7046_v38, %v8884_v19  ;;  %v4012_v19 = vld [vmem:[#allocation16 + $0x28] sm:$0xff]  ;;  %v4037_v48 = vld [vmem:[#allocation16 + $0xf0] sm:$0xff]  ;;  %v4038_v29 = vld [vmem:[#allocation16 + $0xf8] sm:$0xff] }
 0x94d   : > { %3984 = vmatmul.mubr.f32.gmra.mrb[90].mxu1 %v3844_v35  ;;  %v4535_v35 = vld [vmem:[%s9353_s16 + $0x70] sm:$0xff]  ;;  %v4536_v38 = vld [vmem:[%s9353_s16 + $0x78] sm:$0xff] }
 0x94e   : > { %3988 = vmatprep.mubr.f32.mxu1 %v3850_v45  ;;  %4595 = vperm.xlu1 %6858, %v4529_v17   ;;  %v4537_v45 = vld [vmem:[%s9353_s16 + $0x80] sm:$0xff] }
 0x94f   : > { %4600 = vperm.xlu0 %6857, %v4530_v40  }
 0x950   : > { %v7048_v47 = vpop.eup %7047  ;;  %6646 = vmatpush3.bf16.xpose.msra.mxu1 %v9437_v58 }
 0x951   : > { %v7050_v55 = vpop.eup %7049  ;;  %3989 = vmatmul.mubr.f32.gmra.mrb[92].mxu1 %v3848_v42  ;;  %v3852_v6 = vmul.f32 %v7048_v47, %v8889_v13  ;;  %v4019_v13 = vld [vmem:[#allocation16 + $0x60] sm:$0xff]  ;;  %v4539_v47 = vld [vmem:[%s9353_s16 + $0x90] sm:$0xff] }
 0x952   : > { %v3854_v3 = vmul.f32 %v7050_v55, %v8892_v26  ;;  %v4018_v26 = vld [vmem:[#allocation16 + $0x58] sm:$0xff]  ;;  %4605 = vperm.xlu1 %6858, %v4531_v43   ;;  %v4538_v42 = vld [vmem:[%s9353_s16 + $0x88] sm:$0xff] }
 0x953   : > { %4610 = vperm.xlu0 %6857, %v4532_v33   ;;  %v4540_v55 = vld [vmem:[%s9353_s16 + $0x98] sm:$0xff] }
 0x954   : > { %3993 = vmatprep.mubr.f32.mxu1 %v3854_v3  ;;  %v4541_v3 = vld [vmem:[%s9353_s16 + $0xa0] sm:$0xff] }
 0x955   : > { %3994 = vmatmul.mubr.f32.gmra.mrb[94].mxu1 %v3852_v6  ;;  %v4542_v6 = vld [vmem:[%s9353_s16 + $0xa8] sm:$0xff] }
 0x956   : > { %6149 = vmatprep.mubr.f32.mxu1 %v4011_v28  ;;  %4615 = vperm.xlu1 %6858, %v4533_v39   ;;  %v4544_v28 = vld [vmem:[%s9353_s16 + $0xb8] sm:$0xff] }
 0x957   : > { %4620 = vperm.xlu0 %6857, %v4534_v41  }
 0x959   : > { %6150 = vmatmul.mubr.f32.vlgmr.msra.gmra.mrb[96].mxu1 %v4012_v19  ;;  %v4545_v19 = vld [vmem:[%s9353_s16 + $0xc0] sm:$0xff] }
 0x95a   : > { %6152 = vmatprep.mubr.f32.mxu1 %v4013_v25  ;;  %4625 = vperm.xlu1 %6858, %v4535_v35   ;;  %v4546_v25 = vld [vmem:[%s9353_s16 + $0xc8] sm:$0xff] }
 0x95b   : > { %4630 = vperm.xlu0 %6857, %v4536_v38  }
 0x95d   : > { %6153 = vmatmul.mubr.f32.gmra.mrb[98].mxu1 %v4014_v11 }
 0x95e   : > { %6155 = vmatprep.mubr.f32.mxu1 %v4015_v63  ;;  %4635 = vperm.xlu1 %6858, %v4537_v45  }
 0x95f   : > { %4640 = vperm.xlu0 %6857, %v4538_v42  }
 0x961   : > { %6156 = vmatmul.mubr.f32.gmra.mrb[100].mxu1 %v4016_v51 }
 0x962   : > { %6158 = vmatprep.mubr.f32.mxu1 %v4017_v49  ;;  %4645 = vperm.xlu1 %6858, %v4539_v47   ;;  %v4547_v49 = vld [vmem:[%s9353_s16 + $0xd0] sm:$0xff] }
 0x963   : > { %4650 = vperm.xlu0 %6857, %v4540_v55  }
 0x965   : > { %6159 = vmatmul.mubr.f32.gmra.mrb[102].mxu1 %v4018_v26  ;;  %v5282_v26 = vld [vmem:[%s9438_s0] ss:$0 sm:$0xff] }
 0x966   : > { %6161 = vmatprep.mubr.f32.mxu1 %v4019_v13  ;;  %4655 = vperm.xlu1 %6858, %v4541_v3   ;;  %v4548_v13 = vld [vmem:[%s9353_s16 + $0xd8] sm:$0xff] }
 0x967   : > { %4660 = vperm.xlu0 %6857, %v4542_v6   ;;  %v4042_v6 = vld [vmem:[#allocation17 + $0x18] sm:$0xff] }
 0x969   : > { %6162 = vmatmul.mubr.f32.gmra.mrb[104].mxu1 %v4020_v10 }
 0x96a   : > { %6164 = vmatprep.mubr.f32.mxu1 %v4021_v32  ;;  %4665 = vperm.xlu1 %6858, %v4543_v60   ;;  %v4043_v60 = vld [vmem:[#allocation17 + $0x20] sm:$0xff] }
 0x96b   : > { %4670 = vperm.xlu0 %6857, %v4544_v28   ;;  %v4045_v28 = vld [vmem:[#allocation17 + $0x30] sm:$0xff] }
 0x96d   : > { %6165 = vmatmul.mubr.f32.gmra.mrb[106].mxu1 %v4022_v0 }
 0x96e   : > { %6167 = vmatprep.mubr.f32.mxu1 %v4023_v8  ;;  %4675 = vperm.xlu1 %6858, %v4545_v19   ;;  %v4047_v19 = vld [vmem:[#allocation17 + $0x40] sm:$0xff] }
 0x96f   : > { %4680 = vperm.xlu0 %6857, %v4546_v25   ;;  %v4049_v25 = vld [vmem:[#allocation17 + $0x50] sm:$0xff] }
 0x971   : > { %6168 = vmatmul.mubr.f32.gmra.mrb[108].mxu1 %v4024_v23  ;;  %v4549_v23 = vld [vmem:[%s9353_s16 + $0xe0] sm:$0xff] }
 0x972   : > { %6170 = vmatprep.mubr.f32.mxu1 %v4025_v52  ;;  %4685 = vperm.xlu1 %6858, %v4547_v49   ;;  %v4054_v49 = vld [vmem:[#allocation17 + $0x78] sm:$0xff] }
 0x973   : > { %4690 = vperm.xlu0 %6857, %v4548_v13   ;;  %v4056_v13 = vld [vmem:[#allocation17 + $0x88] sm:$0xff] }
 0x975   : > { %6171 = vmatmul.mubr.f32.gmra.mrb[110].mxu1 %v4026_v31 }
 0x976   : > { %6173 = vmatprep.mubr.f32.mxu1 %v4027_v61  ;;  %4695 = vperm.xlu1 %6858, %v4549_v23   ;;  %v4551_v61 = vld [vmem:[%s9353_s16 + $0xf0] sm:$0xff]  ;;  %v4062_v23 = vld [vmem:[#allocation17 + $0xb8] sm:$0xff] }
 0x977   : > { %4700 = vperm.xlu0 %6857, %v4550_v1   ;;  %v4063_v1 = vld [vmem:[#allocation17 + $0xc0] sm:$0xff] }
 0x979   : > { %6174 = vmatmul.mubr.f32.gmra.mrb[112].mxu1 %v4028_v56  ;;  %v4552_v56 = vld [vmem:[%s9353_s16 + $0xf8] sm:$0xff] }
 0x97a   : > { %6176 = vmatprep.mubr.f32.mxu1 %v4029_v14  ;;  %4705 = vperm.xlu1 %6858, %v4551_v61   ;;  %v4007_v61 = vld [vmem:[#allocation16] sm:$0xff] }
 0x97b   : > { %4710 = vperm.xlu0 %6857, %v4552_v56   ;;  %v4008_v56 = vld [vmem:[#allocation16 + $0x8] sm:$0xff] }
 0x97d   : > { %6177 = vmatmul.mubr.f32.gmra.mrb[114].mxu1 %v4030_v18 }
 0x97e   : > { %6179 = vmatprep.mubr.f32.mxu1 %v4031_v22 }
 0x981   : > { %6180 = vmatmul.mubr.f32.gmra.mrb[116].mxu1 %v4032_v27 }
 0x982   : > { %6182 = vmatprep.mubr.f32.mxu1 %v4033_v62 }
 0x985   : > { %6183 = vmatmul.mubr.f32.gmra.mrb[118].mxu1 %v4034_v7 }
 0x986   : > { %6185 = vmatprep.mubr.f32.mxu1 %v4035_v15 }
 0x989   : > { %6186 = vmatmul.mubr.f32.gmra.mrb[120].mxu1 %v4036_v12 }
 0x98a   : > { %6188 = vmatprep.mubr.f32.mxu1 %v4037_v48 }
 0x98d   : > { %6189 = vmatmul.mubr.f32.gmra.mrb[122].mxu1 %v4038_v29 }
 0xa0a   : > { %v5551_v11 = vpop.f32.mrb[80].mxu1 }
 0xa0b   : > { %v5552_v63 = vpop.f32.mrb[81].mxu1 }
 0xa0c   : > { %v5553_v51 = vadd.f32 %v5552_v63, %v5551_v11  ;;  %v4050_v11 = vld [vmem:[#allocation17 + $0x58] sm:$0xff]  ;;  %v4051_v63 = vld [vmem:[#allocation17 + $0x60] sm:$0xff] }
 0xa0e   : > { %v5554_v10 = vpop.f32.mrb[82].mxu1  ;;  %v3961_v0 = vadd.f32 %v5553_v51, %v5282_v26  ;;  %v4053_v51 = vld [vmem:[#allocation17 + $0x70] sm:$0xff] }
 0xa0f   : > { %v5555_v32 = vpop.f32.mrb[83].mxu1 }
 0xa10   : > { %v5556_v8 = vadd.f32 %v5555_v32, %v5554_v10  ;;  %v3999_v31 = vadd.f32 %v3961_v0, %v8785_v9  ;;  %v4057_v10 = vld [vmem:[#allocation17 + $0x90] sm:$0xff]  ;;  %v4059_v32 = vld [vmem:[#allocation17 + $0xa0] sm:$0xff]  ;;  %v4060_v0 = vld [vmem:[#allocation17 + $0xa8] sm:$0xff] }
 0xa12   : > { %v3966_v59 = vadd.f32 %v5556_v8, %v5282_v26  ;;  %v5557_v36 = vpop.f32.mrb[84].mxu1  ;;  %v4061_v8 = vld [vmem:[#allocation17 + $0xb0] sm:$0xff] }
 0xa13   : > { %v5558_v52 = vpop.f32.mrb[85].mxu1 }
 0xa14   : > { %v4000_v44 = vadd.f32 %v3966_v59, %v8790_v24  ;;  %v5559_v4 = vadd.f32 %v5558_v52, %v5557_v36  ;;  %v4065_v59 = vld [vmem:[#allocation17 + $0xd0] sm:$0xff]  ;;  %v4066_v36 = vld [vmem:[#allocation17 + $0xd8] sm:$0xff]  ;;  %v4067_v52 = vld [vmem:[#allocation17 + $0xe0] sm:$0xff] }
 0xa16   : > { %v6607_v54 = vpack.c.bf16 %v4000_v44, %v3999_v31  ;;  %v3971_v9 = vadd.f32 %v5559_v4, %v5282_v26  ;;  %v4068_v31 = vld [vmem:[#allocation17 + $0xe8] sm:$0xff]  ;;  %v4069_v44 = vld [vmem:[#allocation17 + $0xf0] sm:$0xff]  ;;  %v4070_v4 = vld [vmem:[#allocation17 + $0xf8] sm:$0xff] }
 0xa18   : > { %v5560_v34 = vpop.f32.mrb[86].mxu1  ;;  %6608 = vmatprep.subr.bf16.mxu0 %v6607_v54  ;;  %v4001_v22 = vadd.f32 %v3971_v9, %v8795_v2 }
 0xa19   : > { %v5561_v14 = vpop.f32.mrb[87].mxu1  ;;  %6610 = vmatpush3.bf16.xpose.msra.mxu0 %v6607_v54  ;;  %v4009_v54 = vld [vmem:[#allocation16 + $0x10] sm:$0xff] }
 0xa1a   : > { %v5562_v18 = vadd.f32 %v5561_v14, %v5560_v34  ;;  %v4010_v34 = vld [vmem:[#allocation16 + $0x18] sm:$0xff] }
 0xa1c   : > { %v3976_v24 = vadd.f32 %v5562_v18, %v5282_v26  ;;  %v5563_v57 = vpop.f32.mrb[88].mxu1 }
 0xa1d   : > { %v5564_v20 = vpop.f32.mrb[89].mxu1 }
 0xa1e   : > { %v4002_v27 = vadd.f32 %v3976_v24, %v8800_v50  ;;  %v5565_v17 = vadd.f32 %v5564_v20, %v5563_v57 }
 0xa20   : > { %v5566_v40 = vpop.f32.mrb[90].mxu1  ;;  %v6611_v62 = vpack.c.bf16 %v4002_v27, %v4001_v22  ;;  %v3981_v43 = vadd.f32 %v5565_v17, %v5282_v26 }
 0xa21   : > { %v5567_v7 = vpop.f32.mrb[91].mxu1 }
 0xa22   : > { %v5568_v33 = vadd.f32 %v5567_v7, %v5566_v40  ;;  %6612 = vmatprep.subr.bf16.mxu0 %v6611_v62  ;;  %v4003_v41 = vadd.f32 %v3981_v43, %v8805_v37  ;;  %v4040_v37 = vld [vmem:[#allocation17 + $0x8] sm:$0xff] }
 0xa23   : > { %6614 = vmatpush3.bf16.xpose.msra.mxu0 %v6611_v62 }
 0xa24   : > { %v3986_v15 = vadd.f32 %v5568_v33, %v5282_v26  ;;  %v5569_v12 = vpop.f32.mrb[92].mxu1 }
 0xa25   : > { %v5570_v39 = vpop.f32.mrb[93].mxu1 }
 0xa26   : > { %v4004_v48 = vadd.f32 %v3986_v15, %v8810_v30  ;;  %v5571_v29 = vadd.f32 %v5570_v39, %v5569_v12  ;;  %v4041_v30 = vld [vmem:[#allocation17 + $0x10] sm:$0xff] }
 0xa28   : > { %v5572_v35 = vpop.f32.mrb[94].mxu1  ;;  %v6615_v2 = vpack.c.bf16 %v4004_v48, %v4003_v41  ;;  %v3991_v50 = vadd.f32 %v5571_v29, %v5282_v26 }
 0xa29   : > { %v5573_v38 = vpop.f32.mrb[95].mxu1 }
 0xa2a   : > { %v5574_v45 = vadd.f32 %v5573_v38, %v5572_v35  ;;  %6616 = vmatprep.subr.bf16.mxu0 %v6615_v2  ;;  %v4005_v47 = vadd.f32 %v3991_v50, %v8815_v53  ;;  %v4044_v53 = vld [vmem:[#allocation17 + $0x28] sm:$0xff] }
 0xa2b   : > { %6618 = vmatpush3.bf16.xpose.msra.mxu0 %v6615_v2 }
 0xa2c   : > { %v3996_v42 = vadd.f32 %v5574_v45, %v5282_v26  ;;  %v4055_v26 = vld [vmem:[#allocation17 + $0x80] sm:$0xff]  ;;  %v6151_v14 = vpop.f32.mrb[96].mxu1 }
 0xa2d   : > { %v4382_v9 = vpop.f32.mrb[97].mxu1 }
 0xa2e   : > { %v4006_v55 = vadd.f32 %v3996_v42, %v8820_v21  ;;  %v4046_v21 = vld [vmem:[#allocation17 + $0x38] sm:$0xff] }
 0xa30   : > { %v6619_v3 = vpack.c.bf16 %v4006_v55, %v4005_v47  ;;  %v6154_v18 = vpop.f32.mrb[98].mxu1 }
 0xa31   : > { %v4392_v24 = vpop.f32.mrb[99].mxu1 }
 0xa32   : > { %6620 = vmatprep.subr.bf16.mxu0 %v6619_v3 }
 0xa33   : > { %6622 = vmatpush3.bf16.xpose.msra.mxu0 %v6619_v3  ;;  %v9078_v3 = vpop.permute.xlu0 %4555 }
 0xa34   : > { %6624 = vmatprep.subr.bf16.mxu0 %v8008_v16  ;;  %v6157_v57 = vpop.f32.mrb[100].mxu1 }
 0xa35   : > { %v4402_v20 = vpop.f32.mrb[101].mxu1 }
 0xa38   : > { %v9034_v22 = vpop.f32.mrb[102].mxu1 }
 0xa39   : > { %v9036_v27 = vpop.f32.mrb[103].mxu1 }
 0xa3a   : > { %6080 = vmatmul.mubr.f32.vlgmr.msra.gmra.mrb[80].mxu0 %v4040_v37  ;;  %v9080_v37 = vpop.permute.xlu1 %4560 }
 0xa3b   : > { %6626 = vmatpush3.bf16.xpose.msra.mxu0 %v8008_v16  ;;  %6082 = vmatprep.mubr.f32.mxu0 %v4041_v30  ;;  %v4048_v16 = vld [vmem:[#allocation17 + $0x48] sm:$0xff]  ;;  %v9082_v30 = vpop.permute.xlu0 %4570 }
 0xa3c   : > { %6628 = vmatprep.subr.bf16.mxu0 %v9435_v46  ;;  %v9038_v17 = vpop.f32.mrb[104].mxu1 }
 0xa3d   : > { %v9040_v40 = vpop.f32.mrb[105].mxu1 }
 0xa3e   : > { %6083 = vmatmul.mubr.f32.gmra.mrb[82].mxu0 %v4042_v6  ;;  %v9084_v6 = vpop.permute.xlu1 %4565 }
 0xa3f   : > { %6085 = vmatprep.mubr.f32.mxu0 %v4043_v60  ;;  %v4581_v60 = vpop.permute.xlu0 %4580 }
 0xa40   : > { %v9042_v62 = vpop.f32.mrb[106].mxu1 }
 0xa41   : > { %v9044_v7 = vpop.f32.mrb[107].mxu1 }
 0xa42   : > { %6086 = vmatmul.mubr.f32.gmra.mrb[84].mxu0 %v4044_v53  ;;  %v4576_v53 = vpop.permute.xlu1 %4575 }
 0xa43   : > { %6630 = vmatpush3.bf16.xpose.msra.mxu0 %v9435_v46  ;;  %6088 = vmatprep.mubr.f32.mxu0 %v4045_v28  ;;  %v4052_v46 = vld [vmem:[#allocation17 + $0x68] sm:$0xff]  ;;  %v4591_v28 = vpop.permute.xlu0 %4590 }
 0xa44   : > { %6632 = vmatprep.subr.bf16.mxu0 %v9436_v5  ;;  %v9046_v43 = vpop.f32.mrb[108].mxu1 }
 0xa45   : > { %v9048_v33 = vpop.f32.mrb[109].mxu1 }
 0xa46   : > { %6089 = vmatmul.mubr.f32.gmra.mrb[86].mxu0 %v4046_v21  ;;  %v4586_v21 = vpop.permute.xlu1 %4585 }
 0xa47   : > { %6091 = vmatprep.mubr.f32.mxu0 %v4047_v19  ;;  %v4601_v19 = vpop.permute.xlu0 %4600 }
 0xa48   : > { %v9050_v15 = vpop.f32.mrb[110].mxu1 }
 0xa49   : > { %v9052_v12 = vpop.f32.mrb[111].mxu1 }
 0xa4a   : > { %6092 = vmatmul.mubr.f32.gmra.mrb[88].mxu0 %v4048_v16  ;;  %v4596_v16 = vpop.permute.xlu1 %4595 }
 0xa4b   : > { %6634 = vmatpush3.bf16.xpose.msra.mxu0 %v9436_v5  ;;  %6094 = vmatprep.mubr.f32.mxu0 %v4049_v25  ;;  %v4058_v5 = vld [vmem:[#allocation17 + $0x98] sm:$0xff]  ;;  %v4611_v25 = vpop.permute.xlu0 %4610 }
 0xa4c   : > { %6636 = vmatprep.subr.bf16.mxu0 %v9437_v58  ;;  %v9054_v39 = vpop.f32.mrb[112].mxu1 }
 0xa4d   : > { %v9056_v41 = vpop.f32.mrb[113].mxu1 }
 0xa4e   : > { %6095 = vmatmul.mubr.f32.gmra.mrb[90].mxu0 %v4050_v11  ;;  %v4606_v11 = vpop.permute.xlu1 %4605 }
 0xa4f   : > { %6097 = vmatprep.mubr.f32.mxu0 %v4051_v63  ;;  %v4621_v63 = vpop.permute.xlu0 %4620 }
 0xa50   : > { %v9058_v48 = vpop.f32.mrb[114].mxu1 }
 0xa51   : > { %v9060_v29 = vpop.f32.mrb[115].mxu1 }
 0xa52   : > { %6098 = vmatmul.mubr.f32.gmra.mrb[92].mxu0 %v4052_v46 }
 0xa53   : > { %6638 = vmatpush3.bf16.xpose.msra.mxu0 %v9437_v58  ;;  %6100 = vmatprep.mubr.f32.mxu0 %v4053_v51  ;;  %v4064_v58 = vld [vmem:[#allocation17 + $0xc8] sm:$0xff]  ;;  %v4616_v51 = vpop.permute.xlu1 %4615 }
 0xa54   : > { %v9062_v35 = vpop.f32.mrb[116].mxu1 }
 0xa55   : > { %v9064_v2 = vpop.f32.mrb[117].mxu1 }
 0xa56   : > { %6101 = vmatmul.mubr.f32.gmra.mrb[94].mxu0 %v4054_v49 }
 0xa57   : > { %6103 = vmatprep.mubr.f32.mxu0 %v4055_v26 }
 0xa58   : > { %v9066_v38 = vpop.f32.mrb[118].mxu1 }
 0xa59   : > { %v9068_v50 = vpop.f32.mrb[119].mxu1 }
 0xa5a   : > { %6104 = vmatmul.mubr.f32.gmra.mrb[96].mxu0 %v4056_v13 }
 0xa5b   : > { %6106 = vmatprep.mubr.f32.mxu0 %v4057_v10 }
 0xa5c   : > { %v9070_v45 = vpop.f32.mrb[120].mxu1 }
 0xa5d   : > { %v9072_v42 = vpop.f32.mrb[121].mxu1 }
 0xa5e   : > { %6107 = vmatmul.mubr.f32.gmra.mrb[98].mxu0 %v4058_v5 }
 0xa5f   : > { %6109 = vmatprep.mubr.f32.mxu0 %v4059_v32 }
 0xa60   : > { %v9074_v47 = vpop.f32.mrb[122].mxu1 }
 0xa61   : > { %v9076_v55 = vpop.f32.mrb[123].mxu1 }
 0xa62   : > { %6110 = vmatmul.mubr.f32.gmra.mrb[100].mxu0 %v4060_v0 }
 0xa63   : > { %6112 = vmatprep.mubr.f32.mxu0 %v4061_v8 }
 0xa66   : > { %6113 = vmatmul.mubr.f32.gmra.mrb[102].mxu0 %v4062_v23 }
 0xa67   : > { %6115 = vmatprep.mubr.f32.mxu0 %v4063_v1  ;;  %v9091_v1 = vpop.permute.xlu0 %4630 }
 0xa6a   : > { %6116 = vmatmul.mubr.f32.gmra.mrb[104].mxu0 %v4064_v58 }
 0xa6b   : > { %6118 = vmatprep.mubr.f32.mxu0 %v4065_v59 }
 0xa6e   : > { %6119 = vmatmul.mubr.f32.gmra.mrb[106].mxu0 %v4066_v36  ;;  %v9094_v36 = vpop.permute.xlu1 %4625 }
 0xa6f   : > { %6121 = vmatprep.mubr.f32.mxu0 %v4067_v52 }
 0xa72   : > { %6122 = vmatmul.mubr.f32.gmra.mrb[108].mxu0 %v4068_v31 }
 0xa73   : > { %6124 = vmatprep.mubr.f32.mxu0 %v4069_v44 }
 0xa76   : > { %6125 = vmatmul.mubr.f32.gmra.mrb[110].mxu0 %v4070_v4 }
 0xa77   : > { %6143 = vmatprep.mubr.f32.mxu0 %v4007_v61 }
 0xa7a   : > { %6144 = vmatmul.mubr.f32.vlgmr.msra.gmra.mrb[80].mxu0 %v4008_v56 }
 0xa7b   : > { %6146 = vmatprep.mubr.f32.mxu0 %v4009_v54 }
 0xa7e   : > { %6147 = vmatmul.mubr.f32.gmra.mrb[82].mxu0 %v4010_v34 }
 0xb15   : > { %v6087_v46 = vpop.f32.mrb[84].mxu0 }
 0xb16   : > { %v4388_v49 = vadd.f32 %v6151_v14, %v6087_v46  ;;  %v4157_v26 = vpop.f32.mrb[85].mxu0  ;;  %v9108_v46 = vpop.permute.xlu1 %4635 }
 0xb17   : > { %v4383_v13 = vadd.f32 %v4382_v9, %v4157_v26 }
 0xb18   : > { %v9086_v10 = vadd.f32 %v4581_v60, %v4388_v49  ;;  %v9104_v60 = vpop.permute.xlu0 %4640 }
 0xb19   : > { %v9088_v5 = vadd.f32 %v4576_v53, %v4383_v13  ;;  %v6090_v32 = vpop.f32.mrb[86].mxu0 }
 0xb1a   : > { %v4750_v0 = vsub.f32 0.0, %v9086_v10  ;;  %v4398_v8 = vadd.f32 %v6154_v18, %v6090_v32  ;;  %v4167_v23 = vpop.f32.mrb[87].mxu0 }
 0xb1b   : > { %v4749_v58 = vsub.f32 0.0, %v9088_v5  ;;  %v4393_v59 = vadd.f32 %v4392_v24, %v4167_v23 }
 0xb1c   : > { %v4787_v52 = vmul.f32 1.442695, %v4750_v0  ;;  %v9096_v31 = vadd.f32 %v4591_v28, %v4398_v8 }
 0xb1d   : > { %v4785_v44 = vmul.f32 1.442695, %v4749_v58  ;;  %v9098_v4 = vadd.f32 %v4586_v21, %v4393_v59  ;;  %v6093_v61 = vpop.f32.mrb[88].mxu0 }
 0xb1e   : > { %7051 = vpow2.f32 %v4787_v52  ;;  %v4752_v56 = vsub.f32 0.0, %v9096_v31  ;;  %v4408_v54 = vadd.f32 %v6157_v57, %v6093_v61  ;;  %v4177_v34 = vpop.f32.mrb[89].mxu0 }
 0xb1f   : > { %7053 = vpow2.f32 %v4785_v44  ;;  %v4751_v14 = vsub.f32 0.0, %v9098_v4  ;;  %v4403_v9 = vadd.f32 %v4402_v20, %v4177_v34 }
 0xb20   : > { %v4791_v18 = vmul.f32 1.442695, %v4752_v56  ;;  %v9102_v24 = vadd.f32 %v4601_v19, %v4408_v54 }
 0xb21   : > { %v4789_v53 = vmul.f32 1.442695, %v4751_v14  ;;  %v9106_v28 = vadd.f32 %v4596_v16, %v4403_v9  ;;  %v6096_v21 = vpop.f32.mrb[90].mxu0 }
 0xb22   : > { %7055 = vpow2.f32 %v4791_v18  ;;  %v4754_v49 = vsub.f32 0.0, %v9102_v24  ;;  %v4418_v57 = vadd.f32 %v9034_v22, %v6096_v21  ;;  %v4187_v26 = vpop.f32.mrb[91].mxu0  ;;  %v9120_v22 = vpop.permute.xlu0 %4650 }
 0xb23   : > { %7057 = vpow2.f32 %v4789_v53  ;;  %v4753_v20 = vsub.f32 0.0, %v9106_v28  ;;  %v4413_v19 = vadd.f32 %v9036_v27, %v4187_v26 }
 0xb24   : > { %v4795_v13 = vmul.f32 1.442695, %v4754_v49  ;;  %v9114_v32 = vadd.f32 %v4611_v25, %v4418_v57  ;;  %v9124_v25 = vpop.permute.xlu1 %4645 }
 0xb25   : > { %v4793_v0 = vmul.f32 1.442695, %v4753_v20  ;;  %v9116_v16 = vadd.f32 %v4606_v11, %v4413_v19  ;;  %v6099_v8 = vpop.f32.mrb[92].mxu0 }
 0xb26   : > { %7059 = vpow2.f32 %v4795_v13  ;;  %v4756_v23 = vsub.f32 0.0, %v9114_v32  ;;  %v4428_v58 = vadd.f32 %v9038_v17, %v6099_v8  ;;  %v4197_v59 = vpop.f32.mrb[93].mxu0  ;;  %v9137_v20 = vpop.permute.xlu0 %4660 }
 0xb27   : > { %7061 = vpow2.f32 %v4793_v0  ;;  %v4755_v52 = vsub.f32 0.0, %v9116_v16  ;;  %v4423_v27 = vadd.f32 %v9040_v40, %v4197_v59 }
 0xb28   : > { %v7052_v44 = vpop.eup %7051  ;;  %v4799_v61 = vmul.f32 1.442695, %v4756_v23  ;;  %v9126_v11 = vadd.f32 %v4621_v63, %v4428_v58  ;;  %v9142_v8 = vpop.permute.xlu1 %4655 }
 0xb29   : > { %v7054_v56 = vpop.eup %7053  ;;  %v4846_v54 = vadd.f32 1.0, %v7052_v44  ;;  %v4797_v34 = vmul.f32 1.442695, %v4755_v52  ;;  %v9128_v14 = vadd.f32 %v4616_v51, %v4423_v27  ;;  %v6102_v17 = vpop.f32.mrb[94].mxu0 }
 0xb2a   : > { %v4845_v9 = vadd.f32 1.0, %v7054_v56  ;;  %7063 = vpow2.f32 %v4799_v61  ;;  %v4758_v18 = vsub.f32 0.0, %v9126_v11  ;;  %v4438_v53 = vadd.f32 %v9042_v62, %v6102_v17  ;;  %v4207_v21 = vpop.f32.mrb[95].mxu0 }
 0xb2b   : > { %7065 = vrcp.f32 %v4846_v54  ;;  %v4757_v40 = vsub.f32 0.0, %v9128_v14  ;;  %v4433_v49 = vadd.f32 %v9044_v7, %v4207_v21 }
 0xb2c   : > { %v7056_v63 = vpop.eup %7055  ;;  %7067 = vrcp.f32 %v4845_v9  ;;  %v4803_v57 = vmul.f32 1.442695, %v4758_v18  ;;  %v9135_v26 = vadd.f32 %v9091_v1, %v4438_v53  ;;  %v4671_v53 = vpop.permute.xlu0 %4670 }
 0xb2d   : > { %v7058_v51 = vpop.eup %7057  ;;  %v4848_v19 = vadd.f32 1.0, %v7056_v63  ;;  %7069 = vpow2.f32 %v4797_v34  ;;  %v4801_v13 = vmul.f32 1.442695, %v4757_v40  ;;  %v9140_v62 = vadd.f32 %v9094_v36, %v4433_v49  ;;  %v6105_v0 = vpop.f32.mrb[96].mxu0 }
 0xb2e   : > { %v4847_v23 = vadd.f32 1.0, %v7058_v51  ;;  %7071 = vpow2.f32 %v4803_v57  ;;  %v4760_v7 = vsub.f32 0.0, %v9135_v26  ;;  %v4448_v1 = vadd.f32 %v9046_v43, %v6105_v0  ;;  %v4217_v58 = vpop.f32.mrb[97].mxu0  ;;  %v4666_v49 = vpop.permute.xlu1 %4665 }
 0xb2f   : > { %7073 = vrcp.f32 %v4848_v19  ;;  %v4759_v59 = vsub.f32 0.0, %v9140_v62  ;;  %v4443_v52 = vadd.f32 %v9048_v33, %v4217_v58 }
 0xb30   : > { %v7060_v27 = vpop.eup %7059  ;;  %7075 = vrcp.f32 %v4847_v23  ;;  %v4807_v36 = vmul.f32 1.442695, %v4760_v7  ;;  %v9149_v44 = vadd.f32 %v9104_v60, %v4448_v1 }
 0xb31   : > { %v7062_v61 = vpop.eup %7061  ;;  %v4850_v56 = vadd.f32 1.0, %v7060_v27  ;;  %7077 = vpow2.f32 %v4801_v13  ;;  %v4805_v54 = vmul.f32 1.442695, %v4759_v59  ;;  %v9152_v34 = vadd.f32 %v9108_v46, %v4443_v52  ;;  %v6108_v43 = vpop.f32.mrb[98].mxu0 }
 0xb32   : > { %v4849_v17 = vadd.f32 1.0, %v7062_v61  ;;  %7079 = vpow2.f32 %v4807_v36  ;;  %v4762_v9 = vsub.f32 0.0, %v9149_v44  ;;  %v4458_v33 = vadd.f32 %v9050_v15, %v6108_v43  ;;  %v4227_v18 = vpop.f32.mrb[99].mxu0 }
 0xb33   : > { %7081 = vrcp.f32 %v4850_v56  ;;  %v4761_v60 = vsub.f32 0.0, %v9152_v34  ;;  %v4453_v21 = vadd.f32 %v9052_v12, %v4227_v18 }
 0xb34   : > { %v7064_v40 = vpop.eup %7063  ;;  %7083 = vrcp.f32 %v4849_v17  ;;  %v4811_v46 = vmul.f32 1.442695, %v4762_v9  ;;  %v9160_v63 = vadd.f32 %v9120_v22, %v4458_v33  ;;  %v4676_v17 = vpop.permute.xlu1 %4675 }
 0xb35   : > { %v7066_v57 = vpop.eup %7065  ;;  %v4852_v15 = vadd.f32 1.0, %v7064_v40  ;;  %7085 = vpow2.f32 %v4805_v54  ;;  %v4809_v51 = vmul.f32 1.442695, %v4761_v60  ;;  %v9168_v19 = vadd.f32 %v9124_v25, %v4453_v21  ;;  %v6111_v12 = vpop.f32.mrb[100].mxu0 }
 0xb36   : > { %v7068_v13 = vpop.eup %7067  ;;  %v4884_v0 = vmul.f32 %v7066_v57, %v9086_v10  ;;  %7087 = vpow2.f32 %v4811_v46  ;;  %v4764_v22 = vsub.f32 0.0, %v9160_v63  ;;  %v4468_v23 = vadd.f32 %v9054_v39, %v6111_v12  ;;  %v4237_v7 = vpop.f32.mrb[101].mxu0 }
 0xb37   : > { %v7070_v1 = vpop.eup %7069  ;;  %v4882_v58 = vmul.f32 %v7068_v13, %v9088_v5  ;;  %7089 = vrcp.f32 %v4852_v15  ;;  %v4763_v59 = vsub.f32 0.0, %v9168_v19  ;;  %v4463_v25 = vadd.f32 %v9056_v41, %v4237_v7  ;;  %v4681_v39 = vpop.permute.xlu0 %4680 }
 0xb38   : > { %v7072_v52 = vpop.eup %7071  ;;  %4942 = vst.msk [vmem:[%s9165_s13 + $0x28] sm:$0xff] %vm1319_vm2, %v4884_v0  ;;  %v4851_v27 = vadd.f32 1.0, %v7070_v1  ;;  %7091 = vpow2.f32 %v4809_v51  ;;  %v4815_v10 = vmul.f32 1.442695, %v4764_v22  ;;  %v9179_v36 = vadd.f32 %v9137_v20, %v4468_v23 }
 0xb39   : > { %v7074_v61 = vpop.eup %7073  ;;  %4941 = vst.msk [vmem:[%s9165_s13 + $0x20] sm:$0xff] %vm1319_vm2, %v4882_v58  ;;  %v4854_v56 = vadd.f32 1.0, %v7072_v52  ;;  %v4813_v5 = vmul.f32 1.442695, %v4763_v59  ;;  %v9184_v54 = vadd.f32 %v9142_v8, %v4463_v25  ;;  %v6114_v41 = vpop.f32.mrb[102].mxu0 }
 0xb3a   : > { %v7076_v43 = vpop.eup %7075  ;;  %v4888_v9 = vmul.f32 %v7074_v61, %v9096_v31  ;;  %7093 = vrcp.f32 %v4851_v27  ;;  %v4766_v20 = vsub.f32 0.0, %v9179_v36  ;;  %v4478_v33 = vadd.f32 %v9058_v48, %v6114_v41  ;;  %v4247_v18 = vpop.f32.mrb[103].mxu0 }
 0xb3b   : > { %v7078_v60 = vpop.eup %7077  ;;  %v4886_v21 = vmul.f32 %v7076_v43, %v9098_v4  ;;  %7095 = vrcp.f32 %v4854_v56  ;;  %v4765_v40 = vsub.f32 0.0, %v9184_v54  ;;  %v4473_v8 = vadd.f32 %v9060_v29, %v4247_v18  ;;  %v4691_v1 = vpop.permute.xlu0 %4690 }
 0xb3c   : > { %v7080_v46 = vpop.eup %7079  ;;  %4944 = vst.msk [vmem:[%s9165_s13 + $0x38] sm:$0xff] %vm1319_vm2, %v4888_v9  ;;  %v4853_v57 = vadd.f32 1.0, %v7078_v60  ;;  %7097 = vpow2.f32 %v4815_v10  ;;  %v4819_v31 = vmul.f32 1.442695, %v4766_v20  ;;  %v9194_v15 = vadd.f32 %v4671_v53, %v4478_v33  ;;  %v4686_v52 = vpop.permute.xlu1 %4685 }
 0xb3d   : > { %v7082_v51 = vpop.eup %7081  ;;  %4943 = vst.msk [vmem:[%s9165_s13 + $0x30] sm:$0xff] %vm1319_vm2, %v4886_v21  ;;  %v4856_v48 = vadd.f32 1.0, %v7080_v46  ;;  %7099 = vpow2.f32 %v4813_v5  ;;  %v4817_v12 = vmul.f32 1.442695, %v4765_v40  ;;  %v9198_v4 = vadd.f32 %v4666_v49, %v4473_v8  ;;  %v6117_v13 = vpop.f32.mrb[104].mxu0 }
 0xb3e   : > { %v7084_v0 = vpop.eup %7083  ;;  %v4892_v29 = vmul.f32 %v7082_v51, %v9102_v24  ;;  %7101 = vrcp.f32 %v4853_v57  ;;  %v4768_v22 = vsub.f32 0.0, %v9194_v15  ;;  %v4488_v23 = vadd.f32 %v9062_v35, %v6117_v13  ;;  %v4257_v53 = vpop.f32.mrb[105].mxu0 }
 0xb3f   : > { %v7086_v7 = vpop.eup %7085  ;;  %v4890_v58 = vmul.f32 %v7084_v0, %v9106_v28  ;;  %7103 = vrcp.f32 %v4856_v48  ;;  %v4767_v49 = vsub.f32 0.0, %v9198_v4  ;;  %v4483_v59 = vadd.f32 %v9064_v2, %v4257_v53  ;;  %v4701_v40 = vpop.permute.xlu0 %4700 }
 0xb40   : > { %v7088_v25 = vpop.eup %7087  ;;  %4946 = vst.msk [vmem:[%s9165_s13 + $0x48] sm:$0xff] %vm1319_vm2, %v4892_v29  ;;  %v4855_v24 = vadd.f32 1.0, %v7086_v7  ;;  %7105 = vpow2.f32 %v4819_v31  ;;  %v4823_v27 = vmul.f32 1.442695, %v4768_v22  ;;  %v9208_v10 = vadd.f32 %v4681_v39, %v4488_v23 }
 0xb41   : > { %v7090_v35 = vpop.eup %7089  ;;  %4945 = vst.msk [vmem:[%s9165_s13 + $0x40] sm:$0xff] %vm1319_vm2, %v4890_v58  ;;  %v4858_v61 = vadd.f32 1.0, %v7088_v25  ;;  %7107 = vpow2.f32 %v4817_v12  ;;  %v4821_v28 = vmul.f32 1.442695, %v4767_v49  ;;  %v9212_v56 = vadd.f32 %v4676_v17, %v4483_v59  ;;  %v6120_v5 = vpop.f32.mrb[106].mxu0 }
 0xb42   : > { %v7092_v2 = vpop.eup %7091  ;;  %v4896_v41 = vmul.f32 %v7090_v35, %v9114_v32  ;;  %7109 = vrcp.f32 %v4855_v24  ;;  %v4770_v43 = vsub.f32 0.0, %v9208_v10  ;;  %v4498_v9 = vadd.f32 %v9066_v38, %v6120_v5  ;;  %v4267_v39 = vpop.f32.mrb[107].mxu0 }
 0xb43   : > { %7111 = vrcp.f32 %v4858_v61  ;;  %v4857_v20 = vadd.f32 1.0, %v7092_v2  ;;  %v4769_v33 = vsub.f32 0.0, %v9212_v56  ;;  %v4493_v18 = vadd.f32 %v9068_v50, %v4267_v39  ;;  %v4696_v50 = vpop.permute.xlu1 %4695  ;;  %v4711_v61 = vpop.permute.xlu0 %4710 }
 0xb44   : > { %v7094_v60 = vpop.eup %7093  ;;  %4948 = vst.msk [vmem:[%s9165_s13 + $0x58] sm:$0xff] %vm1319_vm2, %v4896_v41  ;;  %7113 = vpow2.f32 %v4823_v27  ;;  %v4827_v17 = vmul.f32 1.442695, %v4770_v43  ;;  %v9221_v21 = vadd.f32 %v4691_v1, %v4498_v9 }
 0xb45   : > { %v7096_v32 = vpop.eup %7095  ;;  %v4894_v8 = vmul.f32 %v7094_v60, %v9116_v16  ;;  %7115 = vrcp.f32 %v4857_v20  ;;  %v4825_v38 = vmul.f32 1.442695, %v4769_v33  ;;  %v9224_v46 = vadd.f32 %v4686_v52, %v4493_v18  ;;  %v6123_v57 = vpop.f32.mrb[108].mxu0 }
 0xb46   : > { %v7098_v31 = vpop.eup %7097  ;;  %v4900_v51 = vmul.f32 %v7096_v32, %v9126_v11  ;;  %7117 = vpow2.f32 %v4821_v28  ;;  %v4772_v48 = vsub.f32 0.0, %v9221_v21  ;;  %v4508_v12 = vadd.f32 %v9070_v45, %v6123_v57  ;;  %v4277_v13 = vpop.f32.mrb[109].mxu0 }
 0xb47   : > { %v7100_v0 = vpop.eup %7099  ;;  %4947 = vst.msk [vmem:[%s9165_s13 + $0x50] sm:$0xff] %vm1319_vm2, %v4894_v8  ;;  %v4860_v16 = vadd.f32 1.0, %v7098_v31  ;;  %7119 = vpow2.f32 %v4827_v17  ;;  %v4771_v29 = vsub.f32 0.0, %v9224_v46  ;;  %v4503_v22 = vadd.f32 %v9072_v42, %v4277_v13  ;;  %v4706_v41 = vpop.permute.xlu1 %4705 }
 0xb48   : > { %v7102_v23 = vpop.eup %7101  ;;  %4950 = vst.msk [vmem:[%s9165_s13 + $0x68] sm:$0xff] %vm1319_vm2, %v4900_v51  ;;  %v4859_v53 = vadd.f32 1.0, %v7100_v0  ;;  %7121 = vpow2.f32 %v4825_v38  ;;  %v4831_v11 = vmul.f32 1.442695, %v4772_v48  ;;  %v9235_v7 = vadd.f32 %v4701_v40, %v4508_v12 }
 0xb49   : > { %v7104_v45 = vpop.eup %7103  ;;  %v4898_v1 = vmul.f32 %v7102_v23, %v9128_v14  ;;  %7123 = vrcp.f32 %v4860_v16  ;;  %v4829_v58 = vmul.f32 1.442695, %v4771_v29  ;;  %v9238_v49 = vadd.f32 %v4696_v50, %v4503_v22  ;;  %v6126_v59 = vpop.f32.mrb[110].mxu0 }
 0xb4a   : > { %v7106_v25 = vpop.eup %7105  ;;  %v4904_v42 = vmul.f32 %v7104_v45, %v9135_v26  ;;  %7125 = vrcp.f32 %v4859_v53  ;;  %v4774_v52 = vsub.f32 0.0, %v9235_v7  ;;  %v4518_v24 = vadd.f32 %v9074_v47, %v6126_v59  ;;  %v4287_v27 = vpop.f32.mrb[111].mxu0 }
 0xb4b   : > { %v7108_v35 = vpop.eup %7107  ;;  %4949 = vst.msk [vmem:[%s9165_s13 + $0x60] sm:$0xff] %vm1319_vm2, %v4898_v1  ;;  %v4862_v14 = vadd.f32 1.0, %v7106_v25  ;;  %7127 = vpow2.f32 %v4831_v11  ;;  %v4773_v28 = vsub.f32 0.0, %v9238_v49  ;;  %v4513_v5 = vadd.f32 %v9076_v55, %v4287_v27 }
 0xb4c   : > { %v7110_v2 = vpop.eup %7109  ;;  %4952 = vst.msk [vmem:[%s9165_s13 + $0x78] sm:$0xff] %vm1319_vm2, %v4904_v42  ;;  %v4861_v26 = vadd.f32 1.0, %v7108_v35  ;;  %7129 = vpow2.f32 %v4829_v58  ;;  %v4835_v43 = vmul.f32 1.442695, %v4774_v52  ;;  %v9249_v47 = vadd.f32 %v4711_v61, %v4518_v24 }
 0xb4d   : > { %v7112_v9 = vpop.eup %7111  ;;  %v4902_v39 = vmul.f32 %v7110_v2, %v9140_v62  ;;  %7131 = vrcp.f32 %v4862_v14  ;;  %v4833_v20 = vmul.f32 1.442695, %v4773_v28  ;;  %v9252_v33 = vadd.f32 %v4706_v41, %v4513_v5  ;;  %v6145_v18 = vpop.f32.mrb[80].mxu0 }
 0xb4e   : > { %v7114_v55 = vpop.eup %7113  ;;  %v4908_v60 = vmul.f32 %v7112_v9, %v9149_v44  ;;  %7133 = vrcp.f32 %v4861_v26  ;;  %v4776_v17 = vsub.f32 0.0, %v9249_v47  ;;  %v9257_v32 = vadd.f32 %v6145_v18, %v9080_v37  ;;  %v4362_v40 = vpop.f32.mrb[81].mxu0 }
 0xb4f   : > { %v7116_v8 = vpop.eup %7115  ;;  %4951 = vst.msk [vmem:[%s9165_s13 + $0x70] sm:$0xff] %vm1319_vm2, %v4902_v39  ;;  %v4864_v62 = vadd.f32 1.0, %v7114_v55  ;;  %7135 = vpow2.f32 %v4835_v43  ;;  %v4775_v38 = vsub.f32 0.0, %v9252_v33  ;;  %v9263_v57 = vadd.f32 %v9078_v3, %v4362_v40 }
 0xb50   : > { %v7118_v31 = vpop.eup %7117  ;;  %4954 = vst.msk [vmem:[%s9165_s13 + $0x88] sm:$0xff] %vm1319_vm2, %v4908_v60  ;;  %v4906_v44 = vmul.f32 %v7116_v8, %v9152_v34  ;;  %7137 = vpow2.f32 %v4833_v20  ;;  %v4839_v37 = vmul.f32 1.442695, %v4776_v17  ;;  %v4746_v50 = vsub.f32 0.0, %v9257_v32 }
 0xb51   : > { %v7120_v51 = vpop.eup %7119  ;;  %7139 = vrcp.f32 %v4864_v62  ;;  %v4863_v48 = vadd.f32 1.0, %v7118_v31  ;;  %v4837_v12 = vmul.f32 1.442695, %v4775_v38  ;;  %v6148_v13 = vpop.f32.mrb[82].mxu0  ;;  %v4745_v3 = vsub.f32 0.0, %v9263_v57 }
 0xb52   : > { %v7122_v0 = vpop.eup %7121  ;;  %4953 = vst.msk [vmem:[%s9165_s13 + $0x80] sm:$0xff] %vm1319_vm2, %v4906_v44  ;;  %v4866_v16 = vadd.f32 1.0, %v7120_v51  ;;  %7141 = vpow2.f32 %v4839_v37  ;;  %v9273_v29 = vadd.f32 %v6148_v13, %v9082_v30  ;;  %v4372_v34 = vpop.f32.mrb[83].mxu0  ;;  %v4779_v53 = vmul.f32 1.442695, %v4746_v50 }
 0xb53   : > { %v7124_v22 = vpop.eup %7123  ;;  %7143 = vrcp.f32 %v4863_v48  ;;  %v4865_v23 = vadd.f32 1.0, %v7122_v0  ;;  %v9276_v11 = vadd.f32 %v9084_v6, %v4372_v34  ;;  %v4777_v52 = vmul.f32 1.442695, %v4745_v3 }
 0xb54   : > { %v7126_v45 = vpop.eup %7125  ;;  %v4912_v1 = vmul.f32 %v7124_v22, %v9160_v63  ;;  %7145 = vrcp.f32 %v4866_v16  ;;  %v4748_v58 = vsub.f32 0.0, %v9273_v29 }
 0xb55   : > { %v7128_v59 = vpop.eup %7127  ;;  %v4910_v25 = vmul.f32 %v7126_v45, %v9168_v19  ;;  %7147 = vrcp.f32 %v4865_v23  ;;  %v4747_v6 = vsub.f32 0.0, %v9276_v11 }
 0xb56   : > { %v7130_v30 = vpop.eup %7129  ;;  %4956 = vst.msk [vmem:[%s9165_s13 + $0x98] sm:$0xff] %vm1319_vm2, %v4912_v1  ;;  %v4868_v42 = vadd.f32 1.0, %v7128_v59  ;;  %7149 = vpow2.f32 %v4837_v12  ;;  %v4783_v27 = vmul.f32 1.442695, %v4748_v58 }
 0xb57   : > { %v7132_v24 = vpop.eup %7131  ;;  %4955 = vst.msk [vmem:[%s9165_s13 + $0x90] sm:$0xff] %vm1319_vm2, %v4910_v25  ;;  %v4867_v63 = vadd.f32 1.0, %v7130_v30  ;;  %7151 = vpow2.f32 %v4779_v53  ;;  %v4781_v2 = vmul.f32 1.442695, %v4747_v6 }
 0xb58   : > { %v7134_v35 = vpop.eup %7133  ;;  %v4916_v19 = vmul.f32 %v7132_v24, %v9179_v36  ;;  %7153 = vrcp.f32 %v4868_v42 }
 0xb59   : > { %v7136_v61 = vpop.eup %7135  ;;  %v4914_v14 = vmul.f32 %v7134_v35, %v9184_v54  ;;  %7155 = vrcp.f32 %v4867_v63 }
 0xb5a   : > { %v7138_v28 = vpop.eup %7137  ;;  %4958 = vst.msk [vmem:[%s9165_s13 + $0xa8] sm:$0xff] %vm1319_vm2, %v4916_v19  ;;  %v4870_v5 = vadd.f32 1.0, %v7136_v61  ;;  %7157 = vpow2.f32 %v4777_v52 }
 0xb5b   : > { %v7140_v41 = vpop.eup %7139  ;;  %4957 = vst.msk [vmem:[%s9165_s13 + $0xa0] sm:$0xff] %vm1319_vm2, %v4914_v14  ;;  %v4869_v26 = vadd.f32 1.0, %v7138_v28  ;;  %7159 = vpow2.f32 %v4783_v27 }
 0xb5c   : > { %v7142_v43 = vpop.eup %7141  ;;  %v4920_v36 = vmul.f32 %v7140_v41, %v9194_v15  ;;  %7161 = vrcp.f32 %v4870_v5 }
 0xb5d   : > { %v7144_v54 = vpop.eup %7143  ;;  %7163 = vrcp.f32 %v4869_v26  ;;  %v4872_v9 = vadd.f32 1.0, %v7142_v43 }
 0xb5e   : > { %v7146_v39 = vpop.eup %7145  ;;  %4960 = vst.msk [vmem:[%s9165_s13 + $0xb8] sm:$0xff] %vm1319_vm2, %v4920_v36  ;;  %v4918_v20 = vmul.f32 %v7144_v54, %v9198_v4  ;;  %7165 = vpow2.f32 %v4781_v2 }
 0xb5f   : > { %v7148_v18 = vpop.eup %7147  ;;  %v4924_v55 = vmul.f32 %v7146_v39, %v9208_v10  ;;  %7167 = vrcp.f32 %v4872_v9 }
 0xb60   : > { %v7150_v60 = vpop.eup %7149  ;;  %4959 = vst.msk [vmem:[%s9165_s13 + $0xb0] sm:$0xff] %vm1319_vm2, %v4918_v20  ;;  %v4922_v15 = vmul.f32 %v7148_v18, %v9212_v56 }
 0xb61   : > { %v7152_v17 = vpop.eup %7151  ;;  %4962 = vst.msk [vmem:[%s9165_s13 + $0xc8] sm:$0xff] %vm1319_vm2, %v4924_v55  ;;  %v4871_v40 = vadd.f32 1.0, %v7150_v60 }
 0xb62   : > { %v7154_v8 = vpop.eup %7153  ;;  %4961 = vst.msk [vmem:[%s9165_s13 + $0xc0] sm:$0xff] %vm1319_vm2, %v4922_v15  ;;  %v4842_v4 = vadd.f32 1.0, %v7152_v17 }
 0xb63   : > { %v7156_v62 = vpop.eup %7155  ;;  %v4928_v38 = vmul.f32 %v7154_v8, %v9221_v21  ;;  %7169 = vrcp.f32 %v4871_v40 }
 0xb64   : > { %v7158_v10 = vpop.eup %7157  ;;  %v4926_v31 = vmul.f32 %v7156_v62, %v9224_v46  ;;  %7171 = vrcp.f32 %v4842_v4 }
 0xb65   : > { %v7160_v56 = vpop.eup %7159  ;;  %4964 = vst.msk [vmem:[%s9165_s13 + $0xd8] sm:$0xff] %vm1319_vm2, %v4928_v38  ;;  %v4841_v44 = vadd.f32 1.0, %v7158_v10 }
 0xb66   : > { %v7162_v37 = vpop.eup %7161  ;;  %4963 = vst.msk [vmem:[%s9165_s13 + $0xd0] sm:$0xff] %vm1319_vm2, %v4926_v31  ;;  %v4844_v50 = vadd.f32 1.0, %v7160_v56 }
 0xb67   : > { %v7164_v51 = vpop.eup %7163  ;;  %v4932_v48 = vmul.f32 %v7162_v37, %v9235_v7  ;;  %7173 = vrcp.f32 %v4841_v44 }
 0xb68   : > { %v7166_v21 = vpop.eup %7165  ;;  %v4930_v46 = vmul.f32 %v7164_v51, %v9238_v49  ;;  %7175 = vrcp.f32 %v4844_v50 }
 0xb69   : > { %v7168_v12 = vpop.eup %7167  ;;  %4966 = vst.msk [vmem:[%s9165_s13 + $0xe8] sm:$0xff] %vm1319_vm2, %v4932_v48  ;;  %v4843_v13 = vadd.f32 1.0, %v7166_v21 }
 0xb6a   : > { %4965 = vst.msk [vmem:[%s9165_s13 + $0xe0] sm:$0xff] %vm1319_vm2, %v4930_v46  ;;  %v4936_v0 = vmul.f32 %v7168_v12, %v9249_v47 }
 0xb6b   : > { %7177 = vrcp.f32 %v4843_v13 }
 0xb6c   : > { %4968 = vst.msk [vmem:[%s9165_s13 + $0xf8] sm:$0xff] %vm1319_vm2, %v4936_v0 }
 0xb6d   : > { %v7170_v7 = vpop.eup %7169 }
 0xb6e   : > { %v7172_v16 = vpop.eup %7171  ;;  %v4934_v3 = vmul.f32 %v7170_v7, %v9252_v33 }
 0xb6f   : > { %v4876_v49 = vmul.f32 %v7172_v16, %v9257_v32 }
 0xb70   : > { %4967 = vst.msk [vmem:[%s9165_s13 + $0xf0] sm:$0xff] %vm1319_vm2, %v4934_v3 }
 0xb71   : > { %v7174_v34 = vpop.eup %7173  ;;  %4938 = vst.msk [vmem:[%s9165_s13 + $0x8] sm:$0xff] %vm1319_vm2, %v4876_v49 }
 0xb72   : > { %v7176_v22 = vpop.eup %7175  ;;  %v4874_v23 = vmul.f32 %v7174_v34, %v9263_v57 }
 0xb73   : > { %v4880_v47 = vmul.f32 %v7176_v22, %v9273_v29 }
 0xb74   : > { %4937 = vst.msk [vmem:[%s9165_s13] sm:$0xff] %vm1319_vm2, %v4874_v23 }
 0xb75   : > { %v7178_v53 = vpop.eup %7177  ;;  %4940 = vst.msk [vmem:[%s9165_s13 + $0x18] sm:$0xff] %vm1319_vm2, %v4880_v47 }
 0xb76   : > { %v4878_v45 = vmul.f32 %v7178_v53, %v9276_v11 }
 0xb78   : > { %4939 = vst.msk [vmem:[%s9165_s13 + $0x10] sm:$0xff] %vm1319_vm2, %v4878_v45 }
 0xb79 PF: > { %s9440_s21 = sld [smem:[#allocation25_spill]] }
 0xb7f   : > { %s33_s24 = sadd.s32 1, %s9440_s21  }
 0xb80   : > { %p30_p2 = scmp.ge.s32.totalorder %s33_s24, 4  }
 0xb82   :  { %32 = sbr.rel (!%p30_p2) target bundleno = 13 (0xd), region = 167 }
 0xb89   :  { %4990 = vsyncpa [#allocation4], 1 }
 0xb8a   :  { %4992 = vsyncpa [#allocation4 + $0x1], 1 }
 0xb8b   :  { %4993 = vsyncpa [#allocation6], 1 }
 0xb8c   :  { %4994 = vsyncpa [#allocation9], 1 }
 0xb8d   :  { %4995 = vsyncpa [#allocation12], 1 }
 0xb8e   :  { %4996 = vsyncpa [#allocation15], 1 }
 0xb8f   :  { %4997 = vsyncpa [#allocation18], 1 }

</bundles_post_ra>
